<compile_context>
chip_gen: v7x
topology: tpu7x:2x2x1
jax: 0.10.0
libtpu: 0.0.40
codegen_flags: <defaults>
</compile_context>

<pallas_src>
import functools

import jax
import jax.numpy as jnp
from jax import lax
from jax.experimental import pallas as pl
from jax.experimental.pallas import tpu as pltpu


# ----------------------------------------------------------------------------
# Fused kernel: one (batch, q-tile) grid step.
#   x_ref          : (1, T, C)      bf16 input slab for batch b (K/V need all rows)
#   wqkv_ref       : (C, 3*H*hs)    stacked [Q | K | V] projection weights (bf16)
#   wproj_ref      : (H*hs, n_out)  output projection weights (bf16)
#   b_ref          : (1, n_out)     output projection bias (f32)
#   o_ref          : (1, q_tile, n_out)
#   qkv_scratch    : (T, 3*H*hs)    bf16 VMEM; QKV for the current batch row
#   concat_scratch : (q_tile, H*hs) bf16 VMEM; per-head outputs concatenated
# ----------------------------------------------------------------------------
def _mha_kernel(x_ref, wqkv_ref, wproj_ref, b_ref, o_ref,
                qkv_scratch, concat_scratch, *,
                num_heads, head_size, q_tile):
    H, hs = num_heads, head_size
    D = H * hs
    T = x_ref.shape[1]
    qi = pl.program_id(1)

    # QKV for the whole sequence, computed once per batch row and cached in VMEM
    # scratch across the (sequential, "arbitrary") q-tile axis.
    @pl.when(qi == 0)
    def _():
        qkv_scratch[...] = jnp.dot(
            x_ref[0], wqkv_ref[...], preferred_element_type=jnp.float32
        ).astype(jnp.bfloat16)

    q_start = pl.multiple_of(qi * q_tile, q_tile)

    # Causal mask for this q-tile against all T keys.
    row = lax.broadcasted_iota(jnp.int32, (q_tile, T), 0) + q_start
    col = lax.broadcasted_iota(jnp.int32, (q_tile, T), 1)
    keep = col <= row
    # -inf is safe here: the causal diagonal guarantees >=1 unmasked key per row.
    neg_inf = jnp.float32(float("-inf"))

    # hs**-0.5 folded into q (exact for hs a power of 4; tiny bf16 rounding otherwise).
    scale = float(hs) ** -0.5

    for h in range(H):                     # short static unroll (H is small)
        qh = qkv_scratch[pl.ds(q_start, q_tile), h * hs:(h + 1) * hs] * scale
        kh = qkv_scratch[:, D + h * hs: D + (h + 1) * hs]              # (T, hs)
        vh = qkv_scratch[:, 2 * D + h * hs: 2 * D + (h + 1) * hs]      # (T, hs)

        # scores = qh @ kh^T without an explicit transpose (contract last dims).
        s = lax.dot_general(qh, kh, (((1,), (1,)), ((), ())),
                            preferred_element_type=jnp.float32)        # (q_tile, T)
        s = jnp.where(keep, s, neg_inf)

        # Numerically-stable softmax in f32.
        m = jnp.max(s, axis=-1, keepdims=True)
        p = jnp.exp(s - m)
        denom = jnp.sum(p, axis=-1, keepdims=True)
        p = p * pl.reciprocal(denom, approx=True)

        concat_scratch[:, h * hs:(h + 1) * hs] = jnp.dot(
            p.astype(jnp.bfloat16), vh, preferred_element_type=jnp.float32
        ).astype(jnp.bfloat16)

    # Fused output projection + bias (dropout is identity in eval mode).
    y = jnp.dot(concat_scratch[...], wproj_ref[...],
                preferred_element_type=jnp.float32) + b_ref[...]
    o_ref[0] = y.astype(o_ref.dtype)


def pack_mha_params(wq, wk, wv, w_proj, b_proj):
    """One-time packing of per-head weights into the kernel layout.

    wq/wk/wv: (H, C, hs) in `x @ W` orientation; w_proj: (H*hs, n_out); b_proj: (n_out,).
    Do this at init (or let it constant-fold under jit) -- not per forward call.
    """
    H, C, hs = wq.shape
    D = H * hs
    # Heads concatenated along the output dim (matches torch.cat over heads),
    # then [Q | K | V] packed side by side -> (C, 3D).
    wq_s = jnp.transpose(wq, (1, 0, 2)).reshape(C, D)
    wk_s = jnp.transpose(wk, (1, 0, 2)).reshape(C, D)
    wv_s = jnp.transpose(wv, (1, 0, 2)).reshape(C, D)
    w_qkv = jnp.concatenate([wq_s, wk_s, wv_s], axis=1).astype(jnp.bfloat16)
    w_proj_bf = w_proj.astype(jnp.bfloat16)
    b_2d = b_proj.reshape(1, -1).astype(jnp.float32)
    return w_qkv, w_proj_bf, b_2d


def multi_head_attention(x, w_qkv, w_proj_bf, b_2d, *, num_heads, head_size, q_tile=None):
    """x: (B, T, C); packed weights from pack_mha_params. Returns (B, T, n_out)."""
    B, T, C = x.shape
    D = num_heads * head_size
    n_out = w_proj_bf.shape[1]

    if q_tile is None:
        q_tile = min(T, 128)
    assert T % q_tile == 0, (T, q_tile)
    num_q = T // q_tile

    # Halve x DMA bytes into the kernel; all in-kernel consumers are bf16 matmuls.
    x_bf = x.astype(jnp.bfloat16)

    kernel = functools.partial(_mha_kernel, num_heads=num_heads,
                               head_size=head_size, q_tile=q_tile)

    out = pl.pallas_call(
        kernel,
        out_shape=jax.ShapeDtypeStruct((B, T, n_out), x.dtype),
        grid_spec=pltpu.PrefetchScalarGridSpec(
            num_scalar_prefetch=0,
            grid=(B, num_q),
            in_specs=[
                pl.BlockSpec((1, T, C), lambda b, qi: (b, 0, 0)),        # x (bf16)
                pl.BlockSpec((C, 3 * D), lambda b, qi: (0, 0)),          # w_qkv
                pl.BlockSpec((D, n_out), lambda b, qi: (0, 0)),          # w_proj
                pl.BlockSpec((1, n_out), lambda b, qi: (0, 0)),          # bias
            ],
            out_specs=pl.BlockSpec((1, q_tile, n_out), lambda b, qi: (b, qi, 0)),
            scratch_shapes=[
                pltpu.VMEM((T, 3 * D), jnp.bfloat16),     # cached QKV for this batch row
                pltpu.VMEM((q_tile, D), jnp.bfloat16),    # per-head concat buffer
            ],
        ),
        compiler_params=pltpu.CompilerParams(
            # batch: megacore-parallel on v7x; q-tile: sequential (scratch reuse).
            dimension_semantics=("parallel", "arbitrary"),
        ),
    )(x_bf, w_qkv, w_proj_bf, b_2d)
    return out


def reference(x, wq, wk, wv, w_proj, b_proj):
    """Plain-JAX f32 reference mirroring the PyTorch forward (eval mode)."""
    B, T, C = x.shape
    H, _, hs = wq.shape
    q = jnp.einsum("btc,hcd->bhtd", x, wq)
    k = jnp.einsum("btc,hcd->bhtd", x, wk)
    v = jnp.einsum("btc,hcd->bhtd", x, wv)
    wei = jnp.einsum("bhtd,bhsd->bhts", q, k) * (hs ** -0.5)
    mask = jnp.tril(jnp.ones((T, T), dtype=bool))
    wei = jnp.where(mask, wei, -jnp.inf)
    wei = jax.nn.softmax(wei, axis=-1)
    o = jnp.einsum("bhts,bhsd->bhtd", wei, v)          # (B, H, T, hs)
    o = jnp.transpose(o, (0, 2, 1, 3)).reshape(B, T, H * hs)
    return o @ w_proj + b_proj


if __name__ == "__main__":
    # Small shapes consistent with the module (n_embd=256, T <= block_size=256).
    B, T, C = 2, 128, 256
    H, hs = 4, 64                  # num_heads=4, head_size=64 -> concat dim 256

    key = jax.random.PRNGKey(0)
    kx, kq, kk, kv, kp, kb = jax.random.split(key, 6)

    scale_in = 1.0 / jnp.sqrt(jnp.float32(C))
    x = jax.random.normal(kx, (B, T, C), dtype=jnp.float32)
    wq = jax.random.normal(kq, (H, C, hs), dtype=jnp.float32) * scale_in
    wk = jax.random.normal(kk, (H, C, hs), dtype=jnp.float32) * scale_in
    wv = jax.random.normal(kv, (H, C, hs), dtype=jnp.float32) * scale_in
    w_proj = jax.random.normal(kp, (H * hs, C), dtype=jnp.float32) * (
        1.0 / jnp.sqrt(jnp.float32(H * hs)))
    b_proj = jax.random.normal(kb, (C,), dtype=jnp.float32) * 0.01

    # One-time packing (would live at module init in a real model).
    w_qkv, w_proj_bf, b_2d = pack_mha_params(wq, wk, wv, w_proj, b_proj)
    w_qkv, w_proj_bf, b_2d = jax.block_until_ready((w_qkv, w_proj_bf, b_2d))

    out = multi_head_attention(x, w_qkv, w_proj_bf, b_2d, num_heads=H, head_size=hs)
    out = jax.block_until_ready(out)

    ref = reference(x, wq, wk, wv, w_proj, b_proj)
    assert out.shape == (B, T, C), out.shape
    # Tolerance loosened vs. pure-f32 because MXU operands are bf16 (f32 accumulation)
    # and the softmax denominator uses the EUP approximate reciprocal.
    max_err = float(jnp.max(jnp.abs(out - ref)))
    assert jnp.allclose(out, ref, atol=5e-2, rtol=5e-2), max_err

    print("KERNEL_OK")
</pallas_src>

<mosaic_0001>
module attributes {stable_mosaic.version = 11 : i64} {
  func.func @_mha_kernel(%arg0: i32, %arg1: i32, %arg2: memref<1x128x256xbf16, #tpu.memory_space<vmem>>, %arg3: memref<256x768xbf16, #tpu.memory_space<vmem>>, %arg4: memref<256x256xbf16, #tpu.memory_space<vmem>>, %arg5: memref<1x256xf32, #tpu.memory_space<vmem>>, %arg6: memref<1x128x256xf32, #tpu.memory_space<vmem>>, %arg7: memref<128x768xbf16, #tpu.memory_space<vmem>>, %arg8: memref<128x256xbf16, #tpu.memory_space<vmem>>) attributes {dimension_semantics = [#tpu.dimension_semantics<parallel>, #tpu.dimension_semantics<arbitrary>], iteration_bounds = array<i64: 2, 1>, scalar_prefetch = 0 : i64, scratch_operands = 2 : i64, tpu.core_type = #tpu.core_type<tc>, window_params = [{transform_indices = @transform_0, window_bounds = array<i64: 1, 128, 256>}, {pipeline_mode = #tpu.pipeline_mode<synchronous>, transform_indices = @transform_1, window_bounds = array<i64: 256, 768>}, {pipeline_mode = #tpu.pipeline_mode<synchronous>, transform_indices = @transform_2, window_bounds = array<i64: 256, 256>}, {pipeline_mode = #tpu.pipeline_mode<synchronous>, transform_indices = @transform_3, window_bounds = array<i64: 1, 256>}, {transform_indices = @transform_4, window_bounds = array<i64: 1, 128, 256>}]} {
    %c0_i32 = arith.constant 0 : i32
    %0 = arith.cmpi eq, %arg1, %c0_i32 : i32
    %1 = arith.extui %0 : i1 to i32
    %c0_i32_0 = arith.constant 0 : i32
    %2 = arith.cmpi ne, %1, %c0_i32_0 : i32
    scf.if %2 {
      %c0_50 = arith.constant 0 : index
      %c0_51 = arith.constant 0 : index
      %c0_52 = arith.constant 0 : index
      %111 = vector.load %arg2[%c0_50, %c0_51, %c0_52] : memref<1x128x256xbf16, #tpu.memory_space<vmem>>, vector<1x128x256xbf16>
      %112 = vector.shape_cast %111 : vector<1x128x256xbf16> to vector<128x256xbf16>
      %c0_53 = arith.constant 0 : index
      %c0_54 = arith.constant 0 : index
      %113 = vector.load %arg3[%c0_53, %c0_54] : memref<256x768xbf16, #tpu.memory_space<vmem>>, vector<256x768xbf16>
      %cst_55 = arith.constant dense<0.000000e+00> : vector<128x768xf32>
      %114 = tpu.matmul %112, %113, %cst_55 {dimension_numbers = #tpu.dot_dimension_numbers<[1], [0], [0], [1], [0, 0, 1, 1], [], []>} : vector<128x256xbf16>, vector<256x768xbf16>, vector<128x768xf32> -> vector<128x768xf32>
      %115 = arith.truncf %114 : vector<128x768xf32> to vector<128x768xbf16>
      %c0_56 = arith.constant 0 : index
      %c0_57 = arith.constant 0 : index
      %116 = vector.load %arg7[%c0_56, %c0_57] : memref<128x768xbf16, #tpu.memory_space<vmem>>, vector<128x768xbf16>
      tpu.vector_store %arg7[%c0_56, %c0_57], %115 {strides = array<i32>} : memref<128x768xbf16, #tpu.memory_space<vmem>>, vector<128x768xbf16>,
    } else {
    }
    %c128_i32 = arith.constant 128 : i32
    %3 = arith.muli %arg1, %c128_i32 : i32
    %4 = tpu.assume_multiple %3, 128 : i32
    %5 = tpu.iota {dimensions = array<i32: 0>} : vector<128x128xi32>
    %6 = vector.broadcast %4 : i32 to vector<128x128xi32>
    %7 = arith.addi %5, %6 : vector<128x128xi32>
    %8 = tpu.iota {dimensions = array<i32: 1>} : vector<128x128xi32>
    %9 = arith.cmpi sle, %8, %7 : vector<128x128xi32>
    %10 = arith.index_cast %4 : i32 to index
    %c0 = arith.constant 0 : index
    %11 = vector.load %arg7[%10, %c0] : memref<128x768xbf16, #tpu.memory_space<vmem>>, vector<128x64xbf16>
    %cst = arith.constant 1.250000e-01 : bf16
    %12 = vector.broadcast %cst : bf16 to vector<128x64xbf16>
    %13 = arith.mulf %11, %12 : vector<128x64xbf16>
    %c0_1 = arith.constant 0 : index
    %c256 = arith.constant 256 : index
    %14 = vector.load %arg7[%c0_1, %c256] : memref<128x768xbf16, #tpu.memory_space<vmem>>, vector<128x64xbf16>
    %c0_2 = arith.constant 0 : index
    %c512 = arith.constant 512 : index
    %15 = vector.load %arg7[%c0_2, %c512] : memref<128x768xbf16, #tpu.memory_space<vmem>>, vector<128x64xbf16>
    %cst_3 = arith.constant dense<0.000000e+00> : vector<128x128xf32>
    %16 = tpu.matmul %13, %14, %cst_3 {dimension_numbers = #tpu.dot_dimension_numbers<[1], [1], [0], [0], [0, 0, 1, 0], [], []>} : vector<128x64xbf16>, vector<128x64xbf16>, vector<128x128xf32> -> vector<128x128xf32>
    %cst_4 = arith.constant 0xFF800000 : f32
    %17 = vector.broadcast %cst_4 : f32 to vector<128x128xf32>
    %18 = arith.select %9, %16, %17 : vector<128x128xi1>, vector<128x128xf32>
    %cst_5 = arith.constant dense<0xFF800000> : vector<128xf32>
    %19 = vector.multi_reduction <maximumf>, %18, %cst_5 [1] : vector<128x128xf32> to vector<128xf32>
    %20 = vector.shape_cast %19 : vector<128xf32> to vector<128x1xf32>
    %21 = vector.broadcast %20 : vector<128x1xf32> to vector<128x128xf32>
    %22 = arith.subf %18, %21 : vector<128x128xf32>
    %23 = math.exp %22 : vector<128x128xf32>
    %cst_6 = arith.constant dense<0.000000e+00> : vector<128xf32>
    %24 = vector.multi_reduction <add>, %23, %cst_6 [1] : vector<128x128xf32> to vector<128xf32>
    %25 = vector.shape_cast %24 : vector<128xf32> to vector<128x1xf32>
    %26 = tpu.reciprocal %25 {approx = true} : vector<128x1xf32> -> vector<128x1xf32>
    %27 = vector.broadcast %26 : vector<128x1xf32> to vector<128x128xf32>
    %28 = arith.mulf %23, %27 : vector<128x128xf32>
    %29 = arith.truncf %28 : vector<128x128xf32> to vector<128x128xbf16>
    %cst_7 = arith.constant dense<0.000000e+00> : vector<128x64xf32>
    %30 = tpu.matmul %29, %15, %cst_7 {dimension_numbers = #tpu.dot_dimension_numbers<[1], [0], [0], [1], [0, 0, 1, 1], [], []>} : vector<128x128xbf16>, vector<128x64xbf16>, vector<128x64xf32> -> vector<128x64xf32>
    %31 = arith.truncf %30 : vector<128x64xf32> to vector<128x64xbf16>
    %c0_8 = arith.constant 0 : index
    %c0_9 = arith.constant 0 : index
    %32 = vector.load %arg8[%c0_8, %c0_9] : memref<128x256xbf16, #tpu.memory_space<vmem>>, vector<128x64xbf16>
    tpu.vector_store %arg8[%c0_8, %c0_9], %31 {strides = array<i32>} : memref<128x256xbf16, #tpu.memory_space<vmem>>, vector<128x64xbf16>,
    %33 = arith.index_cast %4 : i32 to index
    %c64 = arith.constant 64 : index
    %34 = vector.load %arg7[%33, %c64] : memref<128x768xbf16, #tpu.memory_space<vmem>>, vector<128x64xbf16>
    %cst_10 = arith.constant 1.250000e-01 : bf16
    %35 = vector.broadcast %cst_10 : bf16 to vector<128x64xbf16>
    %36 = arith.mulf %34, %35 : vector<128x64xbf16>
    %c0_11 = arith.constant 0 : index
    %c320 = arith.constant 320 : index
    %37 = vector.load %arg7[%c0_11, %c320] : memref<128x768xbf16, #tpu.memory_space<vmem>>, vector<128x64xbf16>
    %c0_12 = arith.constant 0 : index
    %c576 = arith.constant 576 : index
    %38 = vector.load %arg7[%c0_12, %c576] : memref<128x768xbf16, #tpu.memory_space<vmem>>, vector<128x64xbf16>
    %cst_13 = arith.constant dense<0.000000e+00> : vector<128x128xf32>
    %39 = tpu.matmul %36, %37, %cst_13 {dimension_numbers = #tpu.dot_dimension_numbers<[1], [1], [0], [0], [0, 0, 1, 0], [], []>} : vector<128x64xbf16>, vector<128x64xbf16>, vector<128x128xf32> -> vector<128x128xf32>
    %cst_14 = arith.constant 0xFF800000 : f32
    %40 = vector.broadcast %cst_14 : f32 to vector<128x128xf32>
    %41 = arith.select %9, %39, %40 : vector<128x128xi1>, vector<128x128xf32>
    %cst_15 = arith.constant dense<0xFF800000> : vector<128xf32>
    %42 = vector.multi_reduction <maximumf>, %41, %cst_15 [1] : vector<128x128xf32> to vector<128xf32>
    %43 = vector.shape_cast %42 : vector<128xf32> to vector<128x1xf32>
    %44 = vector.broadcast %43 : vector<128x1xf32> to vector<128x128xf32>
    %45 = arith.subf %41, %44 : vector<128x128xf32>
    %46 = math.exp %45 : vector<128x128xf32>
    %cst_16 = arith.constant dense<0.000000e+00> : vector<128xf32>
    %47 = vector.multi_reduction <add>, %46, %cst_16 [1] : vector<128x128xf32> to vector<128xf32>
    %48 = vector.shape_cast %47 : vector<128xf32> to vector<128x1xf32>
    %49 = tpu.reciprocal %48 {approx = true} : vector<128x1xf32> -> vector<128x1xf32>
    %50 = vector.broadcast %49 : vector<128x1xf32> to vector<128x128xf32>
    %51 = arith.mulf %46, %50 : vector<128x128xf32>
    %52 = arith.truncf %51 : vector<128x128xf32> to vector<128x128xbf16>
    %cst_17 = arith.constant dense<0.000000e+00> : vector<128x64xf32>
    %53 = tpu.matmul %52, %38, %cst_17 {dimension_numbers = #tpu.dot_dimension_numbers<[1], [0], [0], [1], [0, 0, 1, 1], [], []>} : vector<128x128xbf16>, vector<128x64xbf16>, vector<128x64xf32> -> vector<128x64xf32>
    %54 = arith.truncf %53 : vector<128x64xf32> to vector<128x64xbf16>
    %c0_18 = arith.constant 0 : index
    %c64_19 = arith.constant 64 : index
    %55 = vector.load %arg8[%c0_18, %c64_19] : memref<128x256xbf16, #tpu.memory_space<vmem>>, vector<128x64xbf16>
    tpu.vector_store %arg8[%c0_18, %c64_19], %54 {strides = array<i32>} : memref<128x256xbf16, #tpu.memory_space<vmem>>, vector<128x64xbf16>,
    %56 = arith.index_cast %4 : i32 to index
    %c128 = arith.constant 128 : index
    %57 = vector.load %arg7[%56, %c128] : memref<128x768xbf16, #tpu.memory_space<vmem>>, vector<128x64xbf16>
    %cst_20 = arith.constant 1.250000e-01 : bf16
    %58 = vector.broadcast %cst_20 : bf16 to vector<128x64xbf16>
    %59 = arith.mulf %57, %58 : vector<128x64xbf16>
    %c0_21 = arith.constant 0 : index
    %c384 = arith.constant 384 : index
    %60 = vector.load %arg7[%c0_21, %c384] : memref<128x768xbf16, #tpu.memory_space<vmem>>, vector<128x64xbf16>
    %c0_22 = arith.constant 0 : index
    %c640 = arith.constant 640 : index
    %61 = vector.load %arg7[%c0_22, %c640] : memref<128x768xbf16, #tpu.memory_space<vmem>>, vector<128x64xbf16>
    %cst_23 = arith.constant dense<0.000000e+00> : vector<128x128xf32>
    %62 = tpu.matmul %59, %60, %cst_23 {dimension_numbers = #tpu.dot_dimension_numbers<[1], [1], [0], [0], [0, 0, 1, 0], [], []>} : vector<128x64xbf16>, vector<128x64xbf16>, vector<128x128xf32> -> vector<128x128xf32>
    %cst_24 = arith.constant 0xFF800000 : f32
    %63 = vector.broadcast %cst_24 : f32 to vector<128x128xf32>
    %64 = arith.select %9, %62, %63 : vector<128x128xi1>, vector<128x128xf32>
    %cst_25 = arith.constant dense<0xFF800000> : vector<128xf32>
    %65 = vector.multi_reduction <maximumf>, %64, %cst_25 [1] : vector<128x128xf32> to vector<128xf32>
    %66 = vector.shape_cast %65 : vector<128xf32> to vector<128x1xf32>
    %67 = vector.broadcast %66 : vector<128x1xf32> to vector<128x128xf32>
    %68 = arith.subf %64, %67 : vector<128x128xf32>
    %69 = math.exp %68 : vector<128x128xf32>
    %cst_26 = arith.constant dense<0.000000e+00> : vector<128xf32>
    %70 = vector.multi_reduction <add>, %69, %cst_26 [1] : vector<128x128xf32> to vector<128xf32>
    %71 = vector.shape_cast %70 : vector<128xf32> to vector<128x1xf32>
    %72 = tpu.reciprocal %71 {approx = true} : vector<128x1xf32> -> vector<128x1xf32>
    %73 = vector.broadcast %72 : vector<128x1xf32> to vector<128x128xf32>
    %74 = arith.mulf %69, %73 : vector<128x128xf32>
    %75 = arith.truncf %74 : vector<128x128xf32> to vector<128x128xbf16>
    %cst_27 = arith.constant dense<0.000000e+00> : vector<128x64xf32>
    %76 = tpu.matmul %75, %61, %cst_27 {dimension_numbers = #tpu.dot_dimension_numbers<[1], [0], [0], [1], [0, 0, 1, 1], [], []>} : vector<128x128xbf16>, vector<128x64xbf16>, vector<128x64xf32> -> vector<128x64xf32>
    %77 = arith.truncf %76 : vector<128x64xf32> to vector<128x64xbf16>
    %c0_28 = arith.constant 0 : index
    %c128_29 = arith.constant 128 : index
    %78 = vector.load %arg8[%c0_28, %c128_29] : memref<128x256xbf16, #tpu.memory_space<vmem>>, vector<128x64xbf16>
    tpu.vector_store %arg8[%c0_28, %c128_29], %77 {strides = array<i32>} : memref<128x256xbf16, #tpu.memory_space<vmem>>, vector<128x64xbf16>,
    %79 = arith.index_cast %4 : i32 to index
    %c192 = arith.constant 192 : index
    %80 = vector.load %arg7[%79, %c192] : memref<128x768xbf16, #tpu.memory_space<vmem>>, vector<128x64xbf16>
    %cst_30 = arith.constant 1.250000e-01 : bf16
    %81 = vector.broadcast %cst_30 : bf16 to vector<128x64xbf16>
    %82 = arith.mulf %80, %81 : vector<128x64xbf16>
    %c0_31 = arith.constant 0 : index
    %c448 = arith.constant 448 : index
    %83 = vector.load %arg7[%c0_31, %c448] : memref<128x768xbf16, #tpu.memory_space<vmem>>, vector<128x64xbf16>
    %c0_32 = arith.constant 0 : index
    %c704 = arith.constant 704 : index
    %84 = vector.load %arg7[%c0_32, %c704] : memref<128x768xbf16, #tpu.memory_space<vmem>>, vector<128x64xbf16>
    %cst_33 = arith.constant dense<0.000000e+00> : vector<128x128xf32>
    %85 = tpu.matmul %82, %83, %cst_33 {dimension_numbers = #tpu.dot_dimension_numbers<[1], [1], [0], [0], [0, 0, 1, 0], [], []>} : vector<128x64xbf16>, vector<128x64xbf16>, vector<128x128xf32> -> vector<128x128xf32>
    %cst_34 = arith.constant 0xFF800000 : f32
    %86 = vector.broadcast %cst_34 : f32 to vector<128x128xf32>
    %87 = arith.select %9, %85, %86 : vector<128x128xi1>, vector<128x128xf32>
    %cst_35 = arith.constant dense<0xFF800000> : vector<128xf32>
    %88 = vector.multi_reduction <maximumf>, %87, %cst_35 [1] : vector<128x128xf32> to vector<128xf32>
    %89 = vector.shape_cast %88 : vector<128xf32> to vector<128x1xf32>
    %90 = vector.broadcast %89 : vector<128x1xf32> to vector<128x128xf32>
    %91 = arith.subf %87, %90 : vector<128x128xf32>
    %92 = math.exp %91 : vector<128x128xf32>
    %cst_36 = arith.constant dense<0.000000e+00> : vector<128xf32>
    %93 = vector.multi_reduction <add>, %92, %cst_36 [1] : vector<128x128xf32> to vector<128xf32>
    %94 = vector.shape_cast %93 : vector<128xf32> to vector<128x1xf32>
    %95 = tpu.reciprocal %94 {approx = true} : vector<128x1xf32> -> vector<128x1xf32>
    %96 = vector.broadcast %95 : vector<128x1xf32> to vector<128x128xf32>
    %97 = arith.mulf %92, %96 : vector<128x128xf32>
    %98 = arith.truncf %97 : vector<128x128xf32> to vector<128x128xbf16>
    %cst_37 = arith.constant dense<0.000000e+00> : vector<128x64xf32>
    %99 = tpu.matmul %98, %84, %cst_37 {dimension_numbers = #tpu.dot_dimension_numbers<[1], [0], [0], [1], [0, 0, 1, 1], [], []>} : vector<128x128xbf16>, vector<128x64xbf16>, vector<128x64xf32> -> vector<128x64xf32>
    %100 = arith.truncf %99 : vector<128x64xf32> to vector<128x64xbf16>
    %c0_38 = arith.constant 0 : index
    %c192_39 = arith.constant 192 : index
    %101 = vector.load %arg8[%c0_38, %c192_39] : memref<128x256xbf16, #tpu.memory_space<vmem>>, vector<128x64xbf16>
    tpu.vector_store %arg8[%c0_38, %c192_39], %100 {strides = array<i32>} : memref<128x256xbf16, #tpu.memory_space<vmem>>, vector<128x64xbf16>,
    %c0_40 = arith.constant 0 : index
    %c0_41 = arith.constant 0 : index
    %102 = vector.load %arg8[%c0_40, %c0_41] : memref<128x256xbf16, #tpu.memory_space<vmem>>, vector<128x256xbf16>
    %c0_42 = arith.constant 0 : index
    %c0_43 = arith.constant 0 : index
    %103 = vector.load %arg4[%c0_42, %c0_43] : memref<256x256xbf16, #tpu.memory_space<vmem>>, vector<256x256xbf16>
    %cst_44 = arith.constant dense<0.000000e+00> : vector<128x256xf32>
    %104 = tpu.matmul %102, %103, %cst_44 {dimension_numbers = #tpu.dot_dimension_numbers<[1], [0], [0], [1], [0, 0, 1, 1], [], []>} : vector<128x256xbf16>, vector<256x256xbf16>, vector<128x256xf32> -> vector<128x256xf32>
    %c0_45 = arith.constant 0 : index
    %c0_46 = arith.constant 0 : index
    %105 = vector.load %arg5[%c0_45, %c0_46] : memref<1x256xf32, #tpu.memory_space<vmem>>, vector<1x256xf32>
    %106 = vector.broadcast %105 : vector<1x256xf32> to vector<128x256xf32>
    %107 = arith.addf %104, %106 : vector<128x256xf32>
    %c0_47 = arith.constant 0 : index
    %c0_48 = arith.constant 0 : index
    %c0_49 = arith.constant 0 : index
    %108 = vector.load %arg6[%c0_47, %c0_48, %c0_49] : memref<1x128x256xf32, #tpu.memory_space<vmem>>, vector<1x128x256xf32>
    %109 = vector.shape_cast %108 : vector<1x128x256xf32> to vector<128x256xf32>
    %110 = vector.shape_cast %107 : vector<128x256xf32> to vector<1x128x256xf32>
    tpu.vector_store %arg6[%c0_47, %c0_48, %c0_49], %110 {strides = array<i32>} : memref<1x128x256xf32, #tpu.memory_space<vmem>>, vector<1x128x256xf32>,
    return
  }
  func.func @transform_0(%arg0: i32, %arg1: i32) -> (i32, i32, i32) {
    %c0_i32 = arith.constant 0 : i32
    %c0_i32_0 = arith.constant 0 : i32
    %c0_i32_1 = arith.constant 0 : i32
    return %arg0, %c0_i32, %c0_i32_0 : i32, i32, i32
  }
  func.func @transform_1(%arg0: i32, %arg1: i32) -> (i32, i32) {
    %c0_i32 = arith.constant 0 : i32
    %c0_i32_0 = arith.constant 0 : i32
    %c0_i32_1 = arith.constant 0 : i32
    return %c0_i32, %c0_i32_0 : i32, i32
  }
  func.func @transform_2(%arg0: i32, %arg1: i32) -> (i32, i32) {
    %c0_i32 = arith.constant 0 : i32
    %c0_i32_0 = arith.constant 0 : i32
    %c0_i32_1 = arith.constant 0 : i32
    return %c0_i32, %c0_i32_0 : i32, i32
  }
  func.func @transform_3(%arg0: i32, %arg1: i32) -> (i32, i32) {
    %c0_i32 = arith.constant 0 : i32
    %c0_i32_0 = arith.constant 0 : i32
    %c0_i32_1 = arith.constant 0 : i32
    return %c0_i32, %c0_i32_0 : i32, i32
  }
  func.func @transform_4(%arg0: i32, %arg1: i32) -> (i32, i32, i32) {
    %c0_i32 = arith.constant 0 : i32
    %c0_i32_0 = arith.constant 0 : i32
    return %arg0, %arg1, %c0_i32 : i32, i32, i32
  }
}

</mosaic_0001>

<bundles_post_ra>
// kernel: tpu_custom_call.1
= control target key start
LH: loop header
LB: loop body
LE: loop exit
PB: predicated region body
PF: predicated region fallthrough
CT: control target
= control target key end

     0   :  { %9 = vsyncpa [#allocation5], 0  ;;  %s7130_s0 = inlined_call_operand.hbm [shape: bf16[2,128,256], index: 0, kind: input, shape index: {}]   ;;  %s7131_s1 = inlined_call_operand.hbm [shape: bf16[256,768], index: 1, kind: input, shape index: {}]   ;;  %s7132_s2 = inlined_call_operand.hbm [shape: bf16[256,256], index: 2, kind: input, shape index: {}]   ;;  %s7133_s3 = inlined_call_operand.vmem [shape: f32[1,256], index: 3, kind: input, shape index: {}]   ;;  %s7134_s4 = inlined_call_operand.hbm [shape: f32[2,128,256], index: 4, kind: output, shape index: {}]  }
   0x1   :  { %11 = vsyncpa [#allocation5 + $0x1], 0 }
   0x2   :  { %12 = vsyncpa [#allocation8], 0 }
   0x3   :  { %13 = vsyncpa [#allocation6], 0 }
   0x4   :  { %15 = vsyncpa [#allocation6 + $0x1], 0  ;;  %s5361_s15 = smov 0   ;;  %s5363_s16 = smov 0  }
   0x5   :  { %s5365_s17 = smov 0   ;;  %s5367_s18 = smov 0  }
   0x6   :  { %s5369_s19 = smov 0   ;;  %s5371_s20 = smov 0  }
   0x7 LB: > { %s3976_s21 = sadd.s32 4294967295, %s5323_s20   ;;  %s3977_s22 = sadd.s32 4294967294, %s5323_s20   ;;  %s5323_s20 = sphi %s5371_s20, %s21_s20   ;;  %s5319_s19 = sphi %s5369_s19, %s7369_s19   ;;  %s5315_s18 = sphi %s5367_s18, %s7368_s18   ;;  %s5311_s17 = sphi %s5365_s17, %s7367_s17   ;;  %s5307_s16 = sphi %s5363_s16, %s7366_s16   ;;  %s5303_s15 = sphi %s5361_s15, %s7365_s15  }
   0x8   : > { %p53_p0 = scmp.ne.s32.totalorder %s5307_s16, %s5303_s15  ;;  %p5395_p1 = scmp.eq.s32.totalorder %s3976_s21, 0 }
   0x9   : > { %p5399_p2 = scmp.eq.s32.totalorder %s3976_s21, 1  ;;  %p148_p3 = scmp.eq.s32.totalorder %s3977_s22, 1 }
   0xa   : > { %s7198_s23 = scalar_select %p5395_p1, 1, 0 }
   0xb   : > { %p5405_p4 = por %p5395_p1, %p53_p0  ;;  %p3978_p5 = scmp.ge.s32.totalorder %s5323_s20, 1 }
   0xc   : > { %p5410_p6 = por %p148_p3, %p53_p0  ;;  %p155_p7 = scmp.lt.s32.totalorder %s5323_s20, 3 }
   0xd   : > { %s7200_s25 = scalar_select %p5405_p4, 1, 0 }
   0xe   : > { %s7201_s26 = scalar_select %p5410_p6, 1, 0 }
   0xf   : > { %p5415_p8 = pnand %p3978_p5, %p155_p7  ;;  %s5325_s28 = smov [#allocation7]  }
  0x10   : > { %s167_s29 = sshll.u32 %s5325_s28, 4  ;;  %s5326_s5 = smov [#allocation9]   ;;  %s5419_s29 = int_to_ptr.vmem [resolvable:$true] %s167_s29 }
  0x11   : > { %p4601_p9 = pneg %p5415_p8  ;;  %s180_s6 = sshll.u32 %s5326_s5, 4  ;;  %s5430_s6 = int_to_ptr.vmem [resolvable:$true] %s180_s6 }
  0x12   : > { %s5151_s9 = scalar_lea.hbm %s7131_s1, 12288 }
  0x13   : > { %p5426_p11 = pnand %p4601_p9, %p5395_p1  ;;  %p5152_p12 = scmp.ne.s32.totalorder %s7131_s1, %s5151_s9 }
  0x14   : > { %p5158_p5 = scmp.lt.u32.totalorder %s5151_s9, %s7131_s1 }
  0x15   : > { %p5153_p13 = pneg %p5426_p11 }
  0x17   : > { %p5154_p0 = pnand %p5153_p13, %p5152_p12 }
  0x19   : > { %p5155_p3 = pneg %p5154_p0 }
  0x1b   : > { %p5160_p7 = pnand %p5158_p5, %p5155_p3 }
  0x1d   : > { %5163 = shalt.err (!%p5160_p7)
}
  0x1e   : > { %s5164_s14 = scalar_lea.vmem %s5419_s29, 12288  ;;  %p5172_p1 = scmp.lt.s32.totalorder %s5419_s29, %s5419_s29 }
  0x1f   : > { %p5165_p9 = scmp.ne.s32.totalorder %s5419_s29, %s5164_s14  ;;  %p5173_p12 = scmp.lt.s32.totalorder %s5164_s14, %s5164_s14 }
  0x21   : > { %p5167_p10 = pnand %p5165_p9, %p5153_p13  ;;  %p5174_p0 = por %p5173_p12, %p5172_p1 }
  0x23   : > { %p5168_p6 = pneg %p5167_p10 }
  0x25   : > { %p5175_p4 = pnand %p5174_p0, %p5168_p6 }
  0x27   : > { %5178 = shalt.err (!%p5175_p4)
}
  0x28   : > { %s5327_s21 = smov 384   ;;  %s5328_s22 = smov 24  }
  0x29   : > { %4604 = dma.hbm_to_vmem [thread:$0]  (!%p5426_p11), %s7131_s1, 12288, %s5419_s29, [#allocation8], %s5327_s21, %s5327_s21, %s5328_s22  }
  0x2a   : > { %s5179_s9 = scalar_lea.hbm %s7132_s2, 4096 }
  0x2b   : > { %p5180_p1 = scmp.ne.s32.totalorder %s7132_s2, %s5179_s9  ;;  %p5186_p10 = scmp.lt.u32.totalorder %s5179_s9, %s7132_s2 }
  0x2d   : > { %p5182_p4 = pnand %p5180_p1, %p5153_p13 }
  0x2f   : > { %p5183_p6 = pneg %p5182_p4 }
  0x31   : > { %p5188_p3 = pnand %p5186_p10, %p5183_p6 }
  0x33   : > { %5191 = shalt.err (!%p5188_p3)
}
  0x34   : > { %s5192_s29 = scalar_lea.vmem %s5430_s6, 4096  ;;  %p5200_p12 = scmp.lt.s32.totalorder %s5430_s6, %s5430_s6 }
  0x35   : > { %p5193_p5 = scmp.ne.s32.totalorder %s5430_s6, %s5192_s29  ;;  %p5201_p0 = scmp.lt.s32.totalorder %s5192_s29, %s5192_s29 }
  0x37   : > { %p5195_p7 = pnand %p5193_p5, %p5153_p13  ;;  %p5202_p1 = por %p5201_p0, %p5200_p12 }
  0x39   : > { %p5196_p9 = pneg %p5195_p7 }
  0x3b   : > { %p5203_p4 = pnand %p5202_p1, %p5196_p9 }
  0x3d   : > { %5206 = shalt.err (!%p5203_p4)
}
  0x3e   : > { %s5329_s14 = smov 128   ;;  %s5330_s21 = smov 8  }
  0x3f   : > { %4607 = dma.hbm_to_vmem [thread:$0]  (!%p5426_p11), %s7132_s2, 4096, %s5430_s6, [#allocation8], %s5329_s14, %s5329_s14, %s5330_s21  }
  0x40   : > { %s33_s5 = sadd.s32 1, %s5319_s19  ;;  %s40_s7 = sadd.s32 1, %s5311_s17 }
  0x41   : > { %p35_p13 = scmp.ge.s32.totalorder %s33_s5, 2  ;;  %p47_p6 = scmp.ne.s32.totalorder %s5311_s17, %s5307_s16 }
  0x42   : > { %p48_p10 = scmp.eq.s32.totalorder %s5323_s20, 0  ;;  %p4618_p3 = scmp.lt.s32.totalorder %s5323_s20, 2 }
  0x43   : > { %s7371_s5 = smov (%p35_p13, %s33_s5), 0  ;;  %p5497_p7 = por %p5399_p2, %p47_p6 }
  0x44   : > { %p49_p5 = por %p48_p10, %p47_p6  ;;  %s37_s8 = ssub.s32 %s5319_s19, %s7371_s5 }
  0x45   : > { %s7204_s30 = scalar_select %p5497_p7, 1, 0 }
  0x46   : > { %s197_s9 = sand.u32 1, %s5311_s17   ;;  %p38_p9 = scmp.eq.s32.totalorder %s37_s8, 0 }
  0x47   : > { %s3982_s6 = sshll.u32 %s197_s9, 7  ;;  %s4171_s10 = sshll.u32 %s5319_s19, 11 }
  0x48   : > { %s5506_s11 = scalar_select %p38_p9, %s5311_s17, %s40_s7  }
  0x49   : > { %s5511_s29 = scalar_lea.hbm %s7130_s0, %s4171_s10  ;;  %s201_s24 = scalar_lea.vmem [#allocation4], %s3982_s6 }
  0x4a   : > { %s208_s22 = sshll.u32 %s201_s24, 4  ;;  %p5515_p2 = pnand %p4618_p3, %p49_p5  ;;  %s5519_s22 = int_to_ptr.vmem [resolvable:$true] %s208_s22 }
  0x4b   : > { %s5521_s7 = scalar_lea.sflag [#allocation5], %s197_s9  ;;  %s5207_s8 = scalar_lea.hbm %s5511_s29, 2048 }
  0x4c   : > { %p5208_p11 = scmp.ne.s32.totalorder %s5511_s29, %s5207_s8  ;;  %p5209_p12 = pneg %p5515_p2 }
  0x4d   : > { %s5212_s12 = scalar_lea.hbm %s7130_s0, 4096  ;;  %p5213_p4 = scmp.lt.u32.totalorder %s5511_s29, %s7130_s0 }
  0x4e   : > { %p5210_p0 = pnand %p5209_p12, %p5208_p11  ;;  %p5214_p13 = scmp.lt.u32.totalorder %s5212_s12, %s5207_s8 }
  0x4f   : > { %p5216_p10 = scmp.lt.u32.totalorder %s5207_s8, %s5511_s29 }
  0x50   : > { %p5211_p1 = pneg %p5210_p0  ;;  %p5215_p6 = por %p5214_p13, %p5213_p4 }
  0x52   : > { %p5217_p3 = por %p5216_p10, %p5215_p6 }
  0x54   : > { %p5218_p5 = pnand %p5217_p3, %p5211_p1 }
  0x56   : > { %5221 = shalt.err (!%p5218_p5)
}
  0x57   : > { %s5222_s9 = scalar_lea.vmem %s5519_s22, 2048  ;;  %s5331_s6 = smov [#allocation4]  }
  0x58   : > { %p5223_p9 = scmp.ne.s32.totalorder %s5519_s22, %s5222_s9  ;;  %s5227_s10 = sshll.u32 %s5331_s6, 4  ;;  %s5228_s10 = int_to_ptr.vmem [resolvable:$false] %s5227_s10 }
  0x59   : > { %s5229_s13 = scalar_lea.vmem %s5228_s10, 4096  ;;  %p5230_p7 = scmp.lt.s32.totalorder %s5519_s22, %s5228_s10 }
  0x5a   : > { %p5225_p11 = pnand %p5223_p9, %p5209_p12  ;;  %p5231_p4 = scmp.lt.s32.totalorder %s5229_s13, %s5222_s9 }
  0x5c   : > { %p5226_p0 = pneg %p5225_p11  ;;  %p5232_p13 = por %p5231_p4, %p5230_p7 }
  0x5e   : > { %p5233_p6 = pnand %p5232_p13, %p5226_p0 }
  0x60   : > { %5236 = shalt.err (!%p5233_p6)
}
  0x61   : > { %4611 = dma.hbm_to_vmem [thread:$0]  (!%p5515_p2), %s5511_s29, 2048, %s5519_s22, %s5521_s7, %s5329_s14, %s5329_s14, %s5330_s21  }
  0x62   : > { %220 = sbr.rel (%p5415_p8) target bundleno = 2523 (0x9db), region = 36 }
  0x69   : > { %s5555_s8 = sand.u32 1, %s5307_s16   ;;  %p7206_p7 = scmp.ne.s32.totalorder %s7200_s25, 0 }
  0x6a   : > { %s3986_s12 = sshll.u32 %s5555_s8, 7  ;;  %s223_s24 = scalar_lea.sflag [#allocation5], %s5555_s8 }
  0x6b   : > { %s5559_s9 = scalar_lea.vmem [#allocation4], %s3986_s12 }
  0x6c   : > { %5290 = dma.done.wait (%p7206_p7), %s223_s24, 2048  }
  0x6d   : > { %5292 = vsyncadd (%p7206_p7), %s223_s24, 4294965248  ;;  %p7207_p2 = scmp.ne.s32.totalorder %s7198_s23, 0 }
  0x6f   : > { %5294 = dma.done.wait (%p7207_p2), [#allocation8], 16384  }
  0x70   : > { %5296 = vsyncadd (%p7207_p2), [#allocation8], 4294950912  ;;  %v4679_v0 = vld [vmem:[#allocation7 + $0x4] ss:$24 sps:$4 sm:$0xff]   ;;  %v4681_v1 = vld [vmem:[#allocation7] ss:$24 sps:$4 sm:$0xff]  }
  0x71   : > { %938 = vmatprep.subr.bf16.mxu1 %v4679_v0  ;;  %v4682_v2 = vld [vmem:[#allocation7 + $0x34] ss:$24 sps:$4 sm:$0xff]   ;;  %v4684_v3 = vld [vmem:[#allocation7 + $0x30] ss:$24 sps:$4 sm:$0xff]   ;;  %v4685_v4 = vld [vmem:[#allocation7 + $0x64] ss:$24 sps:$4 sm:$0xff]  }
  0x72   : > { %939 = vmatpush1.bf16.msra.mxu1 %v4681_v1  ;;  %v4687_v5 = vld [vmem:[#allocation7 + $0x60] ss:$24 sps:$4 sm:$0xff]   ;;  %v4688_v6 = vld [vmem:[#allocation7 + $0x94] ss:$24 sps:$4 sm:$0xff]   ;;  %v4690_v7 = vld [vmem:[#allocation7 + $0x90] ss:$24 sps:$4 sm:$0xff]  }
  0x73   : > { %940 = vmatprep.subr.bf16.mxu1 %v4682_v2  ;;  %v4691_v8 = vld [vmem:[#allocation7 + $0xc4] ss:$24 sps:$4 sm:$0xff]   ;;  %v4693_v9 = vld [vmem:[#allocation7 + $0xc0] ss:$24 sps:$4 sm:$0xff]   ;;  %v4694_v10 = vld [vmem:[#allocation7 + $0xf4] ss:$24 sps:$4 sm:$0xff]  }
  0x74   : > { %v4696_v11 = vld [vmem:[#allocation7 + $0xf0] ss:$24 sps:$4 sm:$0xff]   ;;  %v4697_v12 = vld [vmem:[#allocation7 + $0x124] ss:$24 sps:$4 sm:$0xff]   ;;  %v4699_v14 = vld [vmem:[#allocation7 + $0x120] ss:$24 sps:$4 sm:$0xff]  }
  0x75   : > { %v5570_v13 = vld [vmem:[%s5559_s9 + $0x4] ss:$8 sps:$4 sm:$0xff]   ;;  %v4702_v16 = vld [vmem:[#allocation7 + $0x150] ss:$24 sps:$4 sm:$0xff]   ;;  %v4705_v18 = vld [vmem:[#allocation7 + $0x180] ss:$24 sps:$4 sm:$0xff]  }
  0x76   : > { %941 = vmatpush1.bf16.msra.mxu1 %v4684_v3  ;;  %v4700_v15 = vld [vmem:[#allocation7 + $0x154] ss:$24 sps:$4 sm:$0xff]   ;;  %970 = vmatprep.mubr.bf16.mxu1 %v5570_v13  ;;  %v4703_v17 = vld [vmem:[#allocation7 + $0x184] ss:$24 sps:$4 sm:$0xff]   ;;  %v4708_v20 = vld [vmem:[#allocation7 + $0x1b0] ss:$24 sps:$4 sm:$0xff]  }
  0x77   : > { %942 = vmatprep.subr.bf16.mxu1 %v4685_v4  ;;  %1196 = vmatprep.mubr.bf16.mxu0 %v5570_v13  ;;  %v4706_v19 = vld [vmem:[#allocation7 + $0x1b4] ss:$24 sps:$4 sm:$0xff]   ;;  %v4709_v21 = vld [vmem:[#allocation7 + $0x1e4] ss:$24 sps:$4 sm:$0xff]   ;;  %v4711_v22 = vld [vmem:[#allocation7 + $0x1e0] ss:$24 sps:$4 sm:$0xff]  }
  0x78   : > { %v4712_v23 = vld [vmem:[#allocation7 + $0x214] ss:$24 sps:$4 sm:$0xff]   ;;  %v4771_v25 = vld [vmem:[#allocation7 + $0x10] ss:$24 sps:$4 sm:$0xff]   ;;  %v4775_v27 = vld [vmem:[#allocation7 + $0x44] ss:$24 sps:$4 sm:$0xff]  }
  0x79   : > { %v4769_v24 = vld [vmem:[#allocation7 + $0x14] ss:$24 sps:$4 sm:$0xff]   ;;  %v4714_v26 = vld [vmem:[#allocation7 + $0x210] ss:$24 sps:$4 sm:$0xff]   ;;  %v4777_v28 = vld [vmem:[#allocation7 + $0x40] ss:$24 sps:$4 sm:$0xff]  }
  0x7a   : > { %943 = vmatpush1.bf16.msra.mxu1 %v4687_v5  ;;  %1164 = vmatprep.subr.bf16.mxu0 %v4769_v24  ;;  %v4715_v29 = vld [vmem:[#allocation7 + $0x244] ss:$24 sps:$4 sm:$0xff]   ;;  %v4717_v30 = vld [vmem:[#allocation7 + $0x240] ss:$24 sps:$4 sm:$0xff]   ;;  %v4784_v31 = vld [vmem:[#allocation7 + $0x74] ss:$24 sps:$4 sm:$0xff]  }
  0x7b   : > { %944 = vmatprep.subr.bf16.mxu1 %v4688_v6  ;;  %1165 = vmatpush1.bf16.msra.mxu0 %v4771_v25  ;;  %v4786_v32 = vld [vmem:[#allocation7 + $0x70] ss:$24 sps:$4 sm:$0xff]   ;;  %v4718_v33 = vld [vmem:[#allocation7 + $0x274] ss:$24 sps:$4 sm:$0xff]   ;;  %v4790_v34 = vld [vmem:[#allocation7 + $0xa4] ss:$24 sps:$4 sm:$0xff]  }
  0x7c   : > { %1166 = vmatprep.subr.bf16.mxu0 %v4775_v27  ;;  %v4720_v35 = vld [vmem:[#allocation7 + $0x270] ss:$24 sps:$4 sm:$0xff]   ;;  %v4792_v36 = vld [vmem:[#allocation7 + $0xa0] ss:$24 sps:$4 sm:$0xff]   ;;  %v4721_v37 = vld [vmem:[#allocation7 + $0x2a4] ss:$24 sps:$4 sm:$0xff]  }
  0x7d   : > { %v4723_v38 = vld [vmem:[#allocation7 + $0x2a0] ss:$24 sps:$4 sm:$0xff]   ;;  %v4799_v39 = vld [vmem:[#allocation7 + $0xd4] ss:$24 sps:$4 sm:$0xff]   ;;  %v4801_v41 = vld [vmem:[#allocation7 + $0xd0] ss:$24 sps:$4 sm:$0xff]  }
  0x7e   : > { %945 = vmatpush1.bf16.msra.mxu1 %v4690_v7  ;;  %v4724_v40 = vld [vmem:[#allocation7 + $0x2d4] ss:$24 sps:$4 sm:$0xff]   ;;  %v4805_v42 = vld [vmem:[#allocation7 + $0x104] ss:$24 sps:$4 sm:$0xff]   ;;  %v4726_v43 = vld [vmem:[#allocation7 + $0x2d0] ss:$24 sps:$4 sm:$0xff]  }
  0x7f   : > { %946 = vmatprep.subr.bf16.mxu1 %v4691_v8  ;;  %1167 = vmatpush1.bf16.msra.mxu0 %v4777_v28  ;;  %v4732_v44 = vld [vmem:[#allocation7 + $0xc] ss:$24 sps:$4 sm:$0xff]   ;;  %v4807_v45 = vld [vmem:[#allocation7 + $0x100] ss:$24 sps:$4 sm:$0xff]   ;;  %v4735_v49 = vld [vmem:[#allocation7 + $0x3c] ss:$24 sps:$4 sm:$0xff]  }
  0x80   : > { %1168 = vmatprep.subr.bf16.mxu0 %v4784_v31  ;;  %v4814_v46 = vld [vmem:[#allocation7 + $0x134] ss:$24 sps:$4 sm:$0xff]   ;;  %v5575_v47 = vld [vmem:[%s5559_s9] ss:$8 sps:$4 sm:$0xff]   ;;  %v4820_v52 = vld [vmem:[#allocation7 + $0x164] ss:$24 sps:$4 sm:$0xff]  }
  0x81   : > { %v4730_v48 = vld [vmem:[#allocation7 + $0x8] ss:$24 sps:$4 sm:$0xff]   ;;  %v5578_v50 = vld [vmem:[%s5559_s9 + $0x14] ss:$8 sps:$4 sm:$0xff]   ;;  %v4733_v53 = vld [vmem:[#allocation7 + $0x38] ss:$24 sps:$4 sm:$0xff]  }
  0x82   : > { %947 = vmatpush1.bf16.msra.mxu1 %v4693_v9  ;;  %v4816_v51 = vld [vmem:[#allocation7 + $0x130] ss:$24 sps:$4 sm:$0xff]   ;;  %v4741_v54 = vld [vmem:[#allocation7 + $0x6c] ss:$24 sps:$4 sm:$0xff]   ;;  %v4822_v55 = vld [vmem:[#allocation7 + $0x160] ss:$24 sps:$4 sm:$0xff]  }
  0x83   : > { %948 = vmatprep.subr.bf16.mxu1 %v4694_v10  ;;  %1169 = vmatpush1.bf16.msra.mxu0 %v4786_v32  ;;  %v4823_v56 = vld [vmem:[#allocation7 + $0x194] ss:$24 sps:$4 sm:$0xff]   ;;  %v5583_v57 = vld [vmem:[%s5559_s9 + $0x10] ss:$8 sps:$4 sm:$0xff]   ;;  %v4739_v58 = vld [vmem:[#allocation7 + $0x68] ss:$24 sps:$4 sm:$0xff]  }
  0x84   : > { %1170 = vmatprep.subr.bf16.mxu0 %v4790_v34  ;;  %v4744_v59 = vld [vmem:[#allocation7 + $0x9c] ss:$24 sps:$4 sm:$0xff]   ;;  %v5586_v60 = vld [vmem:[%s5559_s9 + $0x24] ss:$8 sps:$4 sm:$0xff]   ;;  %v4825_v61 = vld [vmem:[#allocation7 + $0x190] ss:$24 sps:$4 sm:$0xff]  }
  0x85   : > { %v4742_v62 = vld [vmem:[#allocation7 + $0x98] ss:$24 sps:$4 sm:$0xff]   ;;  %v4826_v63 = vld [vmem:[#allocation7 + $0x1c4] ss:$24 sps:$4 sm:$0xff]   ;;  %v4829_v2 = vld [vmem:[#allocation7 + $0x1f4] ss:$24 sps:$4 sm:$0xff]  }
  0x86   : > { %949 = vmatpush1.bf16.msra.mxu1 %v4696_v11  ;;  %v4750_v0 = vld [vmem:[#allocation7 + $0xcc] ss:$24 sps:$4 sm:$0xff]   ;;  %v4828_v1 = vld [vmem:[#allocation7 + $0x1c0] ss:$24 sps:$4 sm:$0xff]   ;;  %v5594_v5 = vld [vmem:[%s5559_s9 + $0x34] ss:$8 sps:$4 sm:$0xff]  }
  0x87   : > { %950 = vmatprep.subr.bf16.mxu1 %v4697_v12  ;;  %1171 = vmatpush1.bf16.msra.mxu0 %v4792_v36  ;;  %v5591_v3 = vld [vmem:[%s5559_s9 + $0x20] ss:$8 sps:$4 sm:$0xff]   ;;  %v4753_v6 = vld [vmem:[#allocation7 + $0xfc] ss:$24 sps:$4 sm:$0xff]   ;;  %v4751_v9 = vld [vmem:[#allocation7 + $0xf8] ss:$24 sps:$4 sm:$0xff]  }
  0x88   : > { %1172 = vmatprep.subr.bf16.mxu0 %v4799_v39  ;;  %v4748_v4 = vld [vmem:[#allocation7 + $0xc8] ss:$24 sps:$4 sm:$0xff]   ;;  %v4832_v8 = vld [vmem:[#allocation7 + $0x224] ss:$24 sps:$4 sm:$0xff]   ;;  %v4835_v12 = vld [vmem:[#allocation7 + $0x254] ss:$24 sps:$4 sm:$0xff]  }
  0x89   : > { %v4831_v7 = vld [vmem:[#allocation7 + $0x1f0] ss:$24 sps:$4 sm:$0xff]   ;;  %v4759_v10 = vld [vmem:[#allocation7 + $0x12c] ss:$24 sps:$4 sm:$0xff]   ;;  %v4834_v11 = vld [vmem:[#allocation7 + $0x220] ss:$24 sps:$4 sm:$0xff]  }
  0x8a   : > { %951 = vmatpush1.bf16.msra.mxu1 %v4699_v14  ;;  %v5599_v14 = vld [vmem:[%s5559_s9 + $0x30] ss:$8 sps:$4 sm:$0xff]   ;;  %v5607_v24 = vld [vmem:[%s5559_s9 + $0x40] ss:$8 sps:$4 sm:$0xff]   ;;  %v4774_v27 = vld [vmem:[#allocation7 + $0x1bc] ss:$24 sps:$4 sm:$0xff]  }
  0x8b   : > { %952 = vmatprep.subr.bf16.mxu1 %v4700_v15  ;;  %1173 = vmatpush1.bf16.msra.mxu0 %v4801_v41  ;;  %v4757_v15 = vld [vmem:[#allocation7 + $0x128] ss:$24 sps:$4 sm:$0xff]   ;;  %v4783_v31 = vld [vmem:[#allocation7 + $0x1ec] ss:$24 sps:$4 sm:$0xff]   ;;  %v4789_v36 = vld [vmem:[#allocation7 + $0x21c] ss:$24 sps:$4 sm:$0xff]  }
  0x8c   : > { %1174 = vmatprep.subr.bf16.mxu0 %v4805_v42  ;;  %v4766_v25 = vld [vmem:[#allocation7 + $0x188] ss:$24 sps:$4 sm:$0xff]   ;;  %v4808_v41 = vld [vmem:[%s5559_s9 + $0x74] ss:$8 sps:$4 sm:$0xff]   ;;  %vm7140_vm0 = vcmask 523264   ;;  %s5332_s23 = smov 64  }
  0x8d   : > { %v4843_v28 = vld [vmem:[#allocation7 + $0x2b0] ss:$24 sps:$4 sm:$0xff]   ;;  %v4846_v32 = vld [vmem:[#allocation7 + $0x2e0] ss:$24 sps:$4 sm:$0xff]   ;;  %v4804_v42 = vld [vmem:[#allocation7 + $0x27c] ss:$24 sps:$4 sm:$0xff]  }
  0x8e   : > { %953 = vmatpush1.bf16.msra.mxu1 %v4702_v16  ;;  %v5602_v16 = vld [vmem:[%s5559_s9 + $0x44] ss:$8 sps:$4 sm:$0xff]   ;;  %v4781_v34 = vld [vmem:[#allocation7 + $0x1e8] ss:$24 sps:$4 sm:$0xff]   ;;  %s3989_s14 = sshll.u32 %s5555_s8, 8  ;;  %s4172_s29 = sshll.u32 %s5315_s18, 12 }
  0x8f   : > { %954 = vmatprep.subr.bf16.mxu1 %v4703_v17  ;;  %1175 = vmatpush1.bf16.msra.mxu0 %v4807_v45  ;;  %v4762_v17 = vld [vmem:[#allocation7 + $0x15c] ss:$24 sps:$4 sm:$0xff]   ;;  %v4795_v39 = vld [vmem:[%s5559_s9 + $0x60] ss:$8 sps:$4 sm:$0xff]   ;;  %v4810_v45 = vld [vmem:[%s5559_s9 + $0x70] ss:$8 sps:$4 sm:$0xff]   ;;  %s7075_s6 = scalar_lea.hbm %s7134_s4, %s4172_s29 }
  0x90   : > { %1176 = vmatprep.subr.bf16.mxu0 %v4814_v46  ;;  %v4811_v46 = vld [vmem:[#allocation7 + $0x2a8] ss:$24 sps:$4 sm:$0xff]   ;;  %s7010_s21 = scalar_lea.vmem [#allocation10], %s3989_s14  ;;  %s3855_s18 = scalar_lea.sflag [#allocation6], %s5555_s8 }
  0x91   : > { %s3871_s22 = sshll.u32 %s7010_s21, 4  ;;  %p7362_p12 = scmp.ne.s32.totalorder %s7204_s30, 0  ;;  %s7077_s22 = int_to_ptr.vmem [resolvable:$true] %s3871_s22 }
  0x92   : > { %955 = vmatpush1.bf16.msra.mxu1 %v4705_v18  ;;  %v4837_v18 = vld [vmem:[#allocation7 + $0x250] ss:$24 sps:$4 sm:$0xff]   ;;  %s5237_s10 = scalar_lea.vmem %s7077_s22, 4096  ;;  %s5333_s13 = smov [#allocation10]  }
  0x93   : > { %956 = vmatprep.subr.bf16.mxu1 %v4706_v19  ;;  %1177 = vmatpush1.bf16.msra.mxu0 %v4816_v51  ;;  %v4838_v19 = vld [vmem:[#allocation7 + $0x284] ss:$24 sps:$4 sm:$0xff]   ;;  %p5238_p8 = scmp.ne.s32.totalorder %s7077_s22, %s5237_s10  ;;  %s5241_s12 = sshll.u32 %s5333_s13, 4  ;;  %s5242_s12 = int_to_ptr.vmem [resolvable:$false] %s5241_s12 }
  0x94   : > { %1178 = vmatprep.subr.bf16.mxu0 %v4820_v52  ;;  %s5243_s24 = scalar_lea.vmem %s5242_s12, 8192  ;;  %p5244_p3 = scmp.lt.s32.totalorder %s7077_s22, %s5242_s12 }
  0x95   : > { %p5239_p1 = pnand %p5238_p8, %p7362_p12  ;;  %p5245_p5 = scmp.lt.s32.totalorder %s5243_s24, %s5237_s10 }
  0x96   : > { %957 = vmatpush1.bf16.msra.mxu1 %v4708_v20  ;;  %v4760_v20 = vld [vmem:[#allocation7 + $0x158] ss:$24 sps:$4 sm:$0xff]  }
  0x97   : > { %958 = vmatprep.subr.bf16.mxu1 %v4709_v21  ;;  %1179 = vmatpush1.bf16.msra.mxu0 %v4822_v55  ;;  %v4768_v21 = vld [vmem:[#allocation7 + $0x18c] ss:$24 sps:$4 sm:$0xff]   ;;  %p5240_p10 = pneg %p5239_p1  ;;  %p5246_p9 = por %p5245_p5, %p5244_p3 }
  0x98   : > { %1180 = vmatprep.subr.bf16.mxu0 %v4823_v56 }
  0x99   : > { %p5247_p11 = pnand %p5246_p9, %p5240_p10 }
  0x9a   : > { %959 = vmatpush1.bf16.msra.mxu1 %v4711_v22  ;;  %v4840_v22 = vld [vmem:[#allocation7 + $0x280] ss:$24 sps:$4 sm:$0xff]  }
  0x9b   : > { %960 = vmatprep.subr.bf16.mxu1 %v4712_v23  ;;  %1181 = vmatpush1.bf16.msra.mxu0 %v4825_v61  ;;  %v4841_v23 = vld [vmem:[#allocation7 + $0x2b4] ss:$24 sps:$4 sm:$0xff]  }
  0x9c   : > { %1182 = vmatprep.subr.bf16.mxu0 %v4826_v63 }
  0x9e   : > { %961 = vmatpush1.bf16.msra.mxu1 %v4714_v26  ;;  %v5610_v26 = vld [vmem:[%s5559_s9 + $0x54] ss:$8 sps:$4 sm:$0xff]  }
  0x9f   : > { %962 = vmatprep.subr.bf16.mxu1 %v4715_v29  ;;  %1183 = vmatpush1.bf16.msra.mxu0 %v4828_v1  ;;  %v4844_v29 = vld [vmem:[#allocation7 + $0x2e4] ss:$24 sps:$4 sm:$0xff]  }
  0xa0   : > { %1184 = vmatprep.subr.bf16.mxu0 %v4829_v2 }
  0xa2   : > { %963 = vmatpush1.bf16.msra.mxu1 %v4717_v30  ;;  %v4772_v30 = vld [vmem:[#allocation7 + $0x1b8] ss:$24 sps:$4 sm:$0xff]  }
  0xa3   : > { %964 = vmatprep.subr.bf16.mxu1 %v4718_v33  ;;  %1185 = vmatpush1.bf16.msra.mxu0 %v4831_v7  ;;  %v4780_v33 = vld [vmem:[%s5559_s9 + $0x50] ss:$8 sps:$4 sm:$0xff]  }
  0xa4   : > { %1186 = vmatprep.subr.bf16.mxu0 %v4832_v8 }
  0xa6   : > { %965 = vmatpush1.bf16.msra.mxu1 %v4720_v35  ;;  %v4793_v35 = vld [vmem:[%s5559_s9 + $0x64] ss:$8 sps:$4 sm:$0xff]  }
  0xa7   : > { %966 = vmatprep.subr.bf16.mxu1 %v4721_v37  ;;  %1187 = vmatpush1.bf16.msra.mxu0 %v4834_v11  ;;  %v4787_v37 = vld [vmem:[#allocation7 + $0x218] ss:$24 sps:$4 sm:$0xff]  }
  0xa8   : > { %1188 = vmatprep.subr.bf16.mxu0 %v4835_v12 }
  0xaa   : > { %967 = vmatpush1.bf16.msra.mxu1 %v4723_v38  ;;  %v4798_v38 = vld [vmem:[#allocation7 + $0x24c] ss:$24 sps:$4 sm:$0xff]  }
  0xab   : > { %968 = vmatprep.subr.bf16.mxu1 %v4724_v40  ;;  %1189 = vmatpush1.bf16.msra.mxu0 %v4837_v18  ;;  %v4796_v40 = vld [vmem:[#allocation7 + $0x248] ss:$24 sps:$4 sm:$0xff]  }
  0xac   : > { %1190 = vmatprep.subr.bf16.mxu0 %v4838_v19 }
  0xae   : > { %969 = vmatpush1.bf16.msra.mxu1 %v4726_v43  ;;  %v4802_v43 = vld [vmem:[#allocation7 + $0x278] ss:$24 sps:$4 sm:$0xff]  }
  0xaf   : > { %1051 = vmatprep.subr.bf16.mxu1 %v4732_v44  ;;  %1191 = vmatpush1.bf16.msra.mxu0 %v4840_v22  ;;  %v4813_v44 = vld [vmem:[#allocation7 + $0x2ac] ss:$24 sps:$4 sm:$0xff]  }
  0xb0   : > { %1192 = vmatprep.subr.bf16.mxu0 %v4841_v23 }
  0xb1   : > { %971 = vmatmul.mubr.bf16.vlgmr.msra.gmra.mrb[0].mxu1 %v5575_v47 }
  0xb2   : > { %1052 = vmatpush1.bf16.msra.mxu1 %v4730_v48  ;;  %980 = vmatprep.mubr.bf16.mxu1 %v5578_v50  ;;  %v4819_v48 = vld [vmem:[#allocation7 + $0x2dc] ss:$24 sps:$4 sm:$0xff]  }
  0xb3   : > { %1053 = vmatprep.subr.bf16.mxu1 %v4735_v49  ;;  %1193 = vmatpush1.bf16.msra.mxu0 %v4843_v28  ;;  %v4817_v49 = vld [vmem:[#allocation7 + $0x2d8] ss:$24 sps:$4 sm:$0xff]  }
  0xb4   : > { %1194 = vmatprep.subr.bf16.mxu0 %v4844_v29 }
  0xb6   : > { %1054 = vmatpush1.bf16.msra.mxu1 %v4733_v53 }
  0xb7   : > { %1055 = vmatprep.subr.bf16.mxu1 %v4741_v54  ;;  %1195 = vmatpush1.bf16.msra.mxu0 %v4846_v32 }
  0xb9   : > { %981 = vmatmul.mubr.bf16.gmra.mrb[4].mxu1 %v5583_v57 }
  0xba   : > { %1056 = vmatpush1.bf16.msra.mxu1 %v4739_v58  ;;  %990 = vmatprep.mubr.bf16.mxu1 %v5586_v60 }
  0xbb   : > { %1057 = vmatprep.subr.bf16.mxu1 %v4744_v59  ;;  %1197 = vmatmul.mubr.bf16.vlgmr.msra.gmra.mrb[0].mxu0 %v5575_v47 }
  0xbc   : > { %1206 = vmatprep.mubr.bf16.mxu0 %v5578_v50 }
  0xbe   : > { %1058 = vmatpush1.bf16.msra.mxu1 %v4742_v62 }
  0xbf   : > { %1059 = vmatprep.subr.bf16.mxu1 %v4750_v0 }
  0xc1   : > { %991 = vmatmul.mubr.bf16.gmra.mrb[8].mxu1 %v5591_v3 }
  0xc2   : > { %1060 = vmatpush1.bf16.msra.mxu1 %v4748_v4  ;;  %1000 = vmatprep.mubr.bf16.mxu1 %v5594_v5 }
  0xc3   : > { %1061 = vmatprep.subr.bf16.mxu1 %v4753_v6  ;;  %1207 = vmatmul.mubr.bf16.gmra.mrb[4].mxu0 %v5583_v57 }
  0xc4   : > { %1216 = vmatprep.mubr.bf16.mxu0 %v5586_v60 }
  0xc6   : > { %1062 = vmatpush1.bf16.msra.mxu1 %v4751_v9 }
  0xc7   : > { %1063 = vmatprep.subr.bf16.mxu1 %v4759_v10 }
  0xc9   : > { %1001 = vmatmul.mubr.bf16.gmra.mrb[12].mxu1 %v5599_v14 }
  0xca   : > { %1064 = vmatpush1.bf16.msra.mxu1 %v4757_v15  ;;  %1010 = vmatprep.mubr.bf16.mxu1 %v5602_v16 }
  0xcb   : > { %1065 = vmatprep.subr.bf16.mxu1 %v4762_v17  ;;  %1217 = vmatmul.mubr.bf16.gmra.mrb[8].mxu0 %v5591_v3 }
  0xcc   : > { %1226 = vmatprep.mubr.bf16.mxu0 %v5594_v5 }
  0xce   : > { %1066 = vmatpush1.bf16.msra.mxu1 %v4760_v20 }
  0xcf   : > { %1067 = vmatprep.subr.bf16.mxu1 %v4768_v21 }
  0xd1   : > { %1011 = vmatmul.mubr.bf16.gmra.mrb[16].mxu1 %v5607_v24 }
  0xd2   : > { %1068 = vmatpush1.bf16.msra.mxu1 %v4766_v25  ;;  %1020 = vmatprep.mubr.bf16.mxu1 %v5610_v26 }
  0xd3   : > { %1069 = vmatprep.subr.bf16.mxu1 %v4774_v27  ;;  %1227 = vmatmul.mubr.bf16.gmra.mrb[12].mxu0 %v5599_v14 }
  0xd4   : > { %1236 = vmatprep.mubr.bf16.mxu0 %v5602_v16 }
  0xd6   : > { %1070 = vmatpush1.bf16.msra.mxu1 %v4772_v30 }
  0xd7   : > { %1071 = vmatprep.subr.bf16.mxu1 %v4783_v31 }
  0xd9   : > { %1021 = vmatmul.mubr.bf16.gmra.mrb[20].mxu1 %v4780_v33 }
  0xda   : > { %1072 = vmatpush1.bf16.msra.mxu1 %v4781_v34  ;;  %1030 = vmatprep.mubr.bf16.mxu1 %v4793_v35 }
  0xdb   : > { %1073 = vmatprep.subr.bf16.mxu1 %v4789_v36  ;;  %1237 = vmatmul.mubr.bf16.gmra.mrb[16].mxu0 %v5607_v24 }
  0xdc   : > { %1246 = vmatprep.mubr.bf16.mxu0 %v5610_v26 }
  0xde   : > { %1074 = vmatpush1.bf16.msra.mxu1 %v4787_v37 }
  0xdf   : > { %1075 = vmatprep.subr.bf16.mxu1 %v4798_v38 }
  0xe1   : > { %1031 = vmatmul.mubr.bf16.gmra.mrb[24].mxu1 %v4795_v39 }
  0xe2   : > { %1076 = vmatpush1.bf16.msra.mxu1 %v4796_v40  ;;  %1040 = vmatprep.mubr.bf16.mxu1 %v4808_v41 }
  0xe3   : > { %1077 = vmatprep.subr.bf16.mxu1 %v4804_v42  ;;  %1247 = vmatmul.mubr.bf16.gmra.mrb[20].mxu0 %v4780_v33 }
  0xe4   : > { %1256 = vmatprep.mubr.bf16.mxu0 %v4793_v35 }
  0xe6   : > { %1078 = vmatpush1.bf16.msra.mxu1 %v4802_v43 }
  0xe7   : > { %1079 = vmatprep.subr.bf16.mxu1 %v4813_v44 }
  0xe9   : > { %1041 = vmatmul.mubr.bf16.gmra.mrb[28].mxu1 %v4810_v45 }
  0xea   : > { %1080 = vmatpush1.bf16.msra.mxu1 %v4811_v46  ;;  %1083 = vmatprep.mubr.bf16.mxu1 %v5570_v13 }
  0xeb   : > { %1081 = vmatprep.subr.bf16.mxu1 %v4819_v48  ;;  %1257 = vmatmul.mubr.bf16.gmra.mrb[24].mxu0 %v4795_v39 }
  0xec   : > { %1266 = vmatprep.mubr.bf16.mxu0 %v4808_v41 }
  0xee   : > { %1082 = vmatpush1.bf16.msra.mxu1 %v4817_v49 }
  0xf1   : > { %1084 = vmatmul.mubr.bf16.vlgmr.msra.gmra.mrb[32].mxu1 %v5575_v47 }
  0xf2   : > { %1093 = vmatprep.mubr.bf16.mxu1 %v5578_v50 }
  0xf3   : > { %1267 = vmatmul.mubr.bf16.gmra.mrb[28].mxu0 %v4810_v45 }
  0xf9   : > { %1094 = vmatmul.mubr.bf16.gmra.mrb[36].mxu1 %v5583_v57 }
  0xfa   : > { %1103 = vmatprep.mubr.bf16.mxu1 %v5586_v60 }
 0x101   : > { %1104 = vmatmul.mubr.bf16.gmra.mrb[40].mxu1 %v5591_v3 }
 0x102   : > { %1113 = vmatprep.mubr.bf16.mxu1 %v5594_v5 }
 0x109   : > { %1114 = vmatmul.mubr.bf16.gmra.mrb[44].mxu1 %v5599_v14 }
 0x10a   : > { %1123 = vmatprep.mubr.bf16.mxu1 %v5602_v16 }
 0x111   : > { %1124 = vmatmul.mubr.bf16.gmra.mrb[48].mxu1 %v5607_v24 }
 0x112   : > { %1133 = vmatprep.mubr.bf16.mxu1 %v5610_v26 }
 0x119   : > { %1134 = vmatmul.mubr.bf16.gmra.mrb[52].mxu1 %v4780_v33 }
 0x11a   : > { %1143 = vmatprep.mubr.bf16.mxu1 %v4793_v35 }
 0x121   : > { %1144 = vmatmul.mubr.bf16.gmra.mrb[56].mxu1 %v4795_v39 }
 0x122   : > { %1153 = vmatprep.mubr.bf16.mxu1 %v4808_v41 }
 0x129   : > { %1154 = vmatmul.mubr.bf16.gmra.mrb[60].mxu1 %v4810_v45 }
 0x184   : > { %v972_v13 = vpop.f32.mrb[0].mxu1 }
 0x185   : > { %v5640_v47 = vpop.f32.mrb[1].mxu1 }
 0x186   : > { %v976_v50 = vpop.f32.mrb[2].mxu1 }
 0x187   : > { %v1277_v51 = vpack.c.bf16 %v976_v50, %v972_v13  ;;  %v5642_v52 = vpop.f32.mrb[3].mxu1 }
 0x189   : > { %v5646_v54 = vmul.bf16 1040203264, %v1277_v51 }
 0x18b   : > { %4317 = vmatprep.mubr.msk.bf16.mxu1 %vm7140_vm0, %v5646_v54 }
 0x18c   : > { %v5650_v55 = vpop.f32.mrb[4].mxu1 }
 0x18d   : > { %v5652_v56 = vpop.f32.mrb[5].mxu1 }
 0x18e   : > { %v5654_v57 = vpop.f32.mrb[6].mxu1  ;;  %v1198_v19 = vpop.f32.mrb[0].mxu0 }
 0x18f   : > { %v5658_v59 = vpop.f32.mrb[7].mxu1  ;;  %v1200_v22 = vpop.f32.mrb[1].mxu0 }
 0x190   : > { %v1202_v24 = vpop.f32.mrb[2].mxu0 }
 0x191   : > { %v5710_v25 = vpack.c.bf16 %v1202_v24, %v1198_v19  ;;  %v1204_v26 = vpop.f32.mrb[3].mxu0 }
 0x192   : > { %v5712_v27 = vpack.c.bf16 %v1204_v26, %v1200_v22 }
 0x194   : > { %v5662_v61 = vpop.f32.mrb[8].mxu1  ;;  %7208 = vst [vmem:[#allocation14_spill] sm:$0xff] %v5712_v27 }
 0x195   : > { %v5664_v62 = vpop.f32.mrb[9].mxu1 }
 0x196   : > { %v5666_v63 = vpop.f32.mrb[10].mxu1  ;;  %v1208_v31 = vpop.f32.mrb[4].mxu0 }
 0x197   : > { %v5670_v1 = vpop.f32.mrb[11].mxu1  ;;  %v1210_v34 = vpop.f32.mrb[5].mxu0 }
 0x198   : > { %v1212_v36 = vpop.f32.mrb[6].mxu0 }
 0x199   : > { %v5726_v37 = vpack.c.bf16 %v1212_v36, %v1208_v31  ;;  %v1214_v38 = vpop.f32.mrb[7].mxu0 }
 0x19a   : > { %v5728_v39 = vpack.c.bf16 %v1214_v38, %v1210_v34 }
 0x19c   : > { %v5674_v3 = vpop.f32.mrb[12].mxu1  ;;  %7209 = vst [vmem:[#allocation15_spill] sm:$0xff] %v5728_v39 }
 0x19d   : > { %v5676_v4 = vpop.f32.mrb[13].mxu1 }
 0x19e   : > { %v5678_v5 = vpop.f32.mrb[14].mxu1  ;;  %v1218_v43 = vpop.f32.mrb[8].mxu0 }
 0x19f   : > { %v5682_v7 = vpop.f32.mrb[15].mxu1  ;;  %v1220_v46 = vpop.f32.mrb[9].mxu0 }
 0x1a0   : > { %v1222_v49 = vpop.f32.mrb[10].mxu0 }
 0x1a1   : > { %v5742_v13 = vpack.c.bf16 %v1222_v49, %v1218_v43  ;;  %v1224_v50 = vpop.f32.mrb[11].mxu0 }
 0x1a2   : > { %v5744_v51 = vpack.c.bf16 %v1224_v50, %v1220_v46 }
 0x1a4   : > { %v5686_v9 = vpop.f32.mrb[16].mxu1  ;;  %7210 = vst [vmem:[#allocation16_spill] sm:$0xff] %v5744_v51 }
 0x1a5   : > { %v5688_v10 = vpop.f32.mrb[17].mxu1 }
 0x1a6   : > { %v5690_v11 = vpop.f32.mrb[18].mxu1  ;;  %v1228_v26 = vpop.f32.mrb[12].mxu0 }
 0x1a7   : > { %v5694_v14 = vpop.f32.mrb[19].mxu1  ;;  %v1230_v36 = vpop.f32.mrb[13].mxu0 }
 0x1a8   : > { %v1232_v35 = vpop.f32.mrb[14].mxu0 }
 0x1a9   : > { %v5751_v49 = vpack.c.bf16 %v1232_v35, %v1228_v26  ;;  %v1234_v46 = vpop.f32.mrb[15].mxu0 }
 0x1aa   : > { %v5753_v50 = vpack.c.bf16 %v1234_v46, %v1230_v36 }
 0x1ac   : > { %v5698_v16 = vpop.f32.mrb[20].mxu1  ;;  %7211 = vst [vmem:[#allocation17_spill] sm:$0xff] %v5753_v50 }
 0x1ad   : > { %v5700_v17 = vpop.f32.mrb[21].mxu1 }
 0x1ae   : > { %v5702_v18 = vpop.f32.mrb[22].mxu1  ;;  %v1238_v23 = vpop.f32.mrb[16].mxu0 }
 0x1af   : > { %v5706_v21 = vpop.f32.mrb[23].mxu1  ;;  %v1240_v15 = vpop.f32.mrb[17].mxu0 }
 0x1b0   : > { %v1242_v2 = vpop.f32.mrb[18].mxu0 }
 0x1b1   : > { %v5760_v26 = vpack.c.bf16 %v1242_v2, %v1238_v23 }
 0x1b4   : > { %v5714_v28 = vpop.f32.mrb[24].mxu1 }
 0x1b5   : > { %v5716_v29 = vpop.f32.mrb[25].mxu1 }
 0x1b6   : > { %v5718_v30 = vpop.f32.mrb[26].mxu1 }
 0x1b7   : > { %v5722_v33 = vpop.f32.mrb[27].mxu1 }
 0x1bc   : > { %v5730_v40 = vpop.f32.mrb[28].mxu1 }
 0x1bd   : > { %v5732_v41 = vpop.f32.mrb[29].mxu1 }
 0x1be   : > { %v5734_v42 = vpop.f32.mrb[30].mxu1 }
 0x1bf   : > { %v5738_v45 = vpop.f32.mrb[31].mxu1 }
 0x1c4   : > { %v1085_v19 = vpop.f32.mrb[32].mxu1 }
 0x1c5   : > { %v1087_v22 = vpop.f32.mrb[33].mxu1 }
 0x1c6   : > { %v1089_v24 = vpop.f32.mrb[34].mxu1 }
 0x1c7   : > { %v1279_v31 = vpack.c.bf16 %v1089_v24, %v1085_v19  ;;  %v1091_v34 = vpop.f32.mrb[35].mxu1 }
 0x1c8   : > { %v5746_v38 = vpack.c.bf16 %v1091_v34, %v1087_v22 }
 0x1c9   : > { %1954 = vrot.lane.b32.xlu0 %v1279_v31, %s5332_s23  ;;  %4557 = vmatprep.subr.msk.bf16.mxu1 %vm7140_vm0, %v1279_v31  ;;  %v1489_v43 = vsel %vm7140_vm0, %v1279_v31, 0  ;;  %v1244_v31 = vpop.f32.mrb[19].mxu0 }
 0x1ca   : > { %4302 = vmatpush3.bf16.xpose.msra.mxu1 %v1489_v43  ;;  %v5762_v36 = vpack.c.bf16 %v1244_v31, %v1240_v15 }
 0x1cc   : > { %v1095_v48 = vpop.f32.mrb[36].mxu1  ;;  %7212 = vst [vmem:[#allocation18_spill] sm:$0xff] %v5762_v36 }
 0x1cd   : > { %v1097_v19 = vpop.f32.mrb[37].mxu1 }
 0x1ce   : > { %v1099_v24 = vpop.f32.mrb[38].mxu1 }
 0x1cf   : > { %v1285_v22 = vpack.c.bf16 %v1099_v24, %v1095_v48  ;;  %v1101_v34 = vpop.f32.mrb[39].mxu1  ;;  %v1248_v24 = vpop.f32.mrb[20].mxu0 }
 0x1d0   : > { %v5755_v8 = vpack.c.bf16 %v1101_v34, %v1097_v19  ;;  %v1250_v34 = vpop.f32.mrb[21].mxu0 }
 0x1d1   : > { %1956 = vrot.lane.b32.xlu0 %v1285_v22, %s5332_s23  ;;  %4558 = vmatprep.subr.msk.bf16.mxu1 %vm7140_vm0, %v1285_v22  ;;  %v1492_v35 = vsel %vm7140_vm0, %v1285_v22, 0  ;;  %v1252_v44 = vpop.f32.mrb[22].mxu0 }
 0x1d2   : > { %4304 = vmatpush3.bf16.xpose.msra.mxu1 %v1492_v35  ;;  %v5769_v23 = vpack.c.bf16 %v1252_v44, %v1248_v24  ;;  %v1254_v15 = vpop.f32.mrb[23].mxu0 }
 0x1d3   : > { %v5771_v22 = vpack.c.bf16 %v1254_v15, %v1250_v34 }
 0x1d4   : > { %v1105_v43 = vpop.f32.mrb[40].mxu1 }
 0x1d5   : > { %v1107_v46 = vpop.f32.mrb[41].mxu1  ;;  %7213 = vst [vmem:[#allocation19_spill] sm:$0xff] %v5771_v22 }
 0x1d6   : > { %v1109_v48 = vpop.f32.mrb[42].mxu1 }
 0x1d7   : > { %v1291_v60 = vpack.c.bf16 %v1109_v48, %v1105_v43  ;;  %v1111_v19 = vpop.f32.mrb[43].mxu1  ;;  %v1258_v48 = vpop.f32.mrb[24].mxu0 }
 0x1d8   : > { %v5764_v53 = vpack.c.bf16 %v1111_v19, %v1107_v46  ;;  %v1260_v19 = vpop.f32.mrb[25].mxu0 }
 0x1d9   : > { %1958 = vrot.lane.b32.xlu1 %v1291_v60, %s5332_s23  ;;  %4559 = vmatprep.subr.msk.bf16.mxu1 %vm7140_vm0, %v1291_v60  ;;  %v1495_v2 = vsel %vm7140_vm0, %v1291_v60, 0  ;;  %v1262_v6 = vpop.f32.mrb[26].mxu0 }
 0x1da   : > { %4306 = vmatpush3.bf16.xpose.msra.mxu1 %v1495_v2  ;;  %v5778_v44 = vpack.c.bf16 %v1262_v6, %v1258_v48  ;;  %v1264_v24 = vpop.f32.mrb[27].mxu0 }
 0x1db   : > { %v5780_v34 = vpack.c.bf16 %v1264_v24, %v1260_v19 }
 0x1dc   : > { %v1115_v35 = vpop.f32.mrb[44].mxu1 }
 0x1dd   : > { %v1117_v31 = vpop.f32.mrb[45].mxu1  ;;  %7214 = vst [vmem:[#allocation20_spill] sm:$0xff] %v5780_v34 }
 0x1de   : > { %v1119_v43 = vpop.f32.mrb[46].mxu1 }
 0x1df   : > { %v1297_v20 = vpack.c.bf16 %v1119_v43, %v1115_v35  ;;  %v1121_v46 = vpop.f32.mrb[47].mxu1  ;;  %v1268_v43 = vpop.f32.mrb[28].mxu0 }
 0x1e0   : > { %v5773_v32 = vpack.c.bf16 %v1121_v46, %v1117_v31  ;;  %v5782_v46 = vpop.f32.mrb[29].mxu0 }
 0x1e1   : > { %1960 = vrot.lane.b32.xlu1 %v1297_v20, %s5332_s23  ;;  %4560 = vmatprep.subr.msk.bf16.mxu1 %vm7140_vm0, %v1297_v20  ;;  %v1498_v60 = vsel %vm7140_vm0, %v1297_v20, 0  ;;  %v1272_v0 = vpop.f32.mrb[30].mxu0 }
 0x1e2   : > { %4308 = vmatpush3.bf16.xpose.msra.mxu1 %v1498_v60  ;;  %v5789_v20 = vpack.c.bf16 %v1272_v0, %v1268_v43 }
 0x1e4   : > { %v1125_v2 = vpop.f32.mrb[48].mxu1 }
 0x1e5   : > { %v1127_v15 = vpop.f32.mrb[49].mxu1 }
 0x1e6   : > { %v1129_v35 = vpop.f32.mrb[50].mxu1 }
 0x1e7   : > { %v1303_v12 = vpack.c.bf16 %v1129_v35, %v1125_v2  ;;  %v1131_v31 = vpop.f32.mrb[51].mxu1 }
 0x1e8   : > { %v5784_v58 = vpack.c.bf16 %v1131_v31, %v1127_v15 }
 0x1e9   : > { %1962 = vrot.lane.b32.xlu0 %v1303_v12, %s5332_s23  ;;  %4561 = vmatprep.subr.msk.bf16.mxu1 %vm7140_vm0, %v1303_v12  ;;  %v1501_v6 = vsel %vm7140_vm0, %v1303_v12, 0 }
 0x1ea   : > { %7215 = vst [vmem:[#allocation21_spill] sm:$0xff] %v5784_v58  ;;  %4310 = vmatpush3.bf16.xpose.msra.mxu1 %v1501_v6 }
 0x1ec   : > { %v1135_v48 = vpop.f32.mrb[52].mxu1 }
 0x1ed   : > { %v1137_v19 = vpop.f32.mrb[53].mxu1 }
 0x1ee   : > { %v1139_v60 = vpop.f32.mrb[54].mxu1 }
 0x1ef   : > { %v1309_v24 = vpack.c.bf16 %v1139_v60, %v1135_v48  ;;  %v1141_v2 = vpop.f32.mrb[55].mxu1 }
 0x1f0   : > { %v5791_v35 = vpack.c.bf16 %v1141_v2, %v1137_v19  ;;  %v7218_v2 = vpack.c.bf16 %v5666_v63, %v5662_v61  ;;  %v7221_v61 = vpack.c.bf16 %v5690_v11, %v5686_v9  ;;  %v1274_v11 = vpop.f32.mrb[31].mxu0 }
 0x1f1   : > { %1964 = vrot.lane.b32.xlu1 %v1309_v24, %s5332_s23  ;;  %4562 = vmatprep.subr.msk.bf16.mxu1 %vm7140_vm0, %v1309_v24  ;;  %v1504_v15 = vsel %vm7140_vm0, %v1309_v24, 0 }
 0x1f2   : > { %7216 = vst [vmem:[#allocation22_spill] sm:$0xff] %v5791_v35  ;;  %4312 = vmatpush3.bf16.xpose.msra.mxu1 %v1504_v15  ;;  %v1441_v15 = vmul.bf16 1040203264, %v7218_v2  ;;  %v1443_v63 = vmul.bf16 1040203264, %v7221_v61 }
 0x1f4   : > { %v1145_v31 = vpop.f32.mrb[56].mxu1 }
 0x1f5   : > { %v1147_v34 = vpop.f32.mrb[57].mxu1 }
 0x1f6   : > { %v1149_v12 = vpop.f32.mrb[58].mxu1 }
 0x1f7   : > { %v1315_v0 = vpack.c.bf16 %v1149_v12, %v1145_v31  ;;  %v1151_v43 = vpop.f32.mrb[59].mxu1 }
 0x1f8   : > { %v5796_v6 = vpack.c.bf16 %v1151_v43, %v1147_v34 }
 0x1f9   : > { %1966 = vrot.lane.b32.xlu0 %v1315_v0, %s5332_s23  ;;  %4563 = vmatprep.subr.msk.bf16.mxu1 %vm7140_vm0, %v1315_v0  ;;  %v1507_v48 = vsel %vm7140_vm0, %v1315_v0, 0 }
 0x1fa   : > { %7217 = vst [vmem:[#allocation23_spill] sm:$0xff] %v5796_v6  ;;  %4314 = vmatpush3.bf16.xpose.msra.mxu1 %v1507_v48  ;;  %v7222_v48 = vpack.c.bf16 %v5678_v5, %v5674_v3  ;;  %v7225_v3 = vpack.c.bf16 %v5734_v42, %v5730_v40 }
 0x1fc   : > { %v1155_v19 = vpop.f32.mrb[60].mxu1  ;;  %v1446_v5 = vmul.bf16 1040203264, %v7225_v3  ;;  %v7230_v3 = vpack.c.bf16 %v5658_v59, %v5652_v56  ;;  %v7236_v56 = vpack.c.bf16 %v5694_v14, %v5688_v10  ;;  %v1374_v10 = vlaneseq }
 0x1fd   : > { %1930 = vrot.lane.b32.xlu0 %v5646_v54, %s5332_s23  ;;  %v1157_v60 = vpop.f32.mrb[61].mxu1  ;;  %v7220_v54 = vpack.c.bf16 %v5654_v57, %v5650_v55  ;;  %v7224_v57 = vpack.c.bf16 %v5702_v18, %v5698_v16  ;;  %v5882_v16 = vpack.c.bf16 %v1274_v11, %v5782_v46  ;;  %v7232_v11 = vpack.c.bf16 %v5670_v1, %v5664_v62 }
 0x1fe   : > { %v1159_v24 = vpop.f32.mrb[62].mxu1  ;;  %v5972_v59 = vmul.bf16 1040203264, %v7236_v56  ;;  %v7238_v62 = vpack.c.bf16 %v5706_v21, %v5700_v17  ;;  %v7242_v14 = vpack.c.bf16 %v5738_v45, %v5732_v41  ;;  %v5997_v17 = vshrl.u32 %v1374_v10, 7 }
 0x1ff   : > { %v1321_v31 = vpack.c.bf16 %v1159_v24, %v1155_v19  ;;  %v1161_v34 = vpop.f32.mrb[63].mxu1  ;;  %v1440_v43 = vmul.bf16 1040203264, %v7220_v54  ;;  %v1442_v19 = vmul.bf16 1040203264, %v7222_v48  ;;  %7226 = vst [vmem:[#allocation25_spill] sm:$0xff] %v5882_v16 }
 0x200   : > { %v5806_v12 = vpack.c.bf16 %v1161_v34, %v1157_v60  ;;  %v7223_v60 = vpack.c.bf16 %v5718_v30, %v5714_v28  ;;  %v1444_v9 = vmul.bf16 1040203264, %v7224_v57  ;;  %v2518_v54 = vsel %vm7140_vm0, %v5746_v38, 0  ;;  %7237 = vst [vmem:[#allocation31_spill] sm:$0xff] %v5972_v59  ;;  %7244 = vst [vmem:[#allocation35_spill] sm:$0xff] %v5997_v17 }
 0x201   : > { %1934 = vrot.lane.b32.xlu0 %v1441_v15, %s5332_s23  ;;  %1968 = vrot.lane.b32.xlu1 %v1321_v31, %s5332_s23  ;;  %v1510_v0 = vsel %vm7140_vm0, %v1321_v31, 0  ;;  %v2521_v48 = vsel %vm7140_vm0, %v5755_v8, 0  ;;  %v2527_v57 = vsel %vm7140_vm0, %v5773_v32, 0  ;;  %v5981_v1 = vmul.bf16 1040203264, %v7238_v62 }
 0x202   : > { %7219 = vst [vmem:[#allocation24_spill] sm:$0xff] %v5806_v12  ;;  %4564 = vmatprep.subr.msk.bf16.mxu1 %vm7140_vm0, %v1321_v31  ;;  %v1445_v55 = vmul.bf16 1040203264, %v7223_v60  ;;  %v2524_v60 = vsel %vm7140_vm0, %v5764_v53, 0  ;;  %v6002_v21 = vadd.s32 16, %v5997_v17  ;;  %v6135_v56 = vadd.s32 120, %v5997_v17 }
 0x203   : > { %4316 = vmatpush3.bf16.xpose.msra.mxu1 %v1510_v0  ;;  %7239 = vst [vmem:[#allocation32_spill] sm:$0xff] %v5981_v1 }
 0x204   : > { %4333 = vmatprep.subr.bf16.mxu1 %v5710_v25  ;;  %7245 = vst [vmem:[#allocation36_spill] sm:$0xff] %v6002_v21  ;;  %7259 = vst [vmem:[#allocation50_spill] sm:$0xff] %v6135_v56 }
 0x205   : > { %1938 = vrot.lane.b32.xlu0 %v1443_v63, %s5332_s23  ;;  %1932 = vrot.lane.b32.xlu1 %v1440_v43, %s5332_s23 }
 0x209   : > { %1942 = vrot.lane.b32.xlu0 %v1445_v55, %s5332_s23  ;;  %1936 = vrot.lane.b32.xlu1 %v1442_v19, %s5332_s23 }
 0x20a   : > { %4318 = vmatmul.mubr.msk.bf16.vlgmr.msra.gmra.mrb[64].mxu1 %vm7140_vm0, %v1440_v43 }
 0x20b   : > { %4321 = vmatprep.mubr.msk.bf16.mxu1 %vm7140_vm0, %v1441_v15  ;;  %4334 = vmatpush3.bf16.msra.mxu1 %v5710_v25 }
 0x20c   : > { %4335 = vmatprep.subr.bf16.mxu1 %v5726_v37 }
 0x20d   : > { %2293 = vrot.lane.b32.xlu0 %v5726_v37, %s5332_s23  ;;  %1940 = vrot.lane.b32.xlu1 %v1444_v9, %s5332_s23 }
 0x20f   : > { %4336 = vmatpush3.bf16.msra.mxu1 %v5726_v37 }
 0x210   : > { %4337 = vmatprep.subr.bf16.mxu1 %v5742_v13 }
 0x211   : > { %2295 = vrot.lane.b32.xlu0 %v5742_v13, %s5332_s23  ;;  %1944 = vrot.lane.b32.xlu1 %v1446_v5, %s5332_s23 }
 0x212   : > { %4322 = vmatmul.mubr.msk.bf16.gmra.mrb[68].mxu1 %vm7140_vm0, %v1442_v19 }
 0x213   : > { %4325 = vmatprep.mubr.msk.bf16.mxu1 %vm7140_vm0, %v1443_v63  ;;  %4338 = vmatpush3.bf16.msra.mxu1 %v5742_v13 }
 0x214   : > { %4339 = vmatprep.subr.bf16.mxu1 %v5751_v49 }
 0x215   : > { %2299 = vrot.lane.b32.xlu0 %v5760_v26, %s5332_s23  ;;  %2291 = vrot.lane.b32.xlu1 %v5710_v25, %s5332_s23 }
 0x217   : > { %4340 = vmatpush3.bf16.msra.mxu1 %v5751_v49 }
 0x218   : > { %4341 = vmatprep.subr.bf16.mxu1 %v5760_v26 }
 0x219   : > { %2303 = vrot.lane.b32.xlu0 %v5778_v44, %s5332_s23  ;;  %2297 = vrot.lane.b32.xlu1 %v5751_v49, %s5332_s23 }
 0x21a   : > { %4326 = vmatmul.mubr.msk.bf16.gmra.mrb[72].mxu1 %vm7140_vm0, %v1444_v9  ;;  %v2539_v9 = vsel %vm7140_vm0, %v5806_v12, 0 }
 0x21b   : > { %4329 = vmatprep.mubr.msk.bf16.mxu1 %vm7140_vm0, %v1445_v55  ;;  %4342 = vmatpush3.bf16.msra.mxu1 %v5760_v26 }
 0x21c   : > { %4343 = vmatprep.subr.bf16.mxu1 %v5769_v23 }
 0x21d   : > { %2983 = vrot.lane.b32.xlu0 %v5746_v38, %s5332_s23  ;;  %2301 = vrot.lane.b32.xlu1 %v5769_v23, %s5332_s23 }
 0x21f   : > { %4344 = vmatpush3.bf16.msra.mxu1 %v5769_v23 }
 0x220   : > { %4345 = vmatprep.subr.bf16.mxu1 %v5778_v44 }
 0x221   : > { %2987 = vrot.lane.b32.xlu0 %v5764_v53, %s5332_s23  ;;  %2305 = vrot.lane.b32.xlu1 %v5789_v20, %s5332_s23 }
 0x222   : > { %4330 = vmatmul.mubr.msk.bf16.gmra.mrb[76].mxu1 %vm7140_vm0, %v1446_v5  ;;  %v5953_v5 = vmul.bf16 1040203264, %v7230_v3 }
 0x223   : > { %4346 = vmatpush3.bf16.msra.mxu1 %v5778_v44 }
 0x224   : > { %4347 = vmatprep.subr.bf16.mxu1 %v5789_v20  ;;  %7231 = vst [vmem:[#allocation28_spill] sm:$0xff] %v5953_v5 }
 0x225   : > { %2985 = vrot.lane.b32.xlu1 %v5755_v8, %s5332_s23 }
 0x227   : > { %4348 = vmatpush3.bf16.msra.mxu1 %v5789_v20 }
 0x23b   : > { %v1955_v18 = vpop.permute.xlu0 %1954 }
 0x23c   : > { %4565 = vmatprep.subr.msk.bf16.mxu0 %vm7140_vm0, %v1955_v18  ;;  %v1995_v25 = vsel %vm7140_vm0, %v1955_v18, 0  ;;  %v5958_v18 = vmul.bf16 1040203264, %v7232_v11 }
 0x23d   : > { %4366 = vmatpush3.bf16.xpose.msra.mxu0 %v1995_v25  ;;  %v7234_v25 = vpack.c.bf16 %v5682_v7, %v5676_v4  ;;  %v7240_v4 = vpack.c.bf16 %v5722_v33, %v5716_v29  ;;  %v6004_v29 = vand.u32 127, %v1374_v10  ;;  %v6007_v33 = vadd.s32 8, %v5997_v17 }
 0x23e   : > { %7233 = vst [vmem:[#allocation29_spill] sm:$0xff] %v5958_v18 }
 0x23f   : > { %v5986_v7 = vmul.bf16 1040203264, %v7240_v4  ;;  %7246 = vst [vmem:[#allocation37_spill] sm:$0xff] %v6004_v29  ;;  %7247 = vst [vmem:[#allocation38_spill] sm:$0xff] %v6007_v33  ;;  %vm1412_vm1 = vcmp.le.s32.totalorder %v6004_v29, %v6002_v21  ;;  %vm1411_vm2 = vcmp.le.s32.totalorder %v6004_v29, %v6007_v33  ;;  %vm1410_vm3 = vcmp.le.s32.totalorder %v6004_v29, %v5997_v17 }
 0x240   : > { %vm7193_vm15 = vcmp.le.s32.totalorder %v6004_v29, %v6135_v56 }
 0x241   : > { %7241 = vst [vmem:[#allocation33_spill] sm:$0xff] %v5986_v7 }
 0x243   : > { %v1957_v28 = vpop.permute.xlu0 %1956 }
 0x244   : > { %4566 = vmatprep.subr.msk.bf16.mxu0 %vm7140_vm0, %v1957_v28  ;;  %v1998_v30 = vsel %vm7140_vm0, %v1957_v28, 0  ;;  %v5967_v28 = vmul.bf16 1040203264, %v7234_v25  ;;  %v6132_v25 = vadd.s32 96, %v5997_v17 }
 0x245   : > { %4368 = vmatpush3.bf16.xpose.msra.mxu0 %v1998_v30  ;;  %v5995_v30 = vmul.bf16 1040203264, %v7242_v14 }
 0x246   : > { %7235 = vst [vmem:[#allocation30_spill] sm:$0xff] %v5967_v28  ;;  %7258 = vst [vmem:[#allocation49_spill] sm:$0xff] %v6132_v25  ;;  %vm7194_vm14 = vcmp.le.s32.totalorder %v6004_v29, %v6132_v25 }
 0x247   : > { %7243 = vst [vmem:[#allocation34_spill] sm:$0xff] %v5995_v30 }
 0x24b   : > { %v1959_v37 = vpop.permute.xlu1 %1958 }
 0x24c   : > { %4567 = vmatprep.subr.msk.bf16.mxu0 %vm7140_vm0, %v1959_v37  ;;  %v2001_v40 = vsel %vm7140_vm0, %v1959_v37, 0 }
 0x24d   : > { %4370 = vmatpush3.bf16.xpose.msra.mxu0 %v2001_v40 }
 0x253   : > { %v1961_v42 = vpop.permute.xlu1 %1960 }
 0x254   : > { %4568 = vmatprep.subr.msk.bf16.mxu0 %vm7140_vm0, %v1961_v42  ;;  %v2004_v13 = vsel %vm7140_vm0, %v1961_v42, 0  ;;  %v6022_v42 = vadd.s32 24, %v5997_v17 }
 0x255   : > { %4372 = vmatpush3.bf16.xpose.msra.mxu0 %v2004_v13  ;;  %v6025_v13 = vadd.s32 48, %v5997_v17 }
 0x256   : > { %7248 = vst [vmem:[#allocation39_spill] sm:$0xff] %v6022_v42  ;;  %vm1413_vm4 = vcmp.le.s32.totalorder %v6004_v29, %v6022_v42 }
 0x257   : > { %7249 = vst [vmem:[#allocation40_spill] sm:$0xff] %v6025_v13  ;;  %vm1416_vm5 = vcmp.le.s32.totalorder %v6004_v29, %v6025_v13 }
 0x25b   : > { %v1963_v49 = vpop.permute.xlu0 %1962 }
 0x25c   : > { %4569 = vmatprep.subr.msk.bf16.mxu0 %vm7140_vm0, %v1963_v49  ;;  %v2007_v26 = vsel %vm7140_vm0, %v1963_v49, 0 }
 0x25d   : > { %4374 = vmatpush3.bf16.xpose.msra.mxu0 %v2007_v26 }
 0x263   : > { %v1965_v23 = vpop.permute.xlu1 %1964 }
 0x264   : > { %4570 = vmatprep.subr.msk.bf16.mxu0 %vm7140_vm0, %v1965_v23  ;;  %v2010_v44 = vsel %vm7140_vm0, %v1965_v23, 0 }
 0x265   : > { %4376 = vmatpush3.bf16.xpose.msra.mxu0 %v2010_v44  ;;  %v6044_v44 = vadd.s32 32, %v5997_v17 }
 0x267   : > { %7250 = vst [vmem:[#allocation41_spill] sm:$0xff] %v6044_v44  ;;  %vm1414_vm6 = vcmp.le.s32.totalorder %v6004_v29, %v6044_v44 }
 0x26b   : > { %v1967_v46 = vpop.permute.xlu0 %1966 }
 0x26c   : > { %4571 = vmatprep.subr.msk.bf16.mxu0 %vm7140_vm0, %v1967_v46  ;;  %v2013_v20 = vsel %vm7140_vm0, %v1967_v46, 0  ;;  %v6047_v46 = vadd.s32 56, %v5997_v17 }
 0x26d   : > { %4378 = vmatpush3.bf16.xpose.msra.mxu0 %v2013_v20 }
 0x26e   : > { %7251 = vst [vmem:[#allocation42_spill] sm:$0xff] %v6047_v46  ;;  %vm1417_vm7 = vcmp.le.s32.totalorder %v6004_v29, %v6047_v46 }
 0x26f   : > { %v1931_v24 = vpop.permute.xlu0 %1930 }
 0x270   : > { %4381 = vmatprep.mubr.msk.bf16.mxu0 %vm7140_vm0, %v1931_v24 }
 0x273   : > { %v1969_v2 = vpop.permute.xlu1 %1968  ;;  %v1935_v0 = vpop.permute.xlu0 %1934 }
 0x274   : > { %4572 = vmatprep.subr.msk.bf16.mxu0 %vm7140_vm0, %v1969_v2  ;;  %v2016_v15 = vsel %vm7140_vm0, %v1969_v2, 0 }
 0x275   : > { %4380 = vmatpush3.bf16.xpose.msra.mxu0 %v2016_v15 }
 0x276   : > { %4573 = vmatprep.subr.msk.bf16.mxu0 %vm7140_vm0, %v5746_v38 }
 0x277   : > { %v1933_v31 = vpop.permute.xlu1 %1932  ;;  %v1939_v63 = vpop.permute.xlu0 %1938 }
 0x27b   : > { %v1937_v34 = vpop.permute.xlu1 %1936  ;;  %v1943_v19 = vpop.permute.xlu0 %1942 }
 0x27c   : > { %4382 = vmatmul.mubr.msk.bf16.vlgmr.msra.gmra.mrb[32].mxu0 %vm7140_vm0, %v1933_v31 }
 0x27d   : > { %4385 = vmatprep.mubr.msk.bf16.mxu0 %vm7140_vm0, %v1935_v0  ;;  %4430 = vmatpush3.bf16.xpose.msra.mxu0 %v2518_v54  ;;  %v6069_v0 = vadd.s32 80, %v5997_v17 }
 0x27e   : > { %4574 = vmatprep.subr.msk.bf16.mxu0 %vm7140_vm0, %v5755_v8  ;;  %v7228_v8 = vpack.c.bf16 %v5642_v52, %v5640_v47  ;;  %v2533_v47 = vsel %vm7140_vm0, %v5791_v35, 0  ;;  %v2536_v52 = vsel %vm7140_vm0, %v5796_v6, 0 }
 0x27f   : > { %v1941_v43 = vpop.permute.xlu1 %1940  ;;  %7253 = vst [vmem:[#allocation44_spill] sm:$0xff] %v6069_v0  ;;  %vm1420_vm9 = vcmp.le.s32.totalorder %v6004_v29, %v6069_v0 }
 0x280   : > { %v5927_v55 = vmul.bf16 1040203264, %v7228_v8 }
 0x282   : > { %7229 = vst [vmem:[#allocation27_spill] sm:$0xff] %v5927_v55 }
 0x283   : > { %v1945_v61 = vpop.permute.xlu1 %1944 }
 0x284   : > { %4386 = vmatmul.mubr.msk.bf16.gmra.mrb[36].mxu0 %vm7140_vm0, %v1937_v34  ;;  %v6066_v34 = vadd.s32 40, %v5997_v17 }
 0x285   : > { %4389 = vmatprep.mubr.msk.bf16.mxu0 %vm7140_vm0, %v1939_v63  ;;  %4432 = vmatpush3.bf16.xpose.msra.mxu0 %v2521_v48  ;;  %v6088_v63 = vadd.s32 64, %v5997_v17  ;;  %v6091_v48 = vadd.s32 88, %v5997_v17 }
 0x286   : > { %4575 = vmatprep.subr.msk.bf16.mxu0 %vm7140_vm0, %v5764_v53  ;;  %v2530_v53 = vsel %vm7140_vm0, %v5784_v58, 0  ;;  %7252 = vst [vmem:[#allocation43_spill] sm:$0xff] %v6066_v34  ;;  %vm1415_vm8 = vcmp.le.s32.totalorder %v6004_v29, %v6066_v34 }
 0x287   : > { %v5915_v38 = vpop.permute.xlu1 %2291  ;;  %7254 = vst [vmem:[#allocation45_spill] sm:$0xff] %v6088_v63  ;;  %7255 = vst [vmem:[#allocation46_spill] sm:$0xff] %v6091_v48  ;;  %vm7197_vm10 = vcmp.le.s32.totalorder %v6004_v29, %v6088_v63  ;;  %vm1421_vm11 = vcmp.le.s32.totalorder %v6004_v29, %v6091_v48 }
 0x288   : > { %7227 = vst [vmem:[#allocation26_spill] sm:$0xff] %v5915_v38  ;;  %4397 = vmatprep.subr.bf16.mxu1 %v5915_v38 }
 0x28c   : > { %4390 = vmatmul.mubr.msk.bf16.gmra.mrb[40].mxu0 %vm7140_vm0, %v1941_v43 }
 0x28d   : > { %4393 = vmatprep.mubr.msk.bf16.mxu0 %vm7140_vm0, %v1943_v19  ;;  %4434 = vmatpush3.bf16.xpose.msra.mxu0 %v2524_v60 }
 0x28e   : > { %4576 = vmatprep.subr.msk.bf16.mxu0 %vm7140_vm0, %v5773_v32 }
 0x294   : > { %4394 = vmatmul.mubr.msk.bf16.gmra.mrb[44].mxu0 %vm7140_vm0, %v1945_v61 }
 0x295   : > { %4436 = vmatpush3.bf16.xpose.msra.mxu0 %v2527_v57  ;;  %4445 = vmatprep.mubr.msk.bf16.mxu0 %vm7140_vm0, %v5927_v55 }
 0x296   : > { %4577 = vmatprep.subr.msk.bf16.mxu0 %vm7140_vm0, %v5784_v58 }
 0x29d   : > { %4438 = vmatpush3.bf16.xpose.msra.mxu0 %v2530_v53 }
 0x29e   : > { %4578 = vmatprep.subr.msk.bf16.mxu0 %vm7140_vm0, %v5791_v35 }
 0x2a5   : > { %4440 = vmatpush3.bf16.xpose.msra.mxu0 %v2533_v47  ;;  %v6110_v47 = vadd.s32 72, %v5997_v17 }
 0x2a6   : > { %4579 = vmatprep.subr.msk.bf16.mxu0 %vm7140_vm0, %v5796_v6 }
 0x2a7   : > { %7256 = vst [vmem:[#allocation47_spill] sm:$0xff] %v6110_v47  ;;  %vm7196_vm12 = vcmp.le.s32.totalorder %v6004_v29, %v6110_v47 }
 0x2ad   : > { %4442 = vmatpush3.bf16.xpose.msra.mxu0 %v2536_v52  ;;  %v6113_v52 = vadd.s32 112, %v5997_v17 }
 0x2ae   : > { %4580 = vmatprep.subr.msk.bf16.mxu0 %vm7140_vm0, %v5806_v12 }
 0x2af   : > { %7257 = vst [vmem:[#allocation48_spill] sm:$0xff] %v6113_v52  ;;  %vm7195_vm13 = vcmp.le.s32.totalorder %v6004_v29, %v6113_v52 }
 0x2b5   : > { %4444 = vmatpush3.bf16.xpose.msra.mxu0 %v2539_v9 }
 0x2bc   : > { %4446 = vmatmul.mubr.msk.bf16.vlgmr.msra.gmra.mrb[48].mxu0 %vm7140_vm0, %v5953_v5 }
 0x2bd   : > { %4449 = vmatprep.mubr.msk.bf16.mxu0 %vm7140_vm0, %v5958_v18 }
 0x2c4   : > { %4450 = vmatmul.mubr.msk.bf16.gmra.mrb[52].mxu0 %vm7140_vm0, %v5967_v28 }
 0x2c5   : > { %4453 = vmatprep.mubr.msk.bf16.mxu0 %vm7140_vm0, %v5972_v59 }
 0x2cc   : > { %4454 = vmatmul.mubr.msk.bf16.gmra.mrb[56].mxu0 %vm7140_vm0, %v5981_v1 }
 0x2cd   : > { %4457 = vmatprep.mubr.msk.bf16.mxu0 %vm7140_vm0, %v5986_v7 }
 0x2d4   : > { %4458 = vmatmul.mubr.msk.bf16.gmra.mrb[60].mxu0 %vm7140_vm0, %v5995_v30 }
 0x2dd   : > { %v4319_v37 = vpop.f32.mrb[64].mxu1 }
 0x2de   : > { %v1546_v41 = vpop.f32.mrb[65].mxu1  ;;  %v6014_v45 = vsel %vm1412_vm1, %v4319_v37, -inf }
 0x2df   : > { %1629 = vmax.xlane.f32.xlu0 %v6014_v45  ;;  %v4320_v40 = vpop.f32.mrb[66].mxu1  ;;  %v6036_v23 = vsel %vm1410_vm3, %v1546_v41, -inf  ;;  %v6154_v41 = vadd.s32 104, %v5997_v17 }
 0x2e0   : > { %v1549_v49 = vpop.f32.mrb[67].mxu1  ;;  %v6052_v2 = vsel %vm1413_vm4, %v4320_v40, -inf }
 0x2e1   : > { %v6030_v26 = vsel %vm1411_vm2, %v1549_v49, -inf  ;;  %7260 = vst [vmem:[#allocation51_spill] sm:$0xff] %v6154_v41  ;;  %vm7192_vm0 = vcmp.le.s32.totalorder %v6004_v29, %v6154_v41 }
 0x2e2   : > { %1627 = vmax.xlane.f32.xlu1 %v6030_v26 }
 0x2e3   : > { %1625 = vmax.xlane.f32.xlu0 %v6036_v23 }
 0x2e5   : > { %v4323_v20 = vpop.f32.mrb[68].mxu1 }
 0x2e6   : > { %v1562_v24 = vpop.f32.mrb[69].mxu1  ;;  %v6057_v15 = vsel %vm1416_vm5, %v4323_v20, -inf }
 0x2e7   : > { %1631 = vmax.xlane.f32.xlu0 %v6052_v2  ;;  %1637 = vmax.xlane.f32.xlu1 %v6057_v15  ;;  %v4324_v31 = vpop.f32.mrb[70].mxu1  ;;  %v6074_v43 = vsel %vm1414_vm6, %v1562_v24, -inf }
 0x2e8   : > { %v1565_v54 = vpop.f32.mrb[71].mxu1  ;;  %v6079_v61 = vsel %vm1417_vm7, %v4324_v31, -inf  ;;  %v6176_v31 = vpop.permute.xlu0 %2293 }
 0x2e9   : > { %v6096_v8 = vsel %vm1415_vm8, %v1565_v54, -inf  ;;  %7261 = vst [vmem:[#allocation52_spill] sm:$0xff] %v6176_v31 }
 0x2eb   : > { %1633 = vmax.xlane.f32.xlu1 %v6074_v43  ;;  %1639 = vmax.xlane.f32.xlu0 %v6079_v61 }
 0x2ed   : > { %v4327_v19 = vpop.f32.mrb[72].mxu1 }
 0x2ee   : > { %v1578_v60 = vpop.f32.mrb[73].mxu1  ;;  %v6101_v57 = vsel %vm1420_vm9, %v4327_v19, -inf  ;;  %v6178_v19 = vpop.permute.xlu0 %2295 }
 0x2ef   : > { %1635 = vmax.xlane.f32.xlu0 %v6096_v8  ;;  %1645 = vmax.xlane.f32.xlu1 %v6101_v57  ;;  %v4328_v53 = vpop.f32.mrb[74].mxu1  ;;  %v6118_v3 = vsel %vm7197_vm10, %v1578_v60, -inf  ;;  %7262 = vst [vmem:[#allocation53_spill] sm:$0xff] %v6178_v19 }
 0x2f0   : > { %v1581_v9 = vpop.f32.mrb[75].mxu1  ;;  %v6123_v11 = vsel %vm1421_vm11, %v4328_v53, -inf }
 0x2f1   : > { %v6140_v10 = vsel %vm7196_vm12, %v1581_v9, -inf }
 0x2f3   : > { %1641 = vmax.xlane.f32.xlu1 %v6118_v3  ;;  %1647 = vmax.xlane.f32.xlu0 %v6123_v11 }
 0x2f5   : > { %v4331_v62 = vpop.f32.mrb[76].mxu1 }
 0x2f6   : > { %v1594_v4 = vpop.f32.mrb[77].mxu1  ;;  %v6145_v14 = vsel %vm7195_vm13, %v4331_v62, -inf }
 0x2f7   : > { %1643 = vmax.xlane.f32.xlu0 %v6140_v10  ;;  %1653 = vmax.xlane.f32.xlu1 %v6145_v14  ;;  %v4332_v37 = vpop.f32.mrb[78].mxu1  ;;  %v6159_v49 = vsel %vm7194_vm14, %v1594_v4, -inf }
 0x2f8   : > { %v1597_v40 = vpop.f32.mrb[79].mxu1  ;;  %v6164_v20 = vsel %vm7193_vm15, %v4332_v37, -inf }
 0x2f9   : > { %v6173_v24 = vsel %vm7192_vm0, %v1597_v40, -inf  ;;  %v6198_v40 = vpop.permute.xlu0 %2299 }
 0x2fa   : > { %7263 = vst [vmem:[#allocation54_spill] sm:$0xff] %v6198_v40 }
 0x2fb   : > { %1649 = vmax.xlane.f32.xlu1 %v6159_v49  ;;  %1655 = vmax.xlane.f32.xlu0 %v6164_v20 }
 0x2fd   : > { %v6220_v28 = vpop.permute.xlu0 %2303 }
 0x2fe   : > { %7265 = vst [vmem:[#allocation56_spill] sm:$0xff] %v6220_v28 }
 0x2ff   : > { %1651 = vmax.xlane.f32.xlu0 %v6173_v24 }
 0x301   : > { %v6242_v51 = vpop.permute.xlu0 %2983 }
 0x302   : > { %7267 = vst [vmem:[#allocation58_spill] sm:$0xff] %v6242_v51 }
 0x34f   : > { %v4383_v54 = vpop.f32.mrb[32].mxu0 }
 0x350   : > { %v2052_v60 = vpop.f32.mrb[33].mxu0  ;;  %v6183_v53 = vsel %vm1412_vm1, %v4383_v54, -inf }
 0x351   : > { %v4384_v9 = vpop.f32.mrb[34].mxu0  ;;  %2135 = vmax.xlane.f32.xlu1 %v6183_v53  ;;  %v6195_v37 = vsel %vm1410_vm3, %v2052_v60, -inf  ;;  %v6211_v60 = vpop.permute.xlu1 %2297 }
 0x352   : > { %v2055_v62 = vpop.f32.mrb[35].mxu0  ;;  %v6189_v4 = vsel %vm1413_vm4, %v4384_v9, -inf  ;;  %7264 = vst [vmem:[#allocation55_spill] sm:$0xff] %v6211_v60 }
 0x353   : > { %2137 = vmax.xlane.f32.xlu0 %v6189_v4  ;;  %v6203_v54 = vsel %vm1411_vm2, %v2055_v62, -inf }
 0x355   : > { %2131 = vmax.xlane.f32.xlu1 %v6195_v37  ;;  %v6233_v5 = vpop.permute.xlu1 %2301 }
 0x356   : > { %7266 = vst [vmem:[#allocation57_spill] sm:$0xff] %v6233_v5 }
 0x357   : > { %v4387_v16 = vpop.f32.mrb[36].mxu0  ;;  %2133 = vmax.xlane.f32.xlu0 %v6203_v54 }
 0x358   : > { %v2068_v9 = vpop.f32.mrb[37].mxu0  ;;  %v6209_v30 = vsel %vm1416_vm5, %v4387_v16, -inf }
 0x359   : > { %v4388_v1 = vpop.f32.mrb[38].mxu0  ;;  %2143 = vmax.xlane.f32.xlu1 %v6209_v30  ;;  %v6225_v16 = vsel %vm1414_vm6, %v2068_v9, -inf }
 0x35a   : > { %v2071_v22 = vpop.f32.mrb[39].mxu0  ;;  %v6217_v62 = vsel %vm1417_vm7, %v4388_v1, -inf }
 0x35b   : > { %2145 = vmax.xlane.f32.xlu0 %v6217_v62  ;;  %v6231_v36 = vsel %vm1415_vm8, %v2071_v22, -inf }
 0x35d   : > { %2139 = vmax.xlane.f32.xlu1 %v6225_v16 }
 0x35f   : > { %v4391_v1 = vpop.f32.mrb[40].mxu0  ;;  %2141 = vmax.xlane.f32.xlu0 %v6231_v36 }
 0x360   : > { %v2084_v50 = vpop.f32.mrb[41].mxu0  ;;  %v6239_v12 = vsel %vm1420_vm9, %v4391_v1, -inf  ;;  %v6255_v1 = vpop.permute.xlu1 %2305 }
 0x361   : > { %v4392_v9 = vpop.f32.mrb[42].mxu0  ;;  %2151 = vmax.xlane.f32.xlu1 %v6239_v12  ;;  %v6253_v39 = vsel %vm7197_vm10, %v2084_v50, -inf  ;;  %7268 = vst [vmem:[#allocation59_spill] sm:$0xff] %v6255_v1 }
 0x362   : > { %v2087_v6 = vpop.f32.mrb[43].mxu0  ;;  %v6247_v22 = vsel %vm1421_vm11, %v4392_v9, -inf  ;;  %v6264_v9 = vpop.permute.xlu0 %2987 }
 0x363   : > { %2153 = vmax.xlane.f32.xlu0 %v6247_v22  ;;  %v6261_v51 = vsel %vm7196_vm12, %v2087_v6, -inf  ;;  %7269 = vst [vmem:[#allocation60_spill] sm:$0xff] %v6264_v9 }
 0x364   : > { %v6277_v35 = vpop.permute.xlu1 %2985 }
 0x365   : > { %2147 = vmax.xlane.f32.xlu1 %v6253_v39  ;;  %7270 = vst [vmem:[#allocation61_spill] sm:$0xff] %v6277_v35 }
 0x367   : > { %v4395_v7 = vpop.f32.mrb[44].mxu0  ;;  %2149 = vmax.xlane.f32.xlu0 %v6261_v51 }
 0x368   : > { %v2100_v59 = vpop.f32.mrb[45].mxu0  ;;  %v6269_v50 = vsel %vm7195_vm13, %v4395_v7, -inf }
 0x369   : > { %v4396_v18 = vpop.f32.mrb[46].mxu0  ;;  %2159 = vmax.xlane.f32.xlu1 %v6269_v50  ;;  %v6283_v58 = vsel %vm7194_vm14, %v2100_v59, -inf }
 0x36a   : > { %v2103_v55 = vpop.f32.mrb[47].mxu0  ;;  %v6275_v6 = vsel %vm7193_vm15, %v4396_v18, -inf }
 0x36b   : > { %2161 = vmax.xlane.f32.xlu0 %v6275_v6  ;;  %v6290_v27 = vsel %vm7192_vm0, %v2103_v55, -inf }
 0x36c   : > { %v1630_v9 = vpop.xlane.xlu0 %1629 }
 0x36d   : > { %v1659_v7 = vsub.f32 %v6014_v45, %v1630_v9  ;;  %2155 = vmax.xlane.f32.xlu1 %v6283_v58 }
 0x36f   : > { %v1677_v18 = vmul.f32 1.442695, %v1659_v7  ;;  %v1628_v1 = vpop.xlane.xlu1 %1627  ;;  %2157 = vmax.xlane.f32.xlu0 %v6290_v27 }
 0x370   : > { %v1626_v35 = vpop.xlane.xlu0 %1625  ;;  %v1658_v59 = vsub.f32 %v6030_v26, %v1628_v1 }
 0x371   : > { %4895 = vpow2.f32 %v1677_v18  ;;  %v1657_v28 = vsub.f32 %v6036_v23, %v1626_v35 }
 0x372   : > { %v1675_v7 = vmul.f32 1.442695, %v1658_v59 }
 0x373   : > { %v1673_v5 = vmul.f32 1.442695, %v1657_v28 }
 0x374   : > { %v1632_v40 = vpop.xlane.xlu0 %1631  ;;  %v1638_v45 = vpop.xlane.xlu1 %1637 }
 0x375   : > { %4897 = vpow2.f32 %v1673_v5  ;;  %v1660_v9 = vsub.f32 %v6052_v2, %v1632_v40  ;;  %v1663_v60 = vsub.f32 %v6057_v15, %v1638_v45 }
 0x377   : > { %v1679_v55 = vmul.f32 1.442695, %v1660_v9  ;;  %v1685_v19 = vmul.f32 1.442695, %v1663_v60 }
 0x378   : > { %v1634_v31 = vpop.xlane.xlu1 %1633  ;;  %v1640_v38 = vpop.xlane.xlu0 %1639 }
 0x379   : > { %4899 = vpow2.f32 %v1679_v55  ;;  %v1661_v18 = vsub.f32 %v6074_v43, %v1634_v31  ;;  %v1664_v35 = vsub.f32 %v6079_v61, %v1640_v38 }
 0x37a   : > { %4901 = vpow2.f32 %v1685_v19 }
 0x37b   : > { %v6299_v28 = vpop.eup %4895  ;;  %v1681_v26 = vmul.f32 1.442695, %v1661_v18  ;;  %4903 = vpow2.f32 %v1675_v7  ;;  %v1687_v2 = vmul.f32 1.442695, %v1664_v35 }
 0x37c   : > { %v1636_v5 = vpop.xlane.xlu0 %1635  ;;  %v1646_v23 = vpop.xlane.xlu1 %1645  ;;  %1709 = vadd.xlane.f32.xlu1 %v6299_v28 }
 0x37d   : > { %4905 = vpow2.f32 %v1681_v26  ;;  %v1662_v15 = vsub.f32 %v6096_v8, %v1636_v5  ;;  %v1667_v40 = vsub.f32 %v6101_v57, %v1646_v23 }
 0x37e   : > { %4907 = vpow2.f32 %v1687_v2 }
 0x37f   : > { %v6304_v60 = vpop.eup %4897  ;;  %v1693_v43 = vmul.f32 1.442695, %v1667_v40  ;;  %v1683_v31 = vmul.f32 1.442695, %v1662_v15 }
 0x380   : > { %v1642_v38 = vpop.xlane.xlu1 %1641  ;;  %v1648_v61 = vpop.xlane.xlu0 %1647  ;;  %1705 = vadd.xlane.f32.xlu1 %v6304_v60 }
 0x381   : > { %v1665_v19 = vsub.f32 %v6118_v3, %v1642_v38  ;;  %v1668_v1 = vsub.f32 %v6123_v11, %v1648_v61  ;;  %4909 = vpow2.f32 %v1693_v43 }
 0x382   : > { %4911 = vpow2.f32 %v1683_v31 }
 0x383   : > { %v6309_v59 = vpop.eup %4899  ;;  %v1689_v45 = vmul.f32 1.442695, %v1665_v19  ;;  %v1695_v9 = vmul.f32 1.442695, %v1668_v1 }
 0x384   : > { %v6311_v8 = vpop.eup %4901  ;;  %v1644_v57 = vpop.xlane.xlu0 %1643  ;;  %1711 = vadd.xlane.f32.xlu0 %v6309_v59 }
 0x385   : > { %4913 = vpow2.f32 %v1689_v45  ;;  %v1666_v55 = vsub.f32 %v6140_v10, %v1644_v57  ;;  %v1654_v7 = vpop.xlane.xlu1 %1653  ;;  %1717 = vadd.xlane.f32.xlu1 %v6311_v8  ;;  %v6316_v3 = vpop.eup %4903 }
 0x386   : > { %4915 = vpow2.f32 %v1695_v9  ;;  %v1671_v35 = vsub.f32 %v6145_v14, %v1654_v7 }
 0x387   : > { %v6318_v11 = vpop.eup %4905  ;;  %v1691_v18 = vmul.f32 1.442695, %v1666_v55 }
 0x388   : > { %1707 = vadd.xlane.f32.xlu0 %v6316_v3  ;;  %v6323_v26 = vpop.eup %4907  ;;  %v1656_v10 = vpop.xlane.xlu0 %1655  ;;  %v1701_v15 = vmul.f32 1.442695, %v1671_v35 }
 0x389   : > { %1713 = vadd.xlane.f32.xlu1 %v6318_v11  ;;  %v1650_v5 = vpop.xlane.xlu1 %1649  ;;  %4917 = vpow2.f32 %v1691_v18  ;;  %v1672_v38 = vsub.f32 %v6164_v20, %v1656_v10 }
 0x38a   : > { %v1669_v40 = vsub.f32 %v6159_v49, %v1650_v5  ;;  %4919 = vpow2.f32 %v1701_v15 }
 0x38b   : > { %v6325_v23 = vpop.eup %4909  ;;  %v1703_v9 = vmul.f32 1.442695, %v1672_v38 }
 0x38c   : > { %1719 = vadd.xlane.f32.xlu0 %v6323_v26  ;;  %v6329_v2 = vpop.eup %4911  ;;  %v1697_v19 = vmul.f32 1.442695, %v1669_v40  ;;  %v1652_v1 = vpop.xlane.xlu0 %1651 }
 0x38d   : > { %1725 = vadd.xlane.f32.xlu1 %v6325_v23  ;;  %v1670_v55 = vsub.f32 %v6173_v24, %v1652_v1 }
 0x38e   : > { %4921 = vpow2.f32 %v1697_v19 }
 0x38f   : > { %v6332_v43 = vpop.eup %4913  ;;  %v4447_v31 = vpop.f32.mrb[48].mxu0  ;;  %4923 = vpow2.f32 %v1703_v9  ;;  %v1699_v5 = vmul.f32 1.442695, %v1670_v55 }
 0x390   : > { %1715 = vadd.xlane.f32.xlu0 %v6329_v2  ;;  %v2575_v14 = vpop.f32.mrb[49].mxu0  ;;  %v6337_v57 = vpop.eup %4915  ;;  %v6343_v49 = vsel %vm1412_vm1, %v4447_v31, -inf }
 0x391   : > { %1721 = vadd.xlane.f32.xlu1 %v6332_v43  ;;  %v4448_v61 = vpop.f32.mrb[50].mxu0  ;;  %v6353_v18 = vsel %vm1410_vm3, %v2575_v14, -inf  ;;  %4925 = vpow2.f32 %v1699_v5 }
 0x392   : > { %v2578_v45 = vpop.f32.mrb[51].mxu0  ;;  %v6359_v15 = vsel %vm1413_vm4, %v4448_v61, -inf }
 0x393   : > { %v6347_v20 = vpop.eup %4917  ;;  %v6368_v31 = vsel %vm1411_vm2, %v2578_v45, -inf }
 0x394   : > { %1727 = vadd.xlane.f32.xlu0 %v6337_v57  ;;  %v6361_v40 = vpop.eup %4919 }
 0x395   : > { %2658 = vmax.xlane.f32.xlu1 %v6343_v49 }
 0x397   : > { %v4451_v7 = vpop.f32.mrb[52].mxu0 }
 0x398   : > { %1723 = vadd.xlane.f32.xlu0 %v6347_v20  ;;  %v2591_v35 = vpop.f32.mrb[53].mxu0  ;;  %v6370_v38 = vpop.eup %4921  ;;  %v6380_v55 = vsel %vm1416_vm5, %v4451_v7, -inf }
 0x399   : > { %2654 = vmax.xlane.f32.xlu1 %v6353_v18  ;;  %v4452_v10 = vpop.f32.mrb[54].mxu0  ;;  %v6374_v9 = vpop.eup %4923  ;;  %v6389_v42 = vsel %vm1414_vm6, %v2591_v35, -inf }
 0x39a   : > { %v2594_v24 = vpop.f32.mrb[55].mxu0  ;;  %v6395_v7 = vsel %vm1417_vm7, %v4452_v10, -inf }
 0x39b   : > { %v6383_v45 = vpop.eup %4925  ;;  %v6407_v35 = vsel %vm1415_vm8, %v2594_v24, -inf }
 0x39c   : > { %2660 = vmax.xlane.f32.xlu0 %v6359_v15 }
 0x39d   : > { %1733 = vadd.xlane.f32.xlu1 %v6361_v40 }
 0x39f   : > { %v4455_v14 = vpop.f32.mrb[56].mxu0 }
 0x3a0   : > { %2656 = vmax.xlane.f32.xlu0 %v6368_v31  ;;  %v2607_v19 = vpop.f32.mrb[57].mxu0 }
 0x3a1   : > { %1729 = vadd.xlane.f32.xlu1 %v6370_v38  ;;  %v4456_v61 = vpop.f32.mrb[58].mxu0 }
 0x3a2   : > { %v2610_v1 = vpop.f32.mrb[59].mxu0 }
 0x3a4   : > { %1735 = vadd.xlane.f32.xlu0 %v6374_v9 }
 0x3a5   : > { %2666 = vmax.xlane.f32.xlu1 %v6380_v55 }
 0x3a7   : > { %v4459_v5 = vpop.f32.mrb[60].mxu0 }
 0x3a8   : > { %1731 = vadd.xlane.f32.xlu0 %v6383_v45  ;;  %v2623_v33 = vpop.f32.mrb[61].mxu0  ;;  %v6401_v13 = vsel %vm7195_vm13, %v4459_v5, -inf  ;;  %v6419_v5 = vsel %vm1420_vm9, %v4455_v14, -inf  ;;  %v6437_v14 = vsel %vm1421_vm11, %v4456_v61, -inf }
 0x3a9   : > { %2662 = vmax.xlane.f32.xlu1 %v6389_v42  ;;  %v4460_v17 = vpop.f32.mrb[62].mxu0  ;;  %v6413_v10 = vsel %vm7194_vm14, %v2623_v33, -inf  ;;  %v6431_v33 = vsel %vm7197_vm10, %v2607_v19, -inf }
 0x3aa   : > { %v2626_v21 = vpop.f32.mrb[63].mxu0  ;;  %v6425_v24 = vsel %vm7193_vm15, %v4460_v17, -inf  ;;  %v6443_v17 = vsel %vm7196_vm12, %v2610_v1, -inf }
 0x3ab   : > { %v6449_v19 = vsel %vm7192_vm0, %v2626_v21, -inf  ;;  %vm7304_vm0 = vcmask 523264  }
 0x3ac   : > { %2668 = vmax.xlane.f32.xlu0 %v6395_v7  ;;  %vm7306_vm15 = vmmov %vm7304_vm0 }
 0x3ad   : > { %2682 = vmax.xlane.f32.xlu1 %v6401_v13  ;;  %vm7307_vm14 = vmmov %vm7304_vm0 }
 0x3ae   : > { %vm7309_vm13 = vmmov %vm7304_vm0 }
 0x3af   : > { %vm7310_vm12 = vmmov %vm7304_vm0 }
 0x3b0   : > { %2664 = vmax.xlane.f32.xlu0 %v6407_v35  ;;  %vm7311_vm10 = vmmov %vm7304_vm0 }
 0x3b1   : > { %2678 = vmax.xlane.f32.xlu1 %v6413_v10 }
 0x3b4   : > { %2674 = vmax.xlane.f32.xlu0 %v6419_v5 }
 0x3b5   : > { %2684 = vmax.xlane.f32.xlu1 %v6425_v24 }
 0x3b8   : > { %2670 = vmax.xlane.f32.xlu0 %v6431_v33 }
 0x3bc   : > { %2676 = vmax.xlane.f32.xlu0 %v6437_v14 }
 0x3c0   : > { %2672 = vmax.xlane.f32.xlu0 %v6443_v17 }
 0x3c4   : > { %2680 = vmax.xlane.f32.xlu0 %v6449_v19 }
 0x3de   : > { %v2136_v56 = vpop.xlane.xlu1 %2135 }
 0x3df   : > { %v2165_v61 = vsub.f32 %v6183_v53, %v2136_v56 }
 0x3e0   : > { %v2138_v25 = vpop.xlane.xlu0 %2137 }
 0x3e1   : > { %v2183_v52 = vmul.f32 1.442695, %v2165_v61  ;;  %v2166_v63 = vsub.f32 %v6189_v4, %v2138_v25 }
 0x3e2   : > { %v2132_v48 = vpop.xlane.xlu1 %2131 }
 0x3e3   : > { %4927 = vpow2.f32 %v2183_v52  ;;  %v2185_v1 = vmul.f32 1.442695, %v2166_v63  ;;  %v2163_v47 = vsub.f32 %v6195_v37, %v2132_v48 }
 0x3e4   : > { %v2134_v0 = vpop.xlane.xlu0 %2133 }
 0x3e5   : > { %v2179_v34 = vmul.f32 1.442695, %v2163_v47  ;;  %v2164_v41 = vsub.f32 %v6203_v54, %v2134_v0  ;;  %4929 = vpow2.f32 %v2185_v1 }
 0x3e6   : > { %v2144_v21 = vpop.xlane.xlu1 %2143 }
 0x3e7   : > { %4931 = vpow2.f32 %v2179_v34  ;;  %v2181_v44 = vmul.f32 1.442695, %v2164_v41  ;;  %v2169_v46 = vsub.f32 %v6209_v30, %v2144_v21 }
 0x3e8   : > { %v2146_v56 = vpop.xlane.xlu0 %2145 }
 0x3e9   : > { %v2191_v53 = vmul.f32 1.442695, %v2169_v46  ;;  %v2170_v61 = vsub.f32 %v6217_v62, %v2146_v56  ;;  %4933 = vpow2.f32 %v2181_v44 }
 0x3ea   : > { %v2140_v25 = vpop.xlane.xlu1 %2139 }
 0x3eb   : > { %v2167_v63 = vsub.f32 %v6225_v16, %v2140_v25  ;;  %4935 = vpow2.f32 %v2191_v53  ;;  %v2193_v4 = vmul.f32 1.442695, %v2170_v61 }
 0x3ec   : > { %v2142_v52 = vpop.xlane.xlu0 %2141 }
 0x3ed   : > { %v6459_v48 = vpop.eup %4927  ;;  %v2187_v47 = vmul.f32 1.442695, %v2167_v63  ;;  %v2168_v0 = vsub.f32 %v6231_v36, %v2142_v52 }
 0x3ee   : > { %v2152_v34 = vpop.xlane.xlu1 %2151  ;;  %2215 = vadd.xlane.f32.xlu0 %v6459_v48 }
 0x3ef   : > { %4937 = vpow2.f32 %v2187_v47  ;;  %v2189_v30 = vmul.f32 1.442695, %v2168_v0  ;;  %v2173_v46 = vsub.f32 %v6239_v12, %v2152_v34  ;;  %v6464_v41 = vpop.eup %4929 }
 0x3f0   : > { %v2154_v44 = vpop.xlane.xlu0 %2153  ;;  %4939 = vpow2.f32 %v2193_v4 }
 0x3f1   : > { %v6466_v37 = vpop.eup %4931  ;;  %v2199_v54 = vmul.f32 1.442695, %v2173_v46  ;;  %v2174_v62 = vsub.f32 %v6247_v22, %v2154_v44  ;;  %4941 = vpow2.f32 %v2189_v30 }
 0x3f2   : > { %v2148_v16 = vpop.xlane.xlu1 %2147  ;;  %2211 = vadd.xlane.f32.xlu1 %v6466_v37  ;;  %2217 = vadd.xlane.f32.xlu0 %v6464_v41 }
 0x3f3   : > { %v2171_v36 = vsub.f32 %v6253_v39, %v2148_v16  ;;  %v6472_v21 = vpop.eup %4933  ;;  %4943 = vpow2.f32 %v2199_v54  ;;  %v2201_v53 = vmul.f32 1.442695, %v2174_v62 }
 0x3f4   : > { %v2150_v1 = vpop.xlane.xlu0 %2149 }
 0x3f5   : > { %v2195_v12 = vmul.f32 1.442695, %v2171_v36  ;;  %v2172_v56 = vsub.f32 %v6261_v51, %v2150_v1  ;;  %v6477_v63 = vpop.eup %4935 }
 0x3f6   : > { %v2160_v61 = vpop.xlane.xlu1 %2159  ;;  %2213 = vadd.xlane.f32.xlu0 %v6472_v21 }
 0x3f7   : > { %4945 = vpow2.f32 %v2195_v12  ;;  %v2197_v22 = vmul.f32 1.442695, %v2172_v56  ;;  %v2177_v25 = vsub.f32 %v6269_v50, %v2160_v61 }
 0x3f8   : > { %v2162_v52 = vpop.xlane.xlu0 %2161  ;;  %4947 = vpow2.f32 %v2201_v53 }
 0x3f9   : > { %v6479_v47 = vpop.eup %4937  ;;  %v2207_v39 = vmul.f32 1.442695, %v2177_v25  ;;  %4949 = vpow2.f32 %v2197_v22  ;;  %v2178_v51 = vsub.f32 %v6275_v6, %v2162_v52 }
 0x3fa   : > { %v2156_v0 = vpop.xlane.xlu1 %2155  ;;  %2219 = vadd.xlane.f32.xlu1 %v6479_v47  ;;  %2223 = vadd.xlane.f32.xlu0 %v6477_v63  ;;  %v6485_v34 = vpop.eup %4939 }
 0x3fb   : > { %v2175_v4 = vsub.f32 %v6283_v58, %v2156_v0  ;;  %v6487_v30 = vpop.eup %4941  ;;  %4951 = vpow2.f32 %v2207_v39  ;;  %v2209_v44 = vmul.f32 1.442695, %v2178_v51 }
 0x3fc   : > { %v2158_v50 = vpop.xlane.xlu0 %2157 }
 0x3fd   : > { %v2203_v46 = vmul.f32 1.442695, %v2175_v4  ;;  %v2176_v54 = vsub.f32 %v6290_v27, %v2158_v50  ;;  %v6492_v62 = vpop.eup %4943 }
 0x3fe   : > { %2225 = vadd.xlane.f32.xlu1 %v6485_v34  ;;  %2221 = vadd.xlane.f32.xlu0 %v6487_v30 }
 0x3ff   : > { %4953 = vpow2.f32 %v2203_v46  ;;  %v2205_v58 = vmul.f32 1.442695, %v2176_v54 }
 0x400   : > { %4955 = vpow2.f32 %v2209_v44 }
 0x401   : > { %v6494_v6 = vpop.eup %4945  ;;  %4957 = vpow2.f32 %v2205_v58 }
 0x402   : > { %2227 = vadd.xlane.f32.xlu1 %v6494_v6  ;;  %2231 = vadd.xlane.f32.xlu0 %v6492_v62  ;;  %v6498_v16 = vpop.eup %4947 }
 0x403   : > { %v6500_v36 = vpop.eup %4949 }
 0x405   : > { %v6504_v27 = vpop.eup %4951 }
 0x406   : > { %2233 = vadd.xlane.f32.xlu1 %v6498_v16  ;;  %2229 = vadd.xlane.f32.xlu0 %v6500_v36  ;;  %7271 = vst [vmem:[#allocation62_spill] sm:$0xff] %v6504_v27 }
 0x409   : > { %v6506_v1 = vpop.eup %4953  ;;  %v1710_v12 = vpop.xlane.xlu1 %1709 }
 0x40a   : > { %2235 = vadd.xlane.f32.xlu1 %v6506_v1  ;;  %2239 = vadd.xlane.f32.xlu0 %v6504_v27  ;;  %v6510_v56 = vpop.eup %4955 }
 0x40b   : > { %v6513_v61 = vpop.eup %4957 }
 0x40c   : > { %7272 = vst [vmem:[#allocation63_spill] sm:$0xff] %v6513_v61 }
 0x40d   : > { %v1706_v53 = vpop.xlane.xlu1 %1705 }
 0x40e   : > { %2241 = vadd.xlane.f32.xlu0 %v6510_v56 }
 0x411   : > { %v1712_v22 = vpop.xlane.xlu0 %1711 }
 0x412   : > { %v1718_v25 = vpop.xlane.xlu1 %1717  ;;  %2237 = vadd.xlane.f32.xlu0 %v6513_v61  ;;  %4959 = vrcp.f32 %v1712_v22 }
 0x413   : > { %4961 = vrcp.f32 %v1706_v53 }
 0x414   : > { %4963 = vrcp.f32 %v1710_v12 }
 0x415   : > { %v1708_v52 = vpop.xlane.xlu0 %1707 }
 0x416   : > { %v1714_v39 = vpop.xlane.xlu1 %1713  ;;  %4965 = vrcp.f32 %v1708_v52 }
 0x419   : > { %v1720_v0 = vpop.xlane.xlu0 %1719 }
 0x41a   : > { %v1726_v51 = vpop.xlane.xlu1 %1725  ;;  %4967 = vrcp.f32 %v1720_v0 }
 0x41b   : > { %2989 = vrot.lane.b32.xlu1 %v5773_v32, %s5332_s23  ;;  %4969 = vrcp.f32 %v1714_v39 }
 0x41c   : > { %v4960_v4 = vpop.eup %4959  ;;  %4971 = vrcp.f32 %v1718_v25 }
 0x41d   : > { %v1716_v50 = vpop.xlane.xlu0 %1715  ;;  %v4962_v46 = vpop.eup %4961  ;;  %v1756_v12 = vmul.f32 %v4960_v4, %v6309_v59 }
 0x41e   : > { %v1722_v44 = vpop.xlane.xlu1 %1721  ;;  %4973 = vrcp.f32 %v1716_v50  ;;  %v4964_v54 = vpop.eup %4963  ;;  %v1753_v22 = vmul.f32 %v4962_v46, %v6304_v60 }
 0x41f   : > { %v1755_v0 = vmul.f32 %v4964_v54, %v6299_v28 }
 0x420   : > { %v4966_v58 = vpop.eup %4965 }
 0x421   : > { %v1728_v53 = vpop.xlane.xlu0 %1727  ;;  %v1754_v52 = vmul.f32 %v4966_v58, %v6316_v3  ;;  %v1770_v39 = vpack.c.bf16 %v1756_v12, %v1755_v0  ;;  %v7273_v3 = vld [vmem:[#allocation26_spill] sm:$0xff] }
 0x422   : > { %v2659_v29 = vpop.xlane.xlu1 %2658  ;;  %4975 = vrcp.f32 %v1728_v53 }
 0x423   : > { %v2688_v32 = vsub.f32 %v6343_v49, %v2659_v29  ;;  %v1769_v25 = vpack.c.bf16 %v1754_v52, %v1753_v22  ;;  %4977 = vrcp.f32 %v1722_v44  ;;  %v7274_v29 = vld [vmem:[#allocation52_spill] sm:$0xff]  ;;  %v7275_v52 = vld [vmem:[#allocation53_spill] sm:$0xff] }
 0x424   : > { %v4968_v27 = vpop.eup %4967  ;;  %4979 = vrcp.f32 %v1726_v51 }
 0x425   : > { %v2706_v50 = vmul.f32 1.442695, %v2688_v32  ;;  %4349 = vmatprep.mubr.bf16.mxu1 %v1769_v25  ;;  %v1724_v61 = vpop.xlane.xlu0 %1723  ;;  %v4970_v59 = vpop.eup %4969  ;;  %v1760_v49 = vmul.f32 %v4968_v27, %v6323_v26 }
 0x426   : > { %4981 = vrcp.f32 %v1724_v61  ;;  %v2655_v4 = vpop.xlane.xlu1 %2654  ;;  %4350 = vmatmul.mubr.bf16.vlgmr.msra.gmra.mrb[80].mxu1 %v1770_v39  ;;  %v4972_v60 = vpop.eup %4971  ;;  %v1757_v54 = vmul.f32 %v4970_v59, %v6318_v11  ;;  %v7276_v39 = vld [vmem:[#allocation55_spill] sm:$0xff] }
 0x427   : > { %4983 = vpow2.f32 %v2706_v50  ;;  %v2686_v28 = vsub.f32 %v6353_v18, %v2655_v4  ;;  %4398 = vmatpush3.bf16.msra.mxu1 %v7273_v3  ;;  %v1759_v53 = vmul.f32 %v4972_v60, %v6311_v8 }
 0x428   : > { %v4974_v46 = vpop.eup %4973  ;;  %4399 = vmatprep.subr.bf16.mxu1 %v7274_v29 }
 0x429   : > { %v2702_v44 = vmul.f32 1.442695, %v2686_v28  ;;  %v2661_v51 = vpop.xlane.xlu0 %2660  ;;  %v1758_v58 = vmul.f32 %v4974_v46, %v6329_v2  ;;  %v1772_v0 = vpack.c.bf16 %v1760_v49, %v1759_v53 }
 0x42a   : > { %v1734_v61 = vpop.xlane.xlu1 %1733  ;;  %v2689_v12 = vsub.f32 %v6359_v15, %v2661_v51  ;;  %v7278_v51 = vld [vmem:[#allocation57_spill] sm:$0xff] }
 0x42b   : > { %4985 = vpow2.f32 %v2702_v44  ;;  %4400 = vmatpush3.bf16.msra.mxu1 %v7274_v29  ;;  %v1771_v18 = vpack.c.bf16 %v1758_v58, %v1757_v54 }
 0x42c   : > { %v2708_v22 = vmul.f32 1.442695, %v2689_v12  ;;  %4401 = vmatprep.subr.bf16.mxu1 %v7275_v52  ;;  %v4976_v26 = vpop.eup %4975 }
 0x42d   : > { %4353 = vmatprep.mubr.bf16.mxu1 %v1771_v18  ;;  %v2657_v27 = vpop.xlane.xlu0 %2656  ;;  %v4978_v32 = vpop.eup %4977  ;;  %v1764_v50 = vmul.f32 %v4976_v26, %v6337_v57  ;;  %v7277_v57 = vld [vmem:[#allocation54_spill] sm:$0xff]  ;;  %v7279_v18 = vld [vmem:[#allocation56_spill] sm:$0xff]  ;;  %v7280_v26 = vld [vmem:[#allocation59_spill] sm:$0xff] }
 0x42e   : > { %4987 = vpow2.f32 %v2708_v22  ;;  %v1730_v11 = vpop.xlane.xlu1 %1729  ;;  %v2687_v2 = vsub.f32 %v6368_v31, %v2657_v27  ;;  %4354 = vmatmul.mubr.bf16.gmra.mrb[84].mxu1 %v1772_v0  ;;  %v4980_v15 = vpop.eup %4979  ;;  %v1761_v60 = vmul.f32 %v4978_v32, %v6332_v43 }
 0x42f   : > { %4402 = vmatpush3.bf16.msra.mxu1 %v7275_v52  ;;  %v1763_v31 = vmul.f32 %v4980_v15, %v6325_v23 }
 0x430   : > { %v4982_v8 = vpop.eup %4981  ;;  %v2704_v25 = vmul.f32 1.442695, %v2687_v2  ;;  %4403 = vmatprep.subr.bf16.mxu1 %v7276_v39 }
 0x431   : > { %v6537_v59 = vpop.eup %4983  ;;  %v1736_v4 = vpop.xlane.xlu0 %1735  ;;  %v1762_v28 = vmul.f32 %v4982_v8, %v6347_v20  ;;  %v1774_v29 = vpack.c.bf16 %v1764_v50, %v1763_v31  ;;  %v7281_v50 = vld [vmem:[#allocation14_spill] sm:$0xff] }
 0x432   : > { %4989 = vpow2.f32 %v2704_v25  ;;  %v6541_v3 = vpop.xlane.xlu1 %2666  ;;  %2738 = vadd.xlane.f32.xlu0 %v6537_v59 }
 0x433   : > { %4991 = vrcp.f32 %v1736_v4  ;;  %4404 = vmatpush3.bf16.msra.mxu1 %v7276_v39  ;;  %v1773_v46 = vpack.c.bf16 %v1762_v28, %v1761_v60 }
 0x434   : > { %4993 = vrcp.f32 %v1730_v11  ;;  %4405 = vmatprep.subr.bf16.mxu1 %v7277_v57 }
 0x435   : > { %v6547_v49 = vpop.eup %4985  ;;  %4995 = vrcp.f32 %v1734_v61  ;;  %4357 = vmatprep.mubr.bf16.mxu1 %v1773_v46  ;;  %v1732_v43 = vpop.xlane.xlu0 %1731 }
 0x436   : > { %4997 = vrcp.f32 %v1732_v43  ;;  %v2663_v20 = vpop.xlane.xlu1 %2662  ;;  %2734 = vadd.xlane.f32.xlu0 %v6547_v49  ;;  %4358 = vmatmul.mubr.bf16.gmra.mrb[88].mxu1 %v1774_v29 }
 0x437   : > { %v2690_v23 = vsub.f32 %v6389_v42, %v2663_v20  ;;  %4406 = vmatpush3.bf16.msra.mxu1 %v7277_v57 }
 0x438   : > { %v6552_v44 = vpop.eup %4987  ;;  %4407 = vmatprep.subr.bf16.mxu1 %v7278_v51 }
 0x439   : > { %v2710_v54 = vmul.f32 1.442695, %v2690_v23  ;;  %v2669_v58 = vpop.xlane.xlu0 %2668 }
 0x43a   : > { %v2693_v12 = vsub.f32 %v6395_v7, %v2669_v58  ;;  %2740 = vadd.xlane.f32.xlu0 %v6552_v44 }
 0x43b   : > { %4999 = vpow2.f32 %v2710_v54  ;;  %4408 = vmatpush3.bf16.msra.mxu1 %v7278_v51 }
 0x43c   : > { %v6558_v61 = vpop.eup %4989  ;;  %v2716_v53 = vmul.f32 1.442695, %v2693_v12  ;;  %4409 = vmatprep.subr.bf16.mxu1 %v7279_v18  ;;  %v2683_v12 = vpop.xlane.xlu1 %2682 }
 0x43d   : > { %v4992_v42 = vpop.eup %4991  ;;  %v2665_v22 = vpop.xlane.xlu0 %2664 }
 0x43e   : > { %v4994_v52 = vpop.eup %4993  ;;  %5001 = vpow2.f32 %v2716_v53  ;;  %2736 = vadd.xlane.f32.xlu0 %v6558_v61  ;;  %v1768_v27 = vmul.f32 %v4992_v42, %v6374_v9 }
 0x43f   : > { %v4996_v0 = vpop.eup %4995  ;;  %4410 = vmatpush3.bf16.msra.mxu1 %v7279_v18  ;;  %v1765_v11 = vmul.f32 %v4994_v52, %v6370_v38  ;;  %v2691_v18 = vsub.f32 %v6407_v35, %v2665_v22  ;;  %v2700_v52 = vsub.f32 %v6401_v13, %v2683_v12  ;;  %v7284_v22 = vld [vmem:[#allocation27_spill] sm:$0xff] }
 0x440   : > { %v4998_v7 = vpop.eup %4997  ;;  %4411 = vmatprep.subr.bf16.mxu1 %v7280_v26  ;;  %v1767_v8 = vmul.f32 %v4996_v0, %v6361_v40  ;;  %v2679_v42 = vpop.xlane.xlu1 %2678 }
 0x441   : > { %v2675_v32 = vpop.xlane.xlu0 %2674  ;;  %v1766_v2 = vmul.f32 %v4998_v7, %v6383_v45  ;;  %v2712_v0 = vmul.f32 1.442695, %v2691_v18  ;;  %v2730_v7 = vmul.f32 1.442695, %v2700_v52 }
 0x442   : > { %v2696_v15 = vsub.f32 %v6419_v5, %v2675_v32  ;;  %v1776_v4 = vpack.c.bf16 %v1768_v27, %v1767_v8  ;;  %v7286_v8 = vld [vmem:[#allocation31_spill] sm:$0xff] }
 0x443   : > { %4412 = vmatpush3.bf16.msra.mxu1 %v7280_v26  ;;  %v1775_v25 = vpack.c.bf16 %v1766_v2, %v1765_v11  ;;  %v2698_v26 = vsub.f32 %v6413_v10, %v2679_v42  ;;  %v7283_v11 = vld [vmem:[#allocation22_spill] sm:$0xff] }
 0x444   : > { %v2722_v39 = vmul.f32 1.442695, %v2696_v15  ;;  %4461 = vmatprep.subr.bf16.mxu1 %v7281_v50  ;;  %v2685_v27 = vpop.xlane.xlu1 %2684 }
 0x445   : > { %v6571_v60 = vpop.eup %4999  ;;  %4361 = vmatprep.mubr.bf16.mxu1 %v1775_v25  ;;  %v2671_v9 = vpop.xlane.xlu0 %2670  ;;  %v2726_v32 = vmul.f32 1.442695, %v2698_v26 }
 0x446   : > { %5003 = vpow2.f32 %v2722_v39  ;;  %v2694_v38 = vsub.f32 %v6431_v33, %v2671_v9  ;;  %2742 = vadd.xlane.f32.xlu1 %v6571_v60  ;;  %4362 = vmatmul.mubr.bf16.gmra.mrb[92].mxu1 %v1776_v4  ;;  %v7287_v9 = vld [vmem:[#allocation33_spill] sm:$0xff] }
 0x448   : > { %v6575_v45 = vpop.eup %5001  ;;  %v2718_v40 = vmul.f32 1.442695, %v2694_v38 }
 0x449   : > { %v2677_v5 = vpop.xlane.xlu0 %2676 }
 0x44a   : > { %5005 = vpow2.f32 %v2718_v40  ;;  %v2697_v28 = vsub.f32 %v6437_v14, %v2677_v5  ;;  %2748 = vadd.xlane.f32.xlu1 %v6575_v45  ;;  %v7282_v14 = vld [vmem:[#allocation21_spill] sm:$0xff]  ;;  %v7288_v40 = vld [vmem:[#allocation15_spill] sm:$0xff] }
 0x44c   : > { %v2724_v31 = vmul.f32 1.442695, %v2697_v28 }
 0x44d   : > { %v2673_v46 = vpop.xlane.xlu0 %2672 }
 0x44e   : > { %5007 = vpow2.f32 %v2724_v31  ;;  %v2695_v57 = vsub.f32 %v6443_v17, %v2673_v46 }
 0x450   : > { %v6580_v29 = vpop.eup %5003  ;;  %v2720_v33 = vmul.f32 1.442695, %v2695_v57 }
 0x451   : > { %2754 = vadd.xlane.f32.xlu1 %v6580_v29  ;;  %v2681_v43 = vpop.xlane.xlu0 %2680 }
 0x452   : > { %5009 = vpow2.f32 %v2720_v33  ;;  %v2699_v20 = vsub.f32 %v6449_v19, %v2681_v43  ;;  %v2692_v19 = vsub.f32 %v6380_v55, %v6541_v3  ;;  %v2701_v55 = vsub.f32 %v6425_v24, %v2685_v27  ;;  %v7285_v24 = vld [vmem:[#allocation29_spill] sm:$0xff] }
 0x454   : > { %v6584_v23 = vpop.eup %5005  ;;  %v2728_v51 = vmul.f32 1.442695, %v2699_v20  ;;  %2991 = vrot.lane.b32.xlu0 %v7282_v14, %s5332_s23  ;;  %v2714_v53 = vmul.f32 1.442695, %v2692_v19  ;;  %v2732_v35 = vmul.f32 1.442695, %v2701_v55 }
 0x455   : > { %2750 = vadd.xlane.f32.xlu1 %v6584_v23 }
 0x456   : > { %5011 = vpow2.f32 %v2728_v51 }
 0x457   : > { %5013 = vpow2.f32 %v2714_v53 }
 0x458   : > { %v6589_v54 = vpop.eup %5007  ;;  %5015 = vpow2.f32 %v2712_v0 }
 0x459   : > { %2756 = vadd.xlane.f32.xlu1 %v6589_v54  ;;  %5017 = vpow2.f32 %v2730_v7 }
 0x45a   : > { %5019 = vpow2.f32 %v2726_v32 }
 0x45b   : > { %5021 = vpow2.f32 %v2732_v35  ;;  %v7289_v35 = vld [vmem:[#allocation23_spill] sm:$0xff] }
 0x45c   : > { %v6592_v17 = vpop.eup %5009 }
 0x45d   : > { %2752 = vadd.xlane.f32.xlu1 %v6592_v17 }
 0x460   : > { %v6595_v58 = vpop.eup %5011 }
 0x461   : > { %2760 = vadd.xlane.f32.xlu1 %v6595_v58  ;;  %v6604_v3 = vpop.eup %5013 }
 0x462   : > { %v6609_v13 = vpop.eup %5015 }
 0x463   : > { %v6614_v10 = vpop.eup %5017 }
 0x464   : > { %v6619_v15 = vpop.eup %5019 }
 0x465   : > { %v6624_v4 = vpop.eup %5021 }
 0x472   : > { %2993 = vrot.lane.b32.xlu1 %v7283_v11, %s5332_s23 }
 0x473   : > { %2746 = vadd.xlane.f32.xlu0 %v6604_v3 }
 0x476   : > { %2959 = vrot.lane.b32.xlu1 %v7284_v22, %s5332_s23 }
 0x477   : > { %2744 = vadd.xlane.f32.xlu0 %v6609_v13 }
 0x47a   : > { %2963 = vrot.lane.b32.xlu1 %v7285_v24, %s5332_s23  ;;  %v7290_v24 = vld [vmem:[#allocation16_spill] sm:$0xff] }
 0x47b   : > { %2762 = vadd.xlane.f32.xlu0 %v6614_v10  ;;  %v2216_v2 = vpop.xlane.xlu0 %2215 }
 0x47e   : > { %2967 = vrot.lane.b32.xlu1 %v7286_v8, %s5332_s23 }
 0x47f   : > { %2758 = vadd.xlane.f32.xlu0 %v6619_v15  ;;  %v2212_v25 = vpop.xlane.xlu1 %2211  ;;  %v2218_v39 = vpop.xlane.xlu0 %2217 }
 0x480   : > { %5023 = vrcp.f32 %v2218_v39 }
 0x481   : > { %5025 = vrcp.f32 %v2212_v25 }
 0x482   : > { %2971 = vrot.lane.b32.xlu1 %v7287_v9, %s5332_s23  ;;  %5027 = vrcp.f32 %v2216_v2  ;;  %v7292_v9 = vld [vmem:[#allocation17_spill] sm:$0xff] }
 0x483   : > { %2764 = vadd.xlane.f32.xlu0 %v6624_v4  ;;  %v2214_v38 = vpop.xlane.xlu0 %2213 }
 0x484   : > { %5029 = vrcp.f32 %v2214_v38 }
 0x486   : > { %3322 = vrot.lane.b32.xlu1 %v7288_v40, %s5332_s23 }
 0x487   : > { %v2220_v5 = vpop.xlane.xlu1 %2219  ;;  %v2224_v28 = vpop.xlane.xlu0 %2223 }
 0x488   : > { %5031 = vrcp.f32 %v2224_v28 }
 0x489   : > { %5033 = vrcp.f32 %v2220_v5 }
 0x48a   : > { %v5024_v31 = vpop.eup %5023 }
 0x48b   : > { %v2226_v46 = vpop.xlane.xlu1 %2225  ;;  %v2222_v57 = vpop.xlane.xlu0 %2221  ;;  %v2262_v51 = vmul.f32 %v5024_v31, %v6464_v41 }
 0x48c   : > { %v5026_v33 = vpop.eup %5025  ;;  %5035 = vrcp.f32 %v2226_v46  ;;  %v7293_v46 = vld [vmem:[#allocation28_spill] sm:$0xff] }
 0x48d   : > { %v5028_v43 = vpop.eup %5027  ;;  %5037 = vrcp.f32 %v2222_v57  ;;  %v2259_v12 = vmul.f32 %v5026_v33, %v6466_v37 }
 0x48e   : > { %v5030_v20 = vpop.eup %5029  ;;  %v2261_v18 = vmul.f32 %v5028_v43, %v6459_v48  ;;  %v7294_v43 = vld [vmem:[#allocation18_spill] sm:$0xff] }
 0x48f   : > { %v2228_v14 = vpop.xlane.xlu1 %2227  ;;  %v2232_v19 = vpop.xlane.xlu0 %2231  ;;  %v2260_v53 = vmul.f32 %v5030_v20, %v6472_v21  ;;  %v7295_v20 = vld [vmem:[#allocation30_spill] sm:$0xff] }
 0x490   : > { %5039 = vrcp.f32 %v2232_v19  ;;  %v2276_v52 = vpack.c.bf16 %v2262_v51, %v2261_v18  ;;  %v7297_v51 = vld [vmem:[#allocation32_spill] sm:$0xff]  ;;  %v7299_v18 = vld [vmem:[#allocation63_spill] sm:$0xff] }
 0x491   : > { %v2275_v42 = vpack.c.bf16 %v2260_v53, %v2259_v12  ;;  %5041 = vrcp.f32 %v2228_v14  ;;  %v7298_v12 = vld [vmem:[#allocation20_spill] sm:$0xff] }
 0x492   : > { %v5032_v26 = vpop.eup %5031 }
 0x493   : > { %v2234_v0 = vpop.xlane.xlu1 %2233  ;;  %4413 = vmatprep.mubr.bf16.mxu1 %v2275_v42  ;;  %v2230_v7 = vpop.xlane.xlu0 %2229  ;;  %v2265_v48 = vmul.f32 %v5032_v26, %v6477_v63 }
 0x494   : > { %5043 = vrcp.f32 %v2234_v0  ;;  %4414 = vmatmul.mubr.bf16.vlgmr.msra.gmra.mrb[96].mxu1 %v2276_v52  ;;  %v5034_v27 = vpop.eup %5033  ;;  %v7300_v52 = vld [vmem:[#allocation62_spill] sm:$0xff] }
 0x495   : > { %5045 = vrcp.f32 %v2230_v7  ;;  %4462 = vmatpush3.bf16.msra.mxu1 %v7281_v50  ;;  %v2263_v55 = vmul.f32 %v5034_v27, %v6479_v47  ;;  %v7301_v7 = vld [vmem:[#allocation34_spill] sm:$0xff] }
 0x496   : > { %v5036_v41 = vpop.eup %5035  ;;  %4463 = vmatprep.subr.bf16.mxu1 %v7288_v40 }
 0x497   : > { %v5038_v37 = vpop.eup %5037  ;;  %v2240_v21 = vpop.xlane.xlu0 %2239  ;;  %v2266_v32 = vmul.f32 %v5036_v41, %v6485_v34  ;;  %v7291_v34 = vld [vmem:[#allocation24_spill] sm:$0xff]  ;;  %v7302_v41 = vld [vmem:[#allocation25_spill] sm:$0xff] }
 0x498   : > { %v2264_v11 = vmul.f32 %v5038_v37, %v6487_v30  ;;  %v2236_v8 = vpop.xlane.xlu1 %2235 }
 0x499   : > { %2995 = vrot.lane.b32.xlu0 %v7289_v35, %s5332_s23  ;;  %4464 = vmatpush3.bf16.msra.mxu1 %v7288_v40  ;;  %v2278_v22 = vpack.c.bf16 %v2266_v32, %v2265_v48 }
 0x49a   : > { %4465 = vmatprep.subr.bf16.mxu1 %v7290_v24  ;;  %v2277_v2 = vpack.c.bf16 %v2264_v11, %v2263_v55  ;;  %v5040_v39 = vpop.eup %5039 }
 0x49b   : > { %v2242_v25 = vpop.xlane.xlu0 %2241  ;;  %v5042_v63 = vpop.eup %5041  ;;  %v2269_v40 = vmul.f32 %v5040_v39, %v6492_v62 }
 0x49c   : > { %4417 = vmatprep.mubr.bf16.mxu1 %v2277_v2  ;;  %5047 = vrcp.f32 %v2242_v25  ;;  %v2267_v28 = vmul.f32 %v5042_v63, %v6494_v6  ;;  %v7296_v6 = vld [vmem:[#allocation19_spill] sm:$0xff] }
 0x49d   : > { %2997 = vrot.lane.b32.xlu0 %v7291_v34, %s5332_s23  ;;  %4418 = vmatmul.mubr.bf16.gmra.mrb[100].mxu1 %v2278_v22  ;;  %5049 = vrcp.f32 %v2236_v8 }
 0x49e   : > { %v5044_v47 = vpop.eup %5043  ;;  %4466 = vmatpush3.bf16.msra.mxu1 %v7290_v24  ;;  %5051 = vrcp.f32 %v2240_v21 }
 0x49f   : > { %v5046_v30 = vpop.eup %5045  ;;  %4467 = vmatprep.subr.bf16.mxu1 %v7292_v9  ;;  %v2238_v38 = vpop.xlane.xlu0 %2237  ;;  %v2270_v5 = vmul.f32 %v5044_v47, %v6498_v16 }
 0x4a0   : > { %5053 = vrcp.f32 %v2238_v38  ;;  %v2268_v31 = vmul.f32 %v5046_v30, %v6500_v36  ;;  %v7305_v30 = vld [vmem:[#allocation61_spill] sm:$0xff] }
 0x4a1   : > { %2961 = vrot.lane.b32.xlu0 %v7293_v46, %s5332_s23  ;;  %v2280_v57 = vpack.c.bf16 %v2270_v5, %v2269_v40 }
 0x4a2   : > { %4468 = vmatpush3.bf16.msra.mxu1 %v7292_v9  ;;  %v2279_v33 = vpack.c.bf16 %v2268_v31, %v2267_v28 }
 0x4a3   : > { %4469 = vmatprep.subr.bf16.mxu1 %v7294_v43 }
 0x4a4   : > { %4421 = vmatprep.mubr.bf16.mxu1 %v2279_v33 }
 0x4a5   : > { %2965 = vrot.lane.b32.xlu0 %v7295_v20, %s5332_s23  ;;  %4422 = vmatmul.mubr.bf16.gmra.mrb[104].mxu1 %v2280_v57 }
 0x4a6   : > { %4470 = vmatpush3.bf16.msra.mxu1 %v7294_v43  ;;  %v5048_v62 = vpop.eup %5047 }
 0x4a7   : > { %4471 = vmatprep.subr.bf16.mxu1 %v7296_v6  ;;  %v5050_v16 = vpop.eup %5049  ;;  %v2274_v19 = vmul.f32 %v5048_v62, %v6510_v56 }
 0x4a8   : > { %v5052_v36 = vpop.eup %5051  ;;  %v2271_v53 = vmul.f32 %v5050_v16, %v6506_v1  ;;  %v7303_v1 = vld [vmem:[#allocation58_spill] sm:$0xff] }
 0x4a9   : > { %2969 = vrot.lane.b32.xlu0 %v7297_v51, %s5332_s23  ;;  %v2273_v0 = vmul.f32 %v5052_v36, %v7300_v52  ;;  %v3024_v47 = vsel %vm7304_vm0, %v7303_v1, 0 }
 0x4aa   : > { %v5054_v14 = vpop.eup %5053  ;;  %4472 = vmatpush3.bf16.msra.mxu1 %v7296_v6 }
 0x4ab   : > { %4473 = vmatprep.subr.bf16.mxu1 %v7298_v12  ;;  %v2272_v42 = vmul.f32 %v5054_v14, %v7299_v18  ;;  %v2282_v27 = vpack.c.bf16 %v2274_v19, %v2273_v0 }
 0x4ad   : > { %2973 = vrot.lane.b32.xlu0 %v7301_v7, %s5332_s23  ;;  %v2281_v26 = vpack.c.bf16 %v2272_v42, %v2271_v53 }
 0x4ae   : > { %4474 = vmatpush3.bf16.msra.mxu1 %v7298_v12 }
 0x4af   : > { %4475 = vmatprep.subr.bf16.mxu1 %v7302_v41  ;;  %4425 = vmatprep.mubr.bf16.mxu1 %v2281_v26 }
 0x4b0   : > { %4426 = vmatmul.mubr.bf16.gmra.mrb[108].mxu1 %v2282_v27 }
 0x4b1   : > { %3320 = vrot.lane.b32.xlu0 %v7281_v50, %s5332_s23  ;;  %v2990_v50 = vpop.permute.xlu1 %2989 }
 0x4b2   : > { %4476 = vmatpush3.bf16.msra.mxu1 %v7302_v41  ;;  %v3033_v5 = vsel %vm7304_vm0, %v2990_v50, 0 }
 0x4b3   : > { %4581 = vmatprep.subr.msk.bf16.mxu1 %vm7304_vm0, %v7303_v1 }
 0x4b5   : > { %3324 = vrot.lane.b32.xlu0 %v7290_v24, %s5332_s23 }
 0x4b9   : > { %3326 = vrot.lane.b32.xlu0 %v7292_v9, %s5332_s23 }
 0x4bf   : > { %v2739_v56 = vpop.xlane.xlu0 %2738 }
 0x4c3   : > { %v2735_v37 = vpop.xlane.xlu0 %2734 }
 0x4c7   : > { %v2741_v21 = vpop.xlane.xlu0 %2740 }
 0x4c8   : > { %5055 = vrcp.f32 %v2741_v21 }
 0x4c9   : > { %5057 = vrcp.f32 %v2735_v37 }
 0x4ca   : > { %5059 = vrcp.f32 %v2739_v56 }
 0x4cb   : > { %v2737_v48 = vpop.xlane.xlu0 %2736 }
 0x4cc   : > { %5061 = vrcp.f32 %v2737_v48 }
 0x4cf   : > { %v2992_v28 = vpop.permute.xlu0 %2991 }
 0x4d2   : > { %v5056_v32 = vpop.eup %5055 }
 0x4d3   : > { %v5058_v55 = vpop.eup %5057  ;;  %v2743_v35 = vpop.xlane.xlu1 %2742  ;;  %v2785_v2 = vmul.f32 %v5056_v32, %v6552_v44 }
 0x4d4   : > { %v5060_v11 = vpop.eup %5059  ;;  %v2782_v24 = vmul.f32 %v5058_v55, %v6547_v49  ;;  %v3027_v49 = vsel %vm7307_vm14, %v7305_v30, 0  ;;  %vm7313_vm14 = vmmov %vm7304_vm0  ;;  %5063 = vrcp.f32 %v2743_v35 }
 0x4d5   : > { %v2784_v25 = vmul.f32 %v5060_v11, %v6537_v59  ;;  %v3036_v20 = vsel %vm7313_vm14, %v2992_v28, 0  ;;  %vm7318_vm14 = vmmov %vm7304_vm0 }
 0x4d6   : > { %v5062_v22 = vpop.eup %5061 }
 0x4d7   : > { %v2783_v8 = vmul.f32 %v5062_v22, %v6558_v61  ;;  %v2799_v63 = vpack.c.bf16 %v2785_v2, %v2784_v25  ;;  %v2749_v34 = vpop.xlane.xlu1 %2748  ;;  %v7308_v61 = vld [vmem:[#allocation60_spill] sm:$0xff] }
 0x4d8   : > { %v3030_v38 = vsel %vm7310_vm12, %v7308_v61, 0  ;;  %vm7314_vm12 = vmmov %vm7304_vm0  ;;  %5065 = vrcp.f32 %v2749_v34 }
 0x4d9   : > { %v2798_v39 = vpack.c.bf16 %v2783_v8, %v2782_v24 }
 0x4db   : > { %4477 = vmatprep.mubr.bf16.mxu1 %v2798_v39 }
 0x4dc   : > { %4478 = vmatmul.mubr.bf16.vlgmr.msra.gmra.mrb[112].mxu1 %v2799_v63 }
 0x4dd   : > { %4494 = vmatpush3.bf16.xpose.msra.mxu1 %v3024_v47 }
 0x4de   : > { %4582 = vmatprep.subr.msk.bf16.mxu1 %vm7306_vm15, %v7305_v30  ;;  %v2755_v9 = vpop.xlane.xlu1 %2754  ;;  %vm7312_vm15 = vmmov %vm7304_vm0  ;;  %v5064_v56 = vpop.eup %5063 }
 0x4df   : > { %v2786_v39 = vmul.f32 %v5064_v56, %v6571_v60 }
 0x4e2   : > { %v2751_v44 = vpop.xlane.xlu1 %2750  ;;  %v5066_v21 = vpop.eup %5065 }
 0x4e3   : > { %v2789_v47 = vmul.f32 %v5066_v21, %v6575_v45 }
 0x4e5   : > { %4496 = vmatpush3.bf16.xpose.msra.mxu1 %v3027_v49 }
 0x4e6   : > { %4583 = vmatprep.subr.msk.bf16.mxu1 %vm7309_vm13, %v7308_v61  ;;  %v2757_v59 = vpop.xlane.xlu1 %2756  ;;  %vm7316_vm13 = vmmov %vm7304_vm0 }
 0x4ea   : > { %v2753_v40 = vpop.xlane.xlu1 %2752 }
 0x4ed   : > { %4498 = vmatpush3.bf16.xpose.msra.mxu1 %v3030_v38 }
 0x4ee   : > { %4584 = vmatprep.subr.msk.bf16.mxu1 %vm7311_vm10, %v2990_v50  ;;  %v2761_v31 = vpop.xlane.xlu1 %2760  ;;  %vm7315_vm10 = vmmov %vm7304_vm0 }
 0x4f2   : > { %v2994_v36 = vpop.permute.xlu1 %2993 }
 0x4f3   : > { %v3039_v42 = vsel %vm7304_vm0, %v2994_v36, 0 }
 0x4f5   : > { %4500 = vmatpush3.bf16.xpose.msra.mxu1 %v3033_v5 }
 0x4f6   : > { %4585 = vmatprep.subr.msk.bf16.mxu1 %vm7312_vm15, %v2992_v28  ;;  %vm7317_vm15 = vmmov %vm7304_vm0  ;;  %v2960_v38 = vpop.permute.xlu1 %2959 }
 0x4f9   : > { %v4351_v46 = vpop.f32.mrb[80].mxu1 }
 0x4fa   : > { %v1811_v57 = vpop.f32.mrb[81].mxu1 }
 0x4fb   : > { %v4352_v33 = vpop.f32.mrb[82].mxu1 }
 0x4fc   : > { %v1875_v62 = vpack.c.bf16 %v4352_v33, %v4351_v46  ;;  %v1814_v16 = vpop.f32.mrb[83].mxu1 }
 0x4fd   : > { %4502 = vmatpush3.bf16.xpose.msra.mxu1 %v3036_v20  ;;  %v1874_v51 = vpack.c.bf16 %v1814_v16, %v1811_v57  ;;  %v2964_v57 = vpop.permute.xlu1 %2963 }
 0x4fe   : > { %1883 = vst.msk [vmem:[#allocation3 + $0x10] sm:$0xff] %vm7314_vm12, %v1875_v62  ;;  %4586 = vmatprep.subr.msk.bf16.mxu1 %vm7315_vm10, %v2994_v36  ;;  %vm7319_vm12 = vmmov %vm7304_vm0 }
 0x4ff   : > { %1882 = vst.msk [vmem:[#allocation3] sm:$0xff] %vm7316_vm13, %v1874_v51  ;;  %vm7320_vm10 = vmmov %vm7304_vm0 }
 0x500   : > { %v2747_v14 = vpop.xlane.xlu0 %2746  ;;  %vm7321_vm13 = vmmov %vm7304_vm0 }
 0x501   : > { %v4355_v19 = vpop.f32.mrb[84].mxu1  ;;  %5067 = vrcp.f32 %v2747_v14 }
 0x502   : > { %v1827_v53 = vpop.f32.mrb[85].mxu1  ;;  %5069 = vrcp.f32 %v2753_v40 }
 0x503   : > { %v4356_v18 = vpop.f32.mrb[86].mxu1  ;;  %5071 = vrcp.f32 %v2751_v44 }
 0x504   : > { %v1877_v52 = vpack.c.bf16 %v4356_v18, %v4355_v19  ;;  %v2745_v0 = vpop.xlane.xlu0 %2744  ;;  %v1830_v7 = vpop.f32.mrb[87].mxu1 }
 0x505   : > { %4504 = vmatpush3.bf16.xpose.msra.mxu1 %v3039_v42  ;;  %5073 = vrcp.f32 %v2745_v0  ;;  %v1876_v26 = vpack.c.bf16 %v1830_v7, %v1827_v53  ;;  %v2968_v18 = vpop.permute.xlu1 %2967 }
 0x506   : > { %1885 = vst.msk [vmem:[#allocation3 + $0x30] sm:$0xff] %vm7317_vm15, %v1877_v52  ;;  %5075 = vrcp.f32 %v2757_v59  ;;  %vm7322_vm15 = vmmov %vm7304_vm0 }
 0x507   : > { %1884 = vst.msk [vmem:[#allocation3 + $0x20] sm:$0xff] %vm7318_vm14, %v1876_v26  ;;  %5077 = vrcp.f32 %v2755_v9  ;;  %vm7323_vm14 = vmmov %vm7304_vm0 }
 0x508   : > { %v2763_v27 = vpop.xlane.xlu0 %2762  ;;  %5079 = vrcp.f32 %v2761_v31 }
 0x509   : > { %v4359_v1 = vpop.f32.mrb[88].mxu1  ;;  %v2972_v0 = vpop.permute.xlu1 %2971 }
 0x50a   : > { %v1843_v37 = vpop.f32.mrb[89].mxu1 }
 0x50b   : > { %v4360_v48 = vpop.f32.mrb[90].mxu1  ;;  %v5068_v50 = vpop.eup %5067 }
 0x50c   : > { %v1879_v32 = vpack.c.bf16 %v4360_v48, %v4359_v1  ;;  %v2759_v55 = vpop.xlane.xlu0 %2758  ;;  %v1846_v11 = vpop.f32.mrb[91].mxu1  ;;  %v2788_v8 = vmul.f32 %v5068_v50, %v6604_v3 }
 0x50d   : > { %v5070_v35 = vpop.eup %5069  ;;  %5081 = vrcp.f32 %v2759_v55  ;;  %v1878_v22 = vpack.c.bf16 %v1846_v11, %v1843_v37 }
 0x50e   : > { %v5072_v2 = vpop.eup %5071  ;;  %1887 = vst.msk [vmem:[#allocation3 + $0x50] sm:$0xff] %vm7319_vm12, %v1879_v32  ;;  %v2791_v34 = vmul.f32 %v5070_v35, %v6592_v17  ;;  %v2801_v49 = vpack.c.bf16 %v2789_v47, %v2788_v8  ;;  %vm7324_vm12 = vmmov %vm7304_vm0 }
 0x50f   : > { %v5074_v24 = vpop.eup %5073  ;;  %1886 = vst.msk [vmem:[#allocation3 + $0x40] sm:$0xff] %vm7320_vm10, %v1878_v22  ;;  %v2790_v9 = vmul.f32 %v5072_v2, %v6584_v23  ;;  %vm7325_vm10 = vmmov %vm7304_vm0 }
 0x510   : > { %v2765_v25 = vpop.xlane.xlu0 %2764  ;;  %v2787_v63 = vmul.f32 %v5074_v24, %v6609_v13  ;;  %v5076_v44 = vpop.eup %5075 }
 0x511   : > { %5083 = vrcp.f32 %v2765_v25  ;;  %v2802_v59 = vpack.c.bf16 %v2791_v34, %v2790_v9  ;;  %v5078_v3 = vpop.eup %5077  ;;  %v2793_v13 = vmul.f32 %v5076_v44, %v6589_v54 }
 0x512   : > { %v2800_v30 = vpack.c.bf16 %v2787_v63, %v2786_v39  ;;  %5085 = vrcp.f32 %v2763_v27  ;;  %v5080_v17 = vpop.eup %5079  ;;  %v2792_v28 = vmul.f32 %v5078_v3, %v6580_v29  ;;  %v3323_v27 = vpop.permute.xlu1 %3322 }
 0x513   : > { %v2795_v46 = vmul.f32 %v5080_v17, %v6595_v58 }
 0x514   : > { %4481 = vmatprep.mubr.bf16.mxu1 %v2800_v30  ;;  %v2996_v61 = vpop.permute.xlu0 %2995  ;;  %v2803_v20 = vpack.c.bf16 %v2793_v13, %v2792_v28 }
 0x515   : > { %v3042_v60 = vsel %vm7321_vm13, %v2996_v61, 0  ;;  %4482 = vmatmul.mubr.bf16.gmra.mrb[116].mxu1 %v2801_v49  ;;  %4587 = vmatprep.subr.msk.bf16.mxu1 %vm7304_vm0, %v2996_v61  ;;  %vm7326_vm13 = vmmov %vm7304_vm0 }
 0x516   : > { %4485 = vmatprep.mubr.bf16.mxu1 %v2802_v59  ;;  %4506 = vmatpush3.bf16.xpose.msra.mxu1 %v3042_v60 }
 0x517   : > { %v5082_v45 = vpop.eup %5081 }
 0x518   : > { %v2998_v23 = vpop.permute.xlu0 %2997  ;;  %v2794_v40 = vmul.f32 %v5082_v45, %v6619_v15 }
 0x519   : > { %4588 = vmatprep.subr.msk.bf16.mxu1 %vm7322_vm15, %v2998_v23  ;;  %v4363_v5 = vpop.f32.mrb[92].mxu1  ;;  %v3045_v54 = vsel %vm7323_vm14, %v2998_v23, 0  ;;  %vm7327_vm15 = vmmov %vm7304_vm0 }
 0x51a   : > { %v1859_v31 = vpop.f32.mrb[93].mxu1  ;;  %v2804_v14 = vpack.c.bf16 %v2795_v46, %v2794_v40  ;;  %vm7328_vm14 = vmmov %vm7304_vm0 }
 0x51b   : > { %v4364_v33 = vpop.f32.mrb[94].mxu1  ;;  %v5084_v62 = vpop.eup %5083 }
 0x51c   : > { %v1881_v16 = vpack.c.bf16 %v4364_v33, %v4363_v5  ;;  %v2962_v36 = vpop.permute.xlu0 %2961  ;;  %v1862_v51 = vpop.f32.mrb[95].mxu1  ;;  %v2797_v29 = vmul.f32 %v5084_v62, %v6624_v4 }
 0x51d   : > { %v1880_v19 = vpack.c.bf16 %v1862_v51, %v1859_v31  ;;  %4486 = vmatmul.mubr.bf16.gmra.mrb[120].mxu1 %v2803_v20  ;;  %v5086_v15 = vpop.eup %5085 }
 0x51e   : > { %1889 = vst.msk [vmem:[#allocation3 + $0x70] sm:$0xff] %vm7324_vm12, %v1881_v16  ;;  %4489 = vmatprep.mubr.bf16.mxu1 %v2804_v14  ;;  %4508 = vmatpush3.bf16.xpose.msra.mxu1 %v3045_v54  ;;  %v2796_v53 = vmul.f32 %v5086_v15, %v6614_v10  ;;  %vm7329_vm12 = vmmov %vm7304_vm0 }
 0x51f   : > { %1888 = vst.msk [vmem:[#allocation3 + $0x60] sm:$0xff] %vm7325_vm10, %v1880_v19  ;;  %vm7330_vm10 = vmmov %vm7304_vm0 }
 0x520   : > { %v2966_v58 = vpop.permute.xlu0 %2965  ;;  %v2805_v42 = vpack.c.bf16 %v2797_v29, %v2796_v53 }
 0x524   : > { %v2970_v52 = vpop.permute.xlu0 %2969 }
 0x525   : > { %4490 = vmatmul.mubr.bf16.gmra.mrb[124].mxu1 %v2805_v42 }
 0x526   : > { %4509 = vmatprep.mubr.msk.bf16.mxu1 %vm7326_vm13, %v2960_v38  ;;  %vm7331_vm13 = vmmov %vm7304_vm0 }
 0x528   : > { %v2974_v7 = vpop.permute.xlu0 %2973 }
 0x52c   : > { %v3321_v26 = vpop.permute.xlu0 %3320 }
 0x52d   : > { %4510 = vmatmul.mubr.msk.bf16.vlgmr.msra.gmra.mrb[128].mxu1 %vm7304_vm0, %v2962_v36  ;;  %4525 = vmatprep.subr.bf16.mxu0 %v3321_v26 }
 0x52e   : > { %4513 = vmatprep.mubr.msk.bf16.mxu1 %vm7327_vm15, %v2964_v57  ;;  %4526 = vmatpush3.bf16.msra.mxu0 %v3321_v26  ;;  %vm7332_vm15 = vmmov %vm7304_vm0 }
 0x52f   : > { %4527 = vmatprep.subr.bf16.mxu0 %v3323_v27 }
 0x530   : > { %v3325_v4 = vpop.permute.xlu0 %3324 }
 0x532   : > { %4528 = vmatpush3.bf16.msra.mxu0 %v3323_v27 }
 0x533   : > { %4529 = vmatprep.subr.bf16.mxu0 %v3325_v4 }
 0x534   : > { %v3327_v10 = vpop.permute.xlu0 %3326 }
 0x535   : > { %4514 = vmatmul.mubr.msk.bf16.gmra.mrb[132].mxu1 %vm7328_vm14, %v2966_v58  ;;  %vm7333_vm14 = vmmov %vm7304_vm0  ;;  %v7339_v58 = vld [vmem:[#allocation37_spill] sm:$0xff] }
 0x536   : > { %4517 = vmatprep.mubr.msk.bf16.mxu1 %vm7329_vm12, %v2968_v18  ;;  %4530 = vmatpush3.bf16.msra.mxu0 %v3325_v4  ;;  %vm7334_vm12 = vmmov %vm7304_vm0 }
 0x537   : > { %4531 = vmatprep.subr.bf16.mxu0 %v3327_v10 }
 0x53a   : > { %4532 = vmatpush3.bf16.msra.mxu0 %v3327_v10 }
 0x53d   : > { %4518 = vmatmul.mubr.msk.bf16.gmra.mrb[136].mxu1 %vm7330_vm10, %v2970_v52  ;;  %vm7335_vm10 = vmmov %vm7304_vm0  ;;  %v7341_v52 = vld [vmem:[#allocation35_spill] sm:$0xff] }
 0x53e   : > { %4521 = vmatprep.mubr.msk.bf16.mxu1 %vm7331_vm13, %v2972_v0  ;;  %vm7336_vm13 = vmmov %vm7304_vm0 }
 0x545   : > { %4522 = vmatmul.mubr.msk.bf16.gmra.mrb[140].mxu1 %vm7304_vm0, %v2974_v7 }
 0x567   : > { %v6734_v1 = vpop.f32.mrb[96].mxu1 }
 0x568   : > { %v6736_v56 = vpop.f32.mrb[97].mxu1 }
 0x569   : > { %v6738_v37 = vpop.f32.mrb[98].mxu1 }
 0x56a   : > { %v2413_v21 = vpack.c.bf16 %v6738_v37, %v6734_v1  ;;  %v6742_v48 = vpop.f32.mrb[99].mxu1 }
 0x56b   : > { %v2412_v50 = vpack.c.bf16 %v6742_v48, %v6736_v56 }
 0x570   : > { %v6746_v32 = vpop.f32.mrb[100].mxu1 }
 0x571   : > { %v6748_v55 = vpop.f32.mrb[101].mxu1 }
 0x572   : > { %v6750_v11 = vpop.f32.mrb[102].mxu1 }
 0x573   : > { %v2415_v35 = vpack.c.bf16 %v6750_v11, %v6746_v32  ;;  %v6754_v22 = vpop.f32.mrb[103].mxu1 }
 0x574   : > { %v2414_v2 = vpack.c.bf16 %v6754_v22, %v6748_v55 }
 0x578   : > { %v6758_v24 = vpop.f32.mrb[104].mxu1 }
 0x579   : > { %v6760_v8 = vpop.f32.mrb[105].mxu1 }
 0x57a   : > { %v6762_v25 = vpop.f32.mrb[106].mxu1 }
 0x57b   : > { %v2417_v39 = vpack.c.bf16 %v6762_v25, %v6758_v24  ;;  %v6766_v63 = vpop.f32.mrb[107].mxu1 }
 0x57c   : > { %v2416_v34 = vpack.c.bf16 %v6766_v63, %v6760_v8 }
 0x583   : > { %v6770_v47 = vpop.f32.mrb[108].mxu1 }
 0x584   : > { %v6772_v30 = vpop.f32.mrb[109].mxu1 }
 0x585   : > { %v6774_v9 = vpop.f32.mrb[110].mxu1 }
 0x586   : > { %v2419_v49 = vpack.c.bf16 %v6774_v9, %v6770_v47  ;;  %v6778_v44 = vpop.f32.mrb[111].mxu1 }
 0x587   : > { %v2418_v61 = vpack.c.bf16 %v6778_v44, %v6772_v30 }
 0x5af   : > { %v4479_v59 = vpop.f32.mrb[112].mxu1 }
 0x5b0   : > { %v2840_v3 = vpop.f32.mrb[113].mxu1 }
 0x5b1   : > { %v4480_v38 = vpop.f32.mrb[114].mxu1 }
 0x5b2   : > { %v2904_v60 = vpack.c.bf16 %v4480_v38, %v4479_v59  ;;  %v2843_v17 = vpop.f32.mrb[115].mxu1 }
 0x5b3   : > { %v2903_v45 = vpack.c.bf16 %v2843_v17, %v2840_v3 }
 0x5b4   : > { %2912 = vst.msk [vmem:[#allocation3 + $0x18] sm:$0xff] %vm7332_vm15, %v2904_v60  ;;  %vm7337_vm15 = vmmov %vm7304_vm0 }
 0x5b5   : > { %2911 = vst.msk [vmem:[#allocation3 + $0x8] sm:$0xff] %vm7333_vm14, %v2903_v45  ;;  %vm7338_vm14 = vmmov %vm7304_vm0 }
 0x5e8   : > { %v4483_v13 = vpop.f32.mrb[116].mxu1 }
 0x5e9   : > { %v2856_v23 = vpop.f32.mrb[117].mxu1 }
 0x5ea   : > { %v4484_v40 = vpop.f32.mrb[118].mxu1 }
 0x5eb   : > { %v2906_v5 = vpack.c.bf16 %v4484_v40, %v4483_v13  ;;  %v2859_v28 = vpop.f32.mrb[119].mxu1  ;;  %v7360_v13 = vld [vmem:[#allocation51_spill] sm:$0xff] }
 0x5ec   : > { %v2905_v31 = vpack.c.bf16 %v2859_v28, %v2856_v23 }
 0x5ed   : > { %2914 = vst.msk [vmem:[#allocation3 + $0x38] sm:$0xff] %vm7334_vm12, %v2906_v5 }
 0x5ee   : > { %2913 = vst.msk [vmem:[#allocation3 + $0x28] sm:$0xff] %vm7335_vm10, %v2905_v31 }
 0x5f0   : > { %v4487_v46 = vpop.f32.mrb[120].mxu1 }
 0x5f1   : > { %v2872_v57 = vpop.f32.mrb[121].mxu1 }
 0x5f2   : > { %v4488_v33 = vpop.f32.mrb[122].mxu1 }
 0x5f3   : > { %v2908_v20 = vpack.c.bf16 %v4488_v33, %v4487_v46  ;;  %v2875_v62 = vpop.f32.mrb[123].mxu1 }
 0x5f4   : > { %v2907_v16 = vpack.c.bf16 %v2875_v62, %v2872_v57 }
 0x5f5   : > { %2916 = vst.msk [vmem:[#allocation3 + $0x58] sm:$0xff] %vm7336_vm13, %v2908_v20 }
 0x5f6   : > { %2915 = vst.msk [vmem:[#allocation3 + $0x48] sm:$0xff] %vm7304_vm0, %v2907_v16 }
 0x5f8   : > { %v4491_v36 = vpop.f32.mrb[124].mxu1 }
 0x5f9   : > { %v2888_v51 = vpop.f32.mrb[125].mxu1 }
 0x5fa   : > { %v4492_v14 = vpop.f32.mrb[126].mxu1 }
 0x5fb   : > { %v2910_v54 = vpack.c.bf16 %v4492_v14, %v4491_v36  ;;  %v2891_v19 = vpop.f32.mrb[127].mxu1 }
 0x5fc   : > { %v2909_v15 = vpack.c.bf16 %v2891_v19, %v2888_v51 }
 0x5fd   : > { %2918 = vst.msk [vmem:[#allocation3 + $0x78] sm:$0xff] %vm7337_vm15, %v2910_v54  ;;  %v7350_v54 = vld [vmem:[#allocation45_spill] sm:$0xff] }
 0x5fe   : > { %2917 = vst.msk [vmem:[#allocation3 + $0x68] sm:$0xff] %vm7338_vm14, %v2909_v15  ;;  %v7352_v15 = vld [vmem:[#allocation47_spill] sm:$0xff] }
 0x600   : > { %v4511_v29 = vpop.f32.mrb[128].mxu1 }
 0x601   : > { %v3146_v18 = vsel %vm1412_vm1, %v4511_v29, -inf  ;;  %v3081_v42 = vpop.f32.mrb[129].mxu1  ;;  %vm7351_vm1 = vcmp.le.s32.totalorder %v7339_v58, %v7350_v54 }
 0x602   : > { %v3144_v0 = vsel %vm1410_vm3, %v3081_v42, -inf  ;;  %3164 = vmax.xlane.f32.xlu0 %v3146_v18  ;;  %v4512_v7 = vpop.f32.mrb[130].mxu1  ;;  %v7354_v42 = vld [vmem:[#allocation48_spill] sm:$0xff] }
 0x603   : > { %3160 = vmax.xlane.f32.xlu1 %v3144_v0  ;;  %v3084_v26 = vpop.f32.mrb[131].mxu1  ;;  %v3147_v59 = vsel %vm1413_vm4, %v4512_v7, -inf  ;;  %vm7355_vm3 = vcmp.le.s32.totalorder %v7339_v58, %v7354_v42 }
 0x604   : > { %v3145_v4 = vsel %vm1411_vm2, %v3084_v26, -inf  ;;  %vm7353_vm2 = vcmp.le.s32.totalorder %v7339_v58, %v7352_v15 }
 0x606   : > { %3162 = vmax.xlane.f32.xlu0 %v3145_v4 }
 0x607   : > { %3166 = vmax.xlane.f32.xlu1 %v3147_v59 }
 0x608   : > { %v4515_v3 = vpop.f32.mrb[132].mxu1 }
 0x609   : > { %v3150_v60 = vsel %vm1416_vm5, %v4515_v3, -inf  ;;  %v3097_v17 = vpop.f32.mrb[133].mxu1  ;;  %v7356_v3 = vld [vmem:[#allocation49_spill] sm:$0xff] }
 0x60a   : > { %3172 = vmax.xlane.f32.xlu0 %v3150_v60  ;;  %v4516_v45 = vpop.f32.mrb[134].mxu1  ;;  %v3148_v28 = vsel %vm1414_vm6, %v3097_v17, -inf  ;;  %vm7357_vm4 = vcmp.le.s32.totalorder %v7339_v58, %v7356_v3  ;;  %v7358_v17 = vld [vmem:[#allocation50_spill] sm:$0xff]  ;;  %vm7361_vm6 = vcmp.le.s32.totalorder %v7339_v58, %v7360_v13 }
 0x60b   : > { %v3151_v23 = vsel %vm1417_vm7, %v4516_v45, -inf  ;;  %v3100_v40 = vpop.f32.mrb[135].mxu1  ;;  %vm7359_vm5 = vcmp.le.s32.totalorder %v7339_v58, %v7358_v17  ;;  %vm2452_vm7 = vcmask 1048064  }
 0x60c   : > { %3174 = vmax.xlane.f32.xlu1 %v3151_v23  ;;  %v3149_v46 = vsel %vm1415_vm8, %v3100_v40, -inf }
 0x60e   : > { %3168 = vmax.xlane.f32.xlu0 %v3148_v28 }
 0x610   : > { %3170 = vmax.xlane.f32.xlu1 %v3149_v46  ;;  %v4519_v57 = vpop.f32.mrb[136].mxu1 }
 0x611   : > { %v6817_v20 = vsel %vm1420_vm9, %v4519_v57, -inf  ;;  %v3113_v62 = vpop.f32.mrb[137].mxu1 }
 0x612   : > { %3180 = vmax.xlane.f32.xlu0 %v6817_v20  ;;  %v4520_v16 = vpop.f32.mrb[138].mxu1  ;;  %v6829_v19 = vsel %vm7351_vm1, %v3113_v62, -inf }
 0x613   : > { %v6823_v51 = vsel %vm1421_vm11, %v4520_v16, -inf  ;;  %v3116_v14 = vpop.f32.mrb[139].mxu1 }
 0x614   : > { %3182 = vmax.xlane.f32.xlu1 %v6823_v51  ;;  %v6835_v29 = vsel %vm7353_vm2, %v3116_v14, -inf }
 0x616   : > { %3176 = vmax.xlane.f32.xlu0 %v6829_v19 }
 0x618   : > { %3178 = vmax.xlane.f32.xlu1 %v6835_v29  ;;  %v4523_v53 = vpop.f32.mrb[140].mxu1 }
 0x619   : > { %v6841_v7 = vsel %vm7355_vm3, %v4523_v53, -inf  ;;  %v3129_v26 = vpop.f32.mrb[141].mxu1 }
 0x61a   : > { %3188 = vmax.xlane.f32.xlu0 %v6841_v7  ;;  %v4524_v27 = vpop.f32.mrb[142].mxu1  ;;  %v6847_v38 = vsel %vm7357_vm4, %v3129_v26, -inf }
 0x61b   : > { %v3132_v10 = vpop.f32.mrb[143].mxu1  ;;  %v6857_v45 = vsel %vm7359_vm5, %v4524_v27, -inf }
 0x61c   : > { %v6863_v40 = vsel %vm7361_vm6, %v3132_v10, -inf }
 0x61e   : > { %3184 = vmax.xlane.f32.xlu0 %v6847_v38 }
 0x629   : > { %3330 = vrot.lane.b32.xlu1 %v7296_v6, %s5332_s23 }
 0x634   : > { %3328 = vrot.lane.b32.xlu0 %v7294_v43, %s5332_s23 }
 0x64d   : > { %3190 = vmax.xlane.f32.xlu1 %v6857_v45 }
 0x651   : > { %3186 = vmax.xlane.f32.xlu1 %v6863_v40 }
 0x68f   : > { %v3165_v5 = vpop.xlane.xlu0 %3164 }
 0x690   : > { %v3194_v31 = vsub.f32 %v3146_v18, %v3165_v5  ;;  %v3161_v6 = vpop.xlane.xlu1 %3160 }
 0x691   : > { %v3192_v57 = vsub.f32 %v3144_v0, %v3161_v6 }
 0x692   : > { %v3212_v33 = vmul.f32 1.442695, %v3194_v31 }
 0x693   : > { %v3163_v43 = vpop.xlane.xlu0 %3162  ;;  %v3208_v62 = vmul.f32 1.442695, %v3192_v57 }
 0x694   : > { %5087 = vpow2.f32 %v3212_v33  ;;  %v3167_v16 = vpop.xlane.xlu1 %3166  ;;  %v3193_v14 = vsub.f32 %v3145_v4, %v3163_v43 }
 0x695   : > { %v3195_v36 = vsub.f32 %v3147_v59, %v3167_v16  ;;  %5089 = vpow2.f32 %v3208_v62 }
 0x696   : > { %v3210_v26 = vmul.f32 1.442695, %v3193_v14 }
 0x697   : > { %v3214_v54 = vmul.f32 1.442695, %v3195_v36  ;;  %v3173_v15 = vpop.xlane.xlu0 %3172 }
 0x698   : > { %v3198_v53 = vsub.f32 %v3150_v60, %v3173_v15 }
 0x699   : > { %v3175_v58 = vpop.xlane.xlu1 %3174  ;;  %5091 = vpow2.f32 %v3214_v54 }
 0x69a   : > { %v3220_v42 = vmul.f32 1.442695, %v3198_v53  ;;  %v3199_v27 = vsub.f32 %v3151_v23, %v3175_v58 }
 0x69b   : > { %v3169_v10 = vpop.xlane.xlu0 %3168 }
 0x69c   : > { %5093 = vpow2.f32 %v3220_v42  ;;  %v3196_v18 = vsub.f32 %v3148_v28, %v3169_v10  ;;  %v3222_v59 = vmul.f32 1.442695, %v3199_v27 }
 0x69d   : > { %v3171_v0 = vpop.xlane.xlu1 %3170  ;;  %5095 = vpow2.f32 %v3210_v26 }
 0x69e   : > { %v6866_v3 = vpop.eup %5087  ;;  %v3216_v17 = vmul.f32 1.442695, %v3196_v18  ;;  %v3197_v13 = vsub.f32 %v3149_v46, %v3171_v0 }
 0x69f   : > { %3244 = vadd.xlane.f32.xlu1 %v6866_v3  ;;  %v3181_v4 = vpop.xlane.xlu0 %3180  ;;  %v6869_v5 = vpop.eup %5089 }
 0x6a0   : > { %5097 = vpow2.f32 %v3216_v17  ;;  %v3218_v60 = vmul.f32 1.442695, %v3197_v13  ;;  %v3202_v58 = vsub.f32 %v6817_v20, %v3181_v4 }
 0x6a1   : > { %5099 = vpow2.f32 %v3222_v59  ;;  %v3183_v31 = vpop.xlane.xlu1 %3182 }
 0x6a2   : > { %5101 = vpow2.f32 %v3218_v60  ;;  %v3203_v26 = vsub.f32 %v6823_v51, %v3183_v31  ;;  %v3228_v10 = vmul.f32 1.442695, %v3202_v58 }
 0x6a3   : > { %3240 = vadd.xlane.f32.xlu1 %v6869_v5  ;;  %v3177_v23 = vpop.xlane.xlu0 %3176  ;;  %v6872_v28 = vpop.eup %5091 }
 0x6a4   : > { %v3200_v15 = vsub.f32 %v6829_v19, %v3177_v23  ;;  %v3230_v18 = vmul.f32 1.442695, %v3203_v26 }
 0x6a5   : > { %v3179_v43 = vpop.xlane.xlu1 %3178 }
 0x6a6   : > { %v6874_v6 = vpop.eup %5093  ;;  %v3201_v53 = vsub.f32 %v6835_v29, %v3179_v43  ;;  %v3224_v42 = vmul.f32 1.442695, %v3200_v15 }
 0x6a7   : > { %3246 = vadd.xlane.f32.xlu1 %v6872_v28  ;;  %3252 = vadd.xlane.f32.xlu0 %v6874_v6  ;;  %v3189_v46 = vpop.xlane.xlu0 %3188  ;;  %v6878_v57 = vpop.eup %5095 }
 0x6a8   : > { %v3226_v27 = vmul.f32 1.442695, %v3201_v53  ;;  %5103 = vpow2.f32 %v3224_v42 }
 0x6a9   : > { %v3331_v54 = vpop.permute.xlu1 %3330 }
 0x6aa   : > { %v6880_v33 = vpop.eup %5097  ;;  %5105 = vpow2.f32 %v3226_v27 }
 0x6ab   : > { %3242 = vadd.xlane.f32.xlu1 %v6878_v57  ;;  %3248 = vadd.xlane.f32.xlu0 %v6880_v33  ;;  %v3185_v62 = vpop.xlane.xlu0 %3184  ;;  %v6884_v16 = vpop.eup %5099  ;;  %5107 = vpow2.f32 %v3228_v10 }
 0x6ac   : > { %v6886_v36 = vpop.eup %5101  ;;  %v3204_v0 = vsub.f32 %v6847_v38, %v3185_v62  ;;  %5109 = vpow2.f32 %v3230_v18 }
 0x6ae   : > { %v3232_v19 = vmul.f32 1.442695, %v3204_v0 }
 0x6af   : > { %3250 = vadd.xlane.f32.xlu1 %v6886_v36  ;;  %3254 = vadd.xlane.f32.xlu0 %v6884_v16  ;;  %v3329_v14 = vpop.permute.xlu0 %3328 }
 0x6b0   : > { %4533 = vmatprep.subr.bf16.mxu0 %v3329_v14  ;;  %5111 = vpow2.f32 %v3232_v19 }
 0x6b1   : > { %4534 = vmatpush3.bf16.msra.mxu0 %v3329_v14 }
 0x6b2   : > { %4535 = vmatprep.subr.bf16.mxu0 %v3331_v54  ;;  %v6902_v59 = vpop.eup %5103 }
 0x6b4   : > { %v6904_v4 = vpop.eup %5105 }
 0x6b5   : > { %4536 = vmatpush3.bf16.msra.mxu0 %v3331_v54 }
 0x6c0   : > { %3334 = vrot.lane.b32.xlu1 %v7302_v41, %s5332_s23 }
 0x6c5   : > { %3332 = vrot.lane.b32.xlu0 %v7298_v12, %s5332_s23  ;;  %v3206_v12 = vsub.f32 %v6841_v7, %v3189_v46  ;;  %v6908_v7 = vpop.eup %5107 }
 0x6c6   : > { %v6910_v38 = vpop.eup %5109 }
 0x6c7   : > { %v3236_v13 = vmul.f32 1.442695, %v3206_v12 }
 0x6da   : > { %v3191_v41 = vpop.xlane.xlu1 %3190 }
 0x6db   : > { %v3207_v29 = vsub.f32 %v6857_v45, %v3191_v41  ;;  %v6914_v45 = vpop.eup %5111 }
 0x6dd   : > { %v3238_v60 = vmul.f32 1.442695, %v3207_v29 }
 0x6de   : > { %v3187_v17 = vpop.xlane.xlu1 %3186 }
 0x6df   : > { %v3205_v20 = vsub.f32 %v6863_v40, %v3187_v17 }
 0x6e1   : > { %v3234_v51 = vmul.f32 1.442695, %v3205_v20 }
 0x6e3   : > { %5113 = vpow2.f32 %v3234_v51 }
 0x6e4   : > { %3258 = vadd.xlane.f32.xlu0 %v6904_v4  ;;  %3256 = vadd.xlane.f32.xlu1 %v6902_v59  ;;  %5115 = vpow2.f32 %v3236_v13 }
 0x6e5   : > { %5117 = vpow2.f32 %v3238_v60 }
 0x6e8   : > { %3260 = vadd.xlane.f32.xlu0 %v6908_v7  ;;  %3262 = vadd.xlane.f32.xlu1 %v6910_v38 }
 0x6ec   : > { %3264 = vadd.xlane.f32.xlu0 %v6914_v45 }
 0x6ed   : > { %v6917_v40 = vpop.eup %5113 }
 0x6ee   : > { %3266 = vadd.xlane.f32.xlu1 %v6917_v40  ;;  %v6920_v23 = vpop.eup %5115 }
 0x6ef   : > { %v6923_v31 = vpop.eup %5117 }
 0x6f0   : > { %3268 = vadd.xlane.f32.xlu0 %v6920_v23 }
 0x6f2   : > { %3270 = vadd.xlane.f32.xlu1 %v6923_v31 }
 0x703   : > { %2428 = vrot.lane.b32.xlu1 %v2412_v50, %s5332_s23 }
 0x72c   : > { %v3245_v46 = vpop.xlane.xlu1 %3244 }
 0x730   : > { %v3241_v43 = vpop.xlane.xlu1 %3240 }
 0x734   : > { %v3247_v62 = vpop.xlane.xlu1 %3246  ;;  %v3253_v14 = vpop.xlane.xlu0 %3252 }
 0x735   : > { %5119 = vrcp.f32 %v3247_v62 }
 0x736   : > { %5121 = vrcp.f32 %v3241_v43 }
 0x737   : > { %5123 = vrcp.f32 %v3245_v46 }
 0x738   : > { %v3243_v54 = vpop.xlane.xlu1 %3242  ;;  %v3249_v15 = vpop.xlane.xlu0 %3248 }
 0x739   : > { %5125 = vrcp.f32 %v3243_v54 }
 0x73a   : > { %5127 = vrcp.f32 %v3249_v15 }
 0x73c   : > { %v3251_v53 = vpop.xlane.xlu1 %3250  ;;  %v3255_v58 = vpop.xlane.xlu0 %3254 }
 0x73d   : > { %5129 = vrcp.f32 %v3251_v53 }
 0x73e   : > { %5131 = vrcp.f32 %v3255_v58 }
 0x73f   : > { %v5120_v42 = vpop.eup %5119  ;;  %5133 = vrcp.f32 %v3253_v14 }
 0x740   : > { %v3333_v26 = vpop.permute.xlu0 %3332  ;;  %v5122_v56 = vpop.eup %5121  ;;  %v3291_v10 = vmul.f32 %v5120_v42, %v6872_v28 }
 0x741   : > { %4537 = vmatprep.subr.bf16.mxu0 %v3333_v26  ;;  %v5124_v48 = vpop.eup %5123  ;;  %v3335_v50 = vpop.permute.xlu1 %3334  ;;  %v3288_v18 = vmul.f32 %v5122_v56, %v6869_v5 }
 0x742   : > { %4538 = vmatpush3.bf16.msra.mxu0 %v3333_v26  ;;  %v3290_v12 = vmul.f32 %v5124_v48, %v6866_v3 }
 0x743   : > { %v5126_v27 = vpop.eup %5125  ;;  %4539 = vmatprep.subr.bf16.mxu0 %v3335_v50 }
 0x744   : > { %v3289_v0 = vmul.f32 %v5126_v27, %v6878_v57  ;;  %v5128_v41 = vpop.eup %5127  ;;  %v3305_v29 = vpack.c.bf16 %v3291_v10, %v3290_v12 }
 0x745   : > { %v3292_v13 = vmul.f32 %v5128_v41, %v6880_v33 }
 0x746   : > { %4540 = vmatpush3.bf16.msra.mxu0 %v3335_v50  ;;  %v3304_v19 = vpack.c.bf16 %v3289_v0, %v3288_v18 }
 0x747   : > { %v5130_v17 = vpop.eup %5129 }
 0x748   : > { %v5132_v20 = vpop.eup %5131  ;;  %4541 = vmatprep.mubr.bf16.mxu0 %v3304_v19  ;;  %v3293_v51 = vmul.f32 %v5130_v17, %v6886_v36 }
 0x749   : > { %4542 = vmatmul.mubr.bf16.vlgmr.msra.gmra.mrb[64].mxu0 %v3305_v29  ;;  %v5134_v28 = vpop.eup %5133  ;;  %v3295_v5 = vmul.f32 %v5132_v20, %v6884_v16  ;;  %v4847_v29 = vld [vmem:[#allocation9] ss:$8 sps:$4 sm:$0xff]   ;;  %v4849_v20 = vld [vmem:[#allocation9 + $0x4] ss:$8 sps:$4 sm:$0xff]  }
 0x74a   : > { %v3306_v60 = vpack.c.bf16 %v3293_v51, %v3292_v13  ;;  %v3294_v57 = vmul.f32 %v5134_v28, %v6874_v6  ;;  %3709 = vmatprep.subr.bf16.mxu0 %v4849_v20  ;;  %v4852_v13 = vld [vmem:[#allocation9 + $0x14] ss:$8 sps:$4 sm:$0xff]   ;;  %v4850_v51 = vld [vmem:[#allocation9 + $0x10] ss:$8 sps:$4 sm:$0xff]  }
 0x74b   : > { %3710 = vmatpush1.bf16.msra.mxu0 %v4847_v29  ;;  %v4856_v28 = vld [vmem:[#allocation9 + $0x30] ss:$8 sps:$4 sm:$0xff]  }
 0x74c   : > { %4545 = vmatprep.mubr.bf16.mxu0 %v3306_v60  ;;  %v3307_v46 = vpack.c.bf16 %v3295_v5, %v3294_v57  ;;  %3711 = vmatprep.subr.bf16.mxu0 %v4852_v13  ;;  %v4858_v60 = vld [vmem:[#allocation9 + $0x34] ss:$8 sps:$4 sm:$0xff]   ;;  %v4862_v57 = vld [vmem:[#allocation9 + $0x50] ss:$8 sps:$4 sm:$0xff]  }
 0x74d   : > { %v4864_v5 = vld [vmem:[#allocation9 + $0x54] ss:$8 sps:$4 sm:$0xff]  }
 0x74f   : > { %3712 = vmatpush1.bf16.msra.mxu0 %v4850_v51 }
 0x751   : > { %4546 = vmatmul.mubr.bf16.gmra.mrb[68].mxu0 %v3307_v46  ;;  %v4867_v46 = vld [vmem:[#allocation9 + $0x64] ss:$8 sps:$4 sm:$0xff]  }
 0x771   : > { %v3257_v3 = vpop.xlane.xlu1 %3256  ;;  %v3259_v43 = vpop.xlane.xlu0 %3258 }
 0x772   : > { %5135 = vrcp.f32 %v3257_v3  ;;  %v4865_v3 = vld [vmem:[#allocation9 + $0x60] ss:$8 sps:$4 sm:$0xff]  }
 0x773   : > { %5137 = vrcp.f32 %v3259_v43  ;;  %v4870_v43 = vld [vmem:[#allocation9 + $0x74] ss:$8 sps:$4 sm:$0xff]  }
 0x775   : > { %v3263_v62 = vpop.xlane.xlu1 %3262  ;;  %v3261_v14 = vpop.xlane.xlu0 %3260 }
 0x776   : > { %5139 = vrcp.f32 %v3263_v62  ;;  %v4868_v62 = vld [vmem:[#allocation9 + $0x70] ss:$8 sps:$4 sm:$0xff]  }
 0x777   : > { %5141 = vrcp.f32 %v3261_v14  ;;  %v4873_v14 = vld [vmem:[#allocation9 + $0x84] ss:$8 sps:$4 sm:$0xff]  }
 0x779   : > { %v3265_v33 = vpop.xlane.xlu0 %3264 }
 0x77a   : > { %5143 = vrcp.f32 %v3265_v33  ;;  %v4871_v33 = vld [vmem:[#allocation9 + $0x80] ss:$8 sps:$4 sm:$0xff]  }
 0x77b   : > { %v3267_v36 = vpop.xlane.xlu1 %3266 }
 0x77c   : > { %v5136_v54 = vpop.eup %5135  ;;  %5145 = vrcp.f32 %v3267_v36  ;;  %v4876_v36 = vld [vmem:[#allocation9 + $0x94] ss:$8 sps:$4 sm:$0xff]  }
 0x77d   : > { %v5138_v15 = vpop.eup %5137  ;;  %v3269_v16 = vpop.xlane.xlu0 %3268  ;;  %v3296_v53 = vmul.f32 %v5136_v54, %v6902_v59  ;;  %v4874_v54 = vld [vmem:[#allocation9 + $0x90] ss:$8 sps:$4 sm:$0xff]  }
 0x77e   : > { %5147 = vrcp.f32 %v3269_v16  ;;  %v3297_v6 = vmul.f32 %v5138_v15, %v6904_v4  ;;  %v4879_v15 = vld [vmem:[#allocation9 + $0xa4] ss:$8 sps:$4 sm:$0xff]   ;;  %v4877_v16 = vld [vmem:[#allocation9 + $0xa0] ss:$8 sps:$4 sm:$0xff]  }
 0x77f   : > { %v3271_v58 = vpop.xlane.xlu1 %3270 }
 0x780   : > { %v5140_v42 = vpop.eup %5139  ;;  %5149 = vrcp.f32 %v3271_v58  ;;  %v3308_v26 = vpack.c.bf16 %v3297_v6, %v3296_v53  ;;  %v4882_v53 = vld [vmem:[#allocation9 + $0xb4] ss:$8 sps:$4 sm:$0xff]   ;;  %v4880_v6 = vld [vmem:[#allocation9 + $0xb0] ss:$8 sps:$4 sm:$0xff]   ;;  %v4885_v58 = vld [vmem:[#allocation9 + $0xc4] ss:$8 sps:$4 sm:$0xff]  }
 0x781   : > { %v5142_v56 = vpop.eup %5141  ;;  %v3299_v48 = vmul.f32 %v5140_v42, %v6910_v38  ;;  %v4883_v42 = vld [vmem:[#allocation9 + $0xc0] ss:$8 sps:$4 sm:$0xff]  }
 0x782   : > { %4549 = vmatprep.mubr.bf16.mxu0 %v3308_v26  ;;  %v3298_v50 = vmul.f32 %v5142_v56, %v6908_v7  ;;  %v4888_v26 = vld [vmem:[#allocation9 + $0xd4] ss:$8 sps:$4 sm:$0xff]   ;;  %v4886_v56 = vld [vmem:[#allocation9 + $0xd0] ss:$8 sps:$4 sm:$0xff]  }
 0x783   : > { %v2429_v27 = vpop.permute.xlu1 %2428 }
 0x784   : > { %v5144_v10 = vpop.eup %5143  ;;  %2453 = vst.msk [vmem:[#allocation3] sm:$0xff] %vm2452_vm7, %v2429_v27  ;;  %v3309_v18 = vpack.c.bf16 %v3299_v48, %v3298_v50  ;;  %v4889_v48 = vld [vmem:[#allocation9 + $0xe0] ss:$8 sps:$4 sm:$0xff]   ;;  %v4891_v50 = vld [vmem:[#allocation9 + $0xe4] ss:$8 sps:$4 sm:$0xff]  }
 0x785   : > { %v3300_v4 = vmul.f32 %v5144_v10, %v6914_v45  ;;  %v4855_v45 = vld [vmem:[#allocation9 + $0x24] ss:$8 sps:$4 sm:$0xff]   ;;  %v4892_v27 = vld [vmem:[#allocation9 + $0xf0] ss:$8 sps:$4 sm:$0xff]   ;;  %v4894_v10 = vld [vmem:[#allocation9 + $0xf4] ss:$8 sps:$4 sm:$0xff]  }
 0x786   : > { %v5146_v59 = vpop.eup %5145  ;;  %4550 = vmatmul.mubr.bf16.gmra.mrb[72].mxu0 %v3309_v18  ;;  %3713 = vmatprep.subr.bf16.mxu0 %v4855_v45 }
 0x787   : > { %v3301_v0 = vmul.f32 %v5146_v59, %v6917_v40  ;;  %v4853_v40 = vld [vmem:[#allocation9 + $0x20] ss:$8 sps:$4 sm:$0xff]  }
 0x788   : > { %v5148_v41 = vpop.eup %5147  ;;  %3714 = vmatpush1.bf16.msra.mxu0 %v4853_v40 }
 0x789   : > { %v3310_v12 = vpack.c.bf16 %v3301_v0, %v3300_v4  ;;  %v3302_v38 = vmul.f32 %v5148_v41, %v6920_v23  ;;  %3715 = vmatprep.subr.bf16.mxu0 %v4858_v60  ;;  %v4859_v23 = vld [vmem:[#allocation9 + $0x40] ss:$8 sps:$4 sm:$0xff]  }
 0x78a   : > { %v5150_v19 = vpop.eup %5149 }
 0x78b   : > { %4553 = vmatprep.mubr.bf16.mxu0 %v3310_v12  ;;  %v3303_v17 = vmul.f32 %v5150_v19, %v6923_v31  ;;  %v4861_v31 = vld [vmem:[#allocation9 + $0x44] ss:$8 sps:$4 sm:$0xff]  }
 0x78c   : > { %3716 = vmatpush1.bf16.msra.mxu0 %v4856_v28 }
 0x78d   : > { %v3311_v7 = vpack.c.bf16 %v3303_v17, %v3302_v38  ;;  %3717 = vmatprep.subr.bf16.mxu0 %v4861_v31 }
 0x78f   : > { %4554 = vmatmul.mubr.bf16.gmra.mrb[76].mxu0 %v3311_v7 }
 0x790   : > { %3718 = vmatpush1.bf16.msra.mxu0 %v4859_v23 }
 0x791   : > { %3719 = vmatprep.subr.bf16.mxu0 %v4864_v5 }
 0x794   : > { %3720 = vmatpush1.bf16.msra.mxu0 %v4862_v57 }
 0x795   : > { %3721 = vmatprep.subr.bf16.mxu0 %v4867_v46 }
 0x798   : > { %3722 = vmatpush1.bf16.msra.mxu0 %v4865_v3 }
 0x799   : > { %3723 = vmatprep.subr.bf16.mxu0 %v4870_v43 }
 0x79c   : > { %3724 = vmatpush1.bf16.msra.mxu0 %v4868_v62 }
 0x79d   : > { %3725 = vmatprep.subr.bf16.mxu0 %v4873_v14 }
 0x7a0   : > { %3726 = vmatpush1.bf16.msra.mxu0 %v4871_v33 }
 0x7a1   : > { %3727 = vmatprep.subr.bf16.mxu0 %v4876_v36 }
 0x7a4   : > { %3728 = vmatpush1.bf16.msra.mxu0 %v4874_v54 }
 0x7a5   : > { %3729 = vmatprep.subr.bf16.mxu0 %v4879_v15 }
 0x7a8   : > { %3730 = vmatpush1.bf16.msra.mxu0 %v4877_v16 }
 0x7a9   : > { %3731 = vmatprep.subr.bf16.mxu0 %v4882_v53 }
 0x7ac   : > { %3732 = vmatpush1.bf16.msra.mxu0 %v4880_v6 }
 0x7ad   : > { %3733 = vmatprep.subr.bf16.mxu0 %v4885_v58  ;;  %v3541_v58 = vsub.s32 0, %v7341_v52 }
 0x7b0   : > { %3734 = vmatpush1.bf16.msra.mxu0 %v4883_v42  ;;  %v3537_v42 = vld [vmem:[%s7133_s3] sm:$0x3] }
 0x7b1   : > { %3735 = vmatprep.subr.bf16.mxu0 %v4888_v26  ;;  %v3545_v26 = vsub.s32 1, %v7341_v52 }
 0x7b4   : > { %3736 = vmatpush1.bf16.msra.mxu0 %v4886_v56  ;;  %v7004_v56 = vrot.slane %v3537_v42, %v3541_v58 }
 0x7b5   : > { %3737 = vmatprep.subr.bf16.mxu0 %v4891_v50 }
 0x7b8   : > { %3738 = vmatpush1.bf16.msra.mxu0 %v4889_v48  ;;  %v7006_v48 = vrot.slane %v3537_v42, %v3545_v26 }
 0x7b9   : > { %3739 = vmatprep.subr.bf16.mxu0 %v4894_v10 }
 0x7bc   : > { %3740 = vmatpush1.bf16.msra.mxu0 %v4892_v27 }
 0x81c   : > { %v4543_v18 = vpop.f32.mrb[64].mxu0 }
 0x81d   : > { %v3378_v59 = vpop.f32.mrb[65].mxu0 }
 0x81e   : > { %v4544_v4 = vpop.f32.mrb[66].mxu0 }
 0x81f   : > { %v3442_v0 = vpack.c.bf16 %v4544_v4, %v4543_v18  ;;  %v3381_v41 = vpop.f32.mrb[67].mxu0 }
 0x820   : > { %v3441_v12 = vpack.c.bf16 %v3381_v41, %v3378_v59 }
 0x821   : > { %3459 = vrot.lane.b32.xlu1 %v3442_v0, %s5332_s23 }
 0x822   : > { %3457 = vrot.lane.b32.xlu0 %v3441_v12, %s5332_s23 }
 0x824   : > { %v4547_v19 = vpop.f32.mrb[68].mxu0 }
 0x825   : > { %v3394_v38 = vpop.f32.mrb[69].mxu0 }
 0x826   : > { %2430 = vrot.lane.b32.xlu0 %v2413_v21, %s5332_s23  ;;  %v4548_v17 = vpop.f32.mrb[70].mxu0 }
 0x827   : > { %v3444_v7 = vpack.c.bf16 %v4548_v17, %v4547_v19  ;;  %v3397_v29 = vpop.f32.mrb[71].mxu0 }
 0x828   : > { %v3443_v20 = vpack.c.bf16 %v3397_v29, %v3394_v38 }
 0x82a   : > { %2432 = vrot.lane.b32.xlu0 %v2414_v2, %s5332_s23  ;;  %3461 = vrot.lane.b32.xlu1 %v3443_v20, %s5332_s23 }
 0x82e   : > { %2434 = vrot.lane.b32.xlu0 %v2415_v35, %s5332_s23  ;;  %3463 = vrot.lane.b32.xlu1 %v3444_v7, %s5332_s23 }
 0x832   : > { %2436 = vrot.lane.b32.xlu0 %v2416_v34, %s5332_s23 }
 0x836   : > { %2438 = vrot.lane.b32.xlu0 %v2417_v39, %s5332_s23 }
 0x83a   : > { %2440 = vrot.lane.b32.xlu0 %v2418_v61, %s5332_s23 }
 0x83e   : > { %2442 = vrot.lane.b32.xlu0 %v2419_v49, %s5332_s23  ;;  %v3489_v49 = vld [vmem:[#allocation3] sm:$0xff] }
 0x859   : > { %v4551_v1 = vpop.f32.mrb[72].mxu0 }
 0x85a   : > { %v3410_v37 = vpop.f32.mrb[73].mxu0 }
 0x85b   : > { %v4552_v21 = vpop.f32.mrb[74].mxu0 }
 0x85c   : > { %v3446_v32 = vpack.c.bf16 %v4552_v21, %v4551_v1  ;;  %v3413_v55 = vpop.f32.mrb[75].mxu0 }
 0x85d   : > { %v3445_v11 = vpack.c.bf16 %v3413_v55, %v3410_v37 }
 0x85f   : > { %3465 = vrot.lane.b32.xlu1 %v3445_v11, %s5332_s23 }
 0x862   : > { %v4555_v35 = vpop.f32.mrb[76].mxu0 }
 0x863   : > { %3467 = vrot.lane.b32.xlu1 %v3446_v32, %s5332_s23  ;;  %v3426_v22 = vpop.f32.mrb[77].mxu0 }
 0x864   : > { %v4556_v2 = vpop.f32.mrb[78].mxu0 }
 0x865   : > { %v3448_v24 = vpack.c.bf16 %v4556_v2, %v4555_v35  ;;  %v3429_v8 = vpop.f32.mrb[79].mxu0 }
 0x866   : > { %v3447_v25 = vpack.c.bf16 %v3429_v8, %v3426_v22 }
 0x868   : > { %3469 = vrot.lane.b32.xlu1 %v3447_v25, %s5332_s23 }
 0x86c   : > { %3471 = vrot.lane.b32.xlu1 %v3448_v24, %s5332_s23 }
 0x893   : > { %v3460_v39 = vpop.permute.xlu1 %3459 }
 0x894   : > { %3482 = vst.msk [vmem:[#allocation3 + $0x18] sm:$0xff] %vm2452_vm7, %v3460_v39  ;;  %v3458_v63 = vpop.permute.xlu0 %3457 }
 0x895   : > { %3481 = vst.msk [vmem:[#allocation3 + $0x8] sm:$0xff] %vm2452_vm7, %v3458_v63 }
 0x898   : > { %v2431_v34 = vpop.permute.xlu0 %2430 }
 0x899   : > { %2454 = vst.msk [vmem:[#allocation3 + $0x10] sm:$0xff] %vm2452_vm7, %v2431_v34 }
 0x89b   : > { %v3492_v44 = vld [vmem:[#allocation3 + $0x18] sm:$0xff] }
 0x89c   : > { %v3462_v47 = vpop.permute.xlu1 %3461  ;;  %v2433_v30 = vpop.permute.xlu0 %2432  ;;  %v3490_v9 = vld [vmem:[#allocation3 + $0x8] sm:$0xff] }
 0x89d   : > { %3483 = vst.msk [vmem:[#allocation3 + $0x28] sm:$0xff] %vm2452_vm7, %v3462_v47  ;;  %2455 = vst.msk [vmem:[#allocation3 + $0x20] sm:$0xff] %vm2452_vm7, %v2433_v30  ;;  %3741 = vmatprep.mubr.bf16.mxu0 %v3490_v9 }
 0x89e   : > { %3742 = vmatmul.mubr.bf16.vlgmr.msra.gmra.mrb[80].mxu0 %v3489_v49 }
 0x89f   : > { %3751 = vmatprep.mubr.bf16.mxu0 %v3492_v44 }
 0x8a0   : > { %v3464_v61 = vpop.permute.xlu1 %3463  ;;  %v2435_v13 = vpop.permute.xlu0 %2434  ;;  %v3491_v45 = vld [vmem:[#allocation3 + $0x10] sm:$0xff] }
 0x8a1   : > { %3484 = vst.msk [vmem:[#allocation3 + $0x38] sm:$0xff] %vm2452_vm7, %v3464_v61  ;;  %2456 = vst.msk [vmem:[#allocation3 + $0x30] sm:$0xff] %vm2452_vm7, %v2435_v13 }
 0x8a4   : > { %v2437_v51 = vpop.permute.xlu0 %2436  ;;  %v3494_v40 = vld [vmem:[#allocation3 + $0x28] sm:$0xff]  ;;  %v3493_v23 = vld [vmem:[#allocation3 + $0x20] sm:$0xff] }
 0x8a5   : > { %2457 = vst.msk [vmem:[#allocation3 + $0x40] sm:$0xff] %vm2452_vm7, %v2437_v51 }
 0x8a6   : > { %3752 = vmatmul.mubr.bf16.gmra.mrb[84].mxu0 %v3491_v45 }
 0x8a7   : > { %3761 = vmatprep.mubr.bf16.mxu0 %v3494_v40 }
 0x8a8   : > { %v2439_v28 = vpop.permute.xlu0 %2438  ;;  %v3496_v31 = vld [vmem:[#allocation3 + $0x38] sm:$0xff]  ;;  %v3495_v57 = vld [vmem:[#allocation3 + $0x30] sm:$0xff] }
 0x8a9   : > { %2458 = vst.msk [vmem:[#allocation3 + $0x50] sm:$0xff] %vm2452_vm7, %v2439_v28 }
 0x8ac   : > { %v2441_v60 = vpop.permute.xlu0 %2440  ;;  %v3497_v14 = vld [vmem:[#allocation3 + $0x40] sm:$0xff] }
 0x8ad   : > { %2459 = vst.msk [vmem:[#allocation3 + $0x60] sm:$0xff] %vm2452_vm7, %v2441_v60 }
 0x8ae   : > { %3762 = vmatmul.mubr.bf16.gmra.mrb[88].mxu0 %v3493_v23 }
 0x8af   : > { %3771 = vmatprep.mubr.bf16.mxu0 %v3496_v31 }
 0x8b0   : > { %v2443_v5 = vpop.permute.xlu0 %2442  ;;  %v3499_v54 = vld [vmem:[#allocation3 + $0x50] sm:$0xff] }
 0x8b1   : > { %2460 = vst.msk [vmem:[#allocation3 + $0x70] sm:$0xff] %vm2452_vm7, %v2443_v5 }
 0x8b4   : > { %v3501_v16 = vld [vmem:[#allocation3 + $0x60] sm:$0xff] }
 0x8b6   : > { %3772 = vmatmul.mubr.bf16.gmra.mrb[92].mxu0 %v3495_v57 }
 0x8b8   : > { %v3503_v6 = vld [vmem:[#allocation3 + $0x70] sm:$0xff] }
 0x8d1   : > { %v3466_v46 = vpop.permute.xlu1 %3465 }
 0x8d2   : > { %3485 = vst.msk [vmem:[#allocation3 + $0x48] sm:$0xff] %vm2452_vm7, %v3466_v46 }
 0x8d5   : > { %v3468_v3 = vpop.permute.xlu1 %3467 }
 0x8d6   : > { %3486 = vst.msk [vmem:[#allocation3 + $0x58] sm:$0xff] %vm2452_vm7, %v3468_v3 }
 0x8d9   : > { %v3498_v43 = vld [vmem:[#allocation3 + $0x48] sm:$0xff] }
 0x8da   : > { %3781 = vmatprep.mubr.bf16.mxu0 %v3498_v43  ;;  %v3470_v62 = vpop.permute.xlu1 %3469 }
 0x8db   : > { %3487 = vst.msk [vmem:[#allocation3 + $0x68] sm:$0xff] %vm2452_vm7, %v3470_v62  ;;  %3782 = vmatmul.mubr.bf16.gmra.mrb[96].mxu0 %v3497_v14 }
 0x8dd   : > { %v3500_v33 = vld [vmem:[#allocation3 + $0x58] sm:$0xff] }
 0x8de   : > { %3791 = vmatprep.mubr.bf16.mxu0 %v3500_v33  ;;  %v3472_v36 = vpop.permute.xlu1 %3471 }
 0x8df   : > { %3488 = vst.msk [vmem:[#allocation3 + $0x78] sm:$0xff] %vm2452_vm7, %v3472_v36 }
 0x8e2   : > { %v3502_v15 = vld [vmem:[#allocation3 + $0x68] sm:$0xff] }
 0x8e3   : > { %3792 = vmatmul.mubr.bf16.gmra.mrb[100].mxu0 %v3499_v54 }
 0x8e4   : > { %3801 = vmatprep.mubr.bf16.mxu0 %v3502_v15 }
 0x8e6   : > { %v3504_v53 = vld [vmem:[#allocation3 + $0x78] sm:$0xff] }
 0x8eb   : > { %3802 = vmatmul.mubr.bf16.gmra.mrb[104].mxu0 %v3501_v16 }
 0x8ec   : > { %3811 = vmatprep.mubr.bf16.mxu0 %v3504_v53 }
 0x8f3   : > { %3812 = vmatmul.mubr.bf16.gmra.mrb[108].mxu0 %v3503_v6 }
 0x971   : > { %v3743_v50 = vpop.f32.mrb[80].mxu0 }
 0x972   : > { %v3744_v27 = vadd.f32 %v3743_v50, %v7004_v56  ;;  %v3745_v10 = vpop.f32.mrb[81].mxu0 }
 0x973   : > { %v3746_v18 = vadd.f32 %v3745_v10, %v7006_v48  ;;  %v3747_v59 = vpop.f32.mrb[82].mxu0 }
 0x974   : > { %3822 = vst [vmem:[%s7010_s21] sm:$0xff] %v3744_v27  ;;  %v3748_v52 = vadd.f32 %v3747_v59, %v7004_v56  ;;  %v3749_v4 = vpop.f32.mrb[83].mxu0 }
 0x975   : > { %3823 = vst [vmem:[%s7010_s21 + $0x8] sm:$0xff] %v3746_v18  ;;  %v3750_v0 = vadd.f32 %v3749_v4, %v7006_v48 }
 0x976   : > { %3824 = vst [vmem:[%s7010_s21 + $0x10] sm:$0xff] %v3748_v52 }
 0x977   : > { %3825 = vst [vmem:[%s7010_s21 + $0x18] sm:$0xff] %v3750_v0 }
 0x979   : > { %v3753_v41 = vpop.f32.mrb[84].mxu0 }
 0x97a   : > { %v3754_v12 = vadd.f32 %v3753_v41, %v7004_v56  ;;  %v3755_v19 = vpop.f32.mrb[85].mxu0 }
 0x97b   : > { %v3756_v38 = vadd.f32 %v3755_v19, %v7006_v48  ;;  %v3757_v17 = vpop.f32.mrb[86].mxu0 }
 0x97c   : > { %3826 = vst [vmem:[%s7010_s21 + $0x20] sm:$0xff] %v3754_v12  ;;  %v3758_v7 = vadd.f32 %v3757_v17, %v7004_v56  ;;  %v3759_v29 = vpop.f32.mrb[87].mxu0 }
 0x97d   : > { %3827 = vst [vmem:[%s7010_s21 + $0x28] sm:$0xff] %v3756_v38  ;;  %v3760_v20 = vadd.f32 %v3759_v29, %v7006_v48 }
 0x97e   : > { %3828 = vst [vmem:[%s7010_s21 + $0x30] sm:$0xff] %v3758_v7 }
 0x97f   : > { %3829 = vst [vmem:[%s7010_s21 + $0x38] sm:$0xff] %v3760_v20 }
 0x981   : > { %v3763_v1 = vpop.f32.mrb[88].mxu0 }
 0x982   : > { %v3764_v37 = vadd.f32 %v3763_v1, %v7004_v56  ;;  %v3765_v21 = vpop.f32.mrb[89].mxu0 }
 0x983   : > { %v3766_v32 = vadd.f32 %v3765_v21, %v7006_v48  ;;  %v3767_v55 = vpop.f32.mrb[90].mxu0 }
 0x984   : > { %3830 = vst [vmem:[%s7010_s21 + $0x40] sm:$0xff] %v3764_v37  ;;  %v3768_v11 = vadd.f32 %v3767_v55, %v7004_v56  ;;  %v3769_v35 = vpop.f32.mrb[91].mxu0 }
 0x985   : > { %3831 = vst [vmem:[%s7010_s21 + $0x48] sm:$0xff] %v3766_v32  ;;  %v3770_v22 = vadd.f32 %v3769_v35, %v7006_v48 }
 0x986   : > { %3832 = vst [vmem:[%s7010_s21 + $0x50] sm:$0xff] %v3768_v11 }
 0x987   : > { %3833 = vst [vmem:[%s7010_s21 + $0x58] sm:$0xff] %v3770_v22 }
 0x989   : > { %v3773_v2 = vpop.f32.mrb[92].mxu0 }
 0x98a   : > { %v3774_v24 = vadd.f32 %v3773_v2, %v7004_v56  ;;  %v3775_v8 = vpop.f32.mrb[93].mxu0 }
 0x98b   : > { %v3776_v25 = vadd.f32 %v3775_v8, %v7006_v48  ;;  %v3777_v39 = vpop.f32.mrb[94].mxu0 }
 0x98c   : > { %3834 = vst [vmem:[%s7010_s21 + $0x60] sm:$0xff] %v3774_v24  ;;  %v3778_v63 = vadd.f32 %v3777_v39, %v7004_v56  ;;  %v3779_v34 = vpop.f32.mrb[95].mxu0 }
 0x98d   : > { %3835 = vst [vmem:[%s7010_s21 + $0x68] sm:$0xff] %v3776_v25  ;;  %v3780_v47 = vadd.f32 %v3779_v34, %v7006_v48 }
 0x98e   : > { %3836 = vst [vmem:[%s7010_s21 + $0x70] sm:$0xff] %v3778_v63 }
 0x98f   : > { %3837 = vst [vmem:[%s7010_s21 + $0x78] sm:$0xff] %v3780_v47 }
 0x9ae   : > { %v3783_v30 = vpop.f32.mrb[96].mxu0 }
 0x9af   : > { %v3784_v9 = vadd.f32 %v3783_v30, %v7004_v56  ;;  %v3785_v49 = vpop.f32.mrb[97].mxu0 }
 0x9b0   : > { %v3786_v44 = vadd.f32 %v3785_v49, %v7006_v48  ;;  %v3787_v61 = vpop.f32.mrb[98].mxu0 }
 0x9b1   : > { %3838 = vst [vmem:[%s7010_s21 + $0x80] sm:$0xff] %v3784_v9  ;;  %v3788_v13 = vadd.f32 %v3787_v61, %v7004_v56  ;;  %v3789_v51 = vpop.f32.mrb[99].mxu0 }
 0x9b2   : > { %3839 = vst [vmem:[%s7010_s21 + $0x88] sm:$0xff] %v3786_v44  ;;  %v3790_v45 = vadd.f32 %v3789_v51, %v7006_v48 }
 0x9b3   : > { %3840 = vst [vmem:[%s7010_s21 + $0x90] sm:$0xff] %v3788_v13 }
 0x9b4   : > { %3841 = vst [vmem:[%s7010_s21 + $0x98] sm:$0xff] %v3790_v45 }
 0x9b6   : > { %v3793_v40 = vpop.f32.mrb[100].mxu0 }
 0x9b7   : > { %v3794_v28 = vadd.f32 %v3793_v40, %v7004_v56  ;;  %v3795_v60 = vpop.f32.mrb[101].mxu0 }
 0x9b8   : > { %v3796_v23 = vadd.f32 %v3795_v60, %v7006_v48  ;;  %v3797_v31 = vpop.f32.mrb[102].mxu0 }
 0x9b9   : > { %3842 = vst [vmem:[%s7010_s21 + $0xa0] sm:$0xff] %v3794_v28  ;;  %v3798_v5 = vadd.f32 %v3797_v31, %v7004_v56  ;;  %v3799_v57 = vpop.f32.mrb[103].mxu0 }
 0x9ba   : > { %3843 = vst [vmem:[%s7010_s21 + $0xa8] sm:$0xff] %v3796_v23  ;;  %v3800_v46 = vadd.f32 %v3799_v57, %v7006_v48 }
 0x9bb   : > { %3844 = vst [vmem:[%s7010_s21 + $0xb0] sm:$0xff] %v3798_v5 }
 0x9bc   : > { %3845 = vst [vmem:[%s7010_s21 + $0xb8] sm:$0xff] %v3800_v46 }
 0x9be   : > { %v3803_v3 = vpop.f32.mrb[104].mxu0 }
 0x9bf   : > { %v3804_v43 = vadd.f32 %v3803_v3, %v7004_v56  ;;  %v3805_v62 = vpop.f32.mrb[105].mxu0 }
 0x9c0   : > { %v3806_v14 = vadd.f32 %v3805_v62, %v7006_v48  ;;  %v3807_v33 = vpop.f32.mrb[106].mxu0 }
 0x9c1   : > { %3846 = vst [vmem:[%s7010_s21 + $0xc0] sm:$0xff] %v3804_v43  ;;  %v3808_v36 = vadd.f32 %v3807_v33, %v7004_v56  ;;  %v3809_v54 = vpop.f32.mrb[107].mxu0 }
 0x9c2   : > { %3847 = vst [vmem:[%s7010_s21 + $0xc8] sm:$0xff] %v3806_v14  ;;  %v3810_v15 = vadd.f32 %v3809_v54, %v7006_v48 }
 0x9c3   : > { %3848 = vst [vmem:[%s7010_s21 + $0xd0] sm:$0xff] %v3808_v36 }
 0x9c4   : > { %3849 = vst [vmem:[%s7010_s21 + $0xd8] sm:$0xff] %v3810_v15 }
 0x9c6   : > { %v3813_v16 = vpop.f32.mrb[108].mxu0 }
 0x9c7   : > { %v3814_v53 = vadd.f32 %v3813_v16, %v7004_v56  ;;  %v3815_v6 = vpop.f32.mrb[109].mxu0 }
 0x9c8   : > { %v3816_v58 = vadd.f32 %v3815_v6, %v7006_v48  ;;  %v3817_v42 = vpop.f32.mrb[110].mxu0 }
 0x9c9   : > { %3850 = vst [vmem:[%s7010_s21 + $0xe0] sm:$0xff] %v3814_v53  ;;  %v3818_v26 = vadd.f32 %v3817_v42, %v7004_v56  ;;  %v3819_v50 = vpop.f32.mrb[111].mxu0 }
 0x9ca   : > { %3851 = vst [vmem:[%s7010_s21 + $0xe8] sm:$0xff] %v3816_v58  ;;  %v3820_v27 = vadd.f32 %v3819_v50, %v7006_v48 }
 0x9cb   : > { %3852 = vst [vmem:[%s7010_s21 + $0xf0] sm:$0xff] %v3818_v26 }
 0x9cc   : > { %3853 = vst [vmem:[%s7010_s21 + $0xf8] sm:$0xff] %v3820_v27 }
 0x9cd   : > { %5250 = shalt.err (!%p5247_p11)
}
 0x9ce   : > { %s5251_s9 = scalar_lea.hbm %s7075_s6, 4096  ;;  %s5255_s27 = scalar_lea.hbm %s7134_s4, 8192 }
 0x9cf   : > { %p5252_p0 = scmp.ne.s32.totalorder %s7075_s6, %s5251_s9  ;;  %p5256_p6 = scmp.lt.u32.totalorder %s7075_s6, %s7134_s4 }
 0x9d0   : > { %p5257_p7 = scmp.lt.u32.totalorder %s5255_s27, %s5251_s9  ;;  %p5259_p8 = scmp.lt.u32.totalorder %s5251_s9, %s7075_s6 }
 0x9d1   : > { %p5253_p4 = pnand %p5252_p0, %p7362_p12 }
 0x9d2   : > { %p5258_p2 = por %p5257_p7, %p5256_p6 }
 0x9d3   : > { %p5254_p13 = pneg %p5253_p4 }
 0x9d4   : > { %p5260_p1 = por %p5259_p8, %p5258_p2 }
 0x9d6   : > { %p5261_p10 = pnand %p5260_p1, %p5254_p13 }
 0x9d8   : > { %5264 = shalt.err (!%p5261_p10)
}
 0x9d9   : > { %s5334_s29 = smov 256   ;;  %s5335_s28 = smov 16  }
 0x9da   : > { %4599 = dma.vmem_to_hbm [thread:$0]  (%p7362_p12), %s7077_s22, 4096, %s7075_s6, %s3855_s18, %s5334_s29, %s5334_s29, %s5335_s28  }
 0x9db PF: > { %s3886_s7 = sand.u32 1, %s5303_s15   ;;  %p7363_p3 = scmp.ne.s32.totalorder %s7201_s26, 0 }
 0x9dc   : > { %p7364_p5 = scmp.ge.s32.totalorder %s5323_s20, 2  ;;  %s3887_s10 = scalar_lea.sflag [#allocation6], %s3886_s7 }
 0x9de   : > { %p4613_p9 = pnand %p7364_p5, %p7363_p3 }
 0x9e0   : > { %5298 = dma.done.wait (!%p4613_p9), %s3887_s10, 4096  }
 0x9e1   : > { %5300 = vsyncadd (!%p4613_p9), %s3887_s10, 4294963200  ;;  %s21_s20 = sadd.s32 1, %s5323_s20   ;;  %s7365_s15 = smov %s5307_s16 }
 0x9e2   : > { %p18_p11 = scmp.ge.s32.totalorder %s21_s20, 4   ;;  %s7366_s16 = smov %s5311_s17 }
 0x9e3   : > { %s7367_s17 = smov %s5506_s11  ;;  %s7368_s18 = smov %s5319_s19 }
 0x9e4   : > { %s7369_s19 = smov %s7371_s5  ;;  %20 = sbr.rel (!%p18_p11) target bundleno = 7 (0x7), region = 94 }
 0x9eb   :  { %3892 = vsyncpa [#allocation5], 1 }
 0x9ec   :  { %3894 = vsyncpa [#allocation5 + $0x1], 1 }
 0x9ed   :  { %3895 = vsyncpa [#allocation8], 1 }
 0x9ee   :  { %3896 = vsyncpa [#allocation6], 1 }
 0x9ef   :  { %3898 = vsyncpa [#allocation6 + $0x1], 1 }

</bundles_post_ra>
